<compile_context>
chip_gen: v6e
topology: v6e:2x2x1
jax: 0.10.0
libtpu: 0.0.40
codegen_flags: <defaults>
</compile_context>

<pallas_src>
import functools

import jax
import jax.numpy as jnp
from jax.experimental import pallas as pl
from jax.experimental.pallas import tpu as pltpu

_LANE = 128
_SUBLANE = 8

_HAS_ACT = (True, True, True, False)   # LeakyReLU(0.2) on layers 0-2
_HAS_BN = (False, True, True, False)   # BatchNorm1d (eval, folded) on layers 1-2


def _round_up(x, m):
    return (x + m - 1) // m * m


def _default_tm_max():
    """256-row LHS tiles for 256x256-MXU chips (v6e/v7x), 128 elsewhere."""
    try:
        kind = jax.devices()[0].device_kind.lower()
    except Exception:
        return 128
    return 256 if ("v6" in kind or "v7" in kind) else 128


def _mlp_fused_kernel(x_ref, w0_ref, w1_ref, w2_ref, w3_ref,
                      e0_ref, e1_ref, e2_ref, e3_ref, o_ref,
                      *, negative_slope, has_act, has_bn):
    """Entire 4-layer MLP on one (tm, K0) activation block.

    Per layer: y = x @ W + b ; then (statically selected per layer)
      act only      : LeakyReLU(slope)
      act + BN(eval): fused  where(y>0, s, slope*s)*y + t   (== leaky(y)*s + t)
      BN only       : y*s + t
    Weights are bf16; accumulation is f32 on the MXU.
    e_ref rows: [0]=bias, [1]=scale, [2]=shift.
    """

    def layer(h, w_ref, e_ref, act, bn):
        y = jnp.dot(h.astype(jnp.bfloat16), w_ref[...],
                    preferred_element_type=jnp.float32)
        y = y + e_ref[0:1, :]                               # bias
        if act and bn:
            s = e_ref[1:2, :]
            y = jnp.where(y > 0, s, negative_slope * s) * y + e_ref[2:3, :]
        elif act:
            y = jnp.where(y > 0, y, negative_slope * y)     # LeakyReLU
        elif bn:
            y = y * e_ref[1:2, :] + e_ref[2:3, :]
        # TODO(synk): Dropout(0.2) is identity in eval mode; no kernel op.
        return y

    h = x_ref[...]
    for w_ref, e_ref, act, bn in zip((w0_ref, w1_ref, w2_ref, w3_ref),
                                     (e0_ref, e1_ref, e2_ref, e3_ref),
                                     has_act, has_bn):
        h = layer(h, w_ref, e_ref, act, bn)
    o_ref[...] = h.astype(o_ref.dtype)


def pack_mlp_params(params, input_size, *, weight_dtype=jnp.bfloat16):
    """One-time prep: pad every layer's feature dims to multiples of 128
    (lane-dense loads/stores; zero padding keeps the math exact), cast weights
    to bf16, and pack bias/scale/shift into one (3, N) epilogue per layer.

    Doing this once at init (instead of per forward call) removes ~9.5 MiB of
    per-call weight pad/cast HBM traffic -- the dominant cost at small batch.
    """
    # TODO(synk): optional weight-only quantization (int8 on v5e/v6e, fp8 on
    # v7x) with per-channel scales folded into the epilogue would halve the
    # weight HBM stream again; left out pending accuracy validation.
    k0p = _round_up(input_size, _LANE)
    ws, es, dims = [], [], []
    kin = k0p
    for p in params:
        fin, fout = p["w"].shape
        finp, foutp = kin, _round_up(fout, _LANE)
        w = jnp.zeros((finp, foutp), jnp.float32).at[:fin, :fout].set(p["w"])
        ws.append(w.astype(weight_dtype))
        e = jnp.zeros((3, foutp), jnp.float32)
        e = e.at[0, :fout].set(p["b"])
        e = e.at[1, :fout].set(p["scale"])
        e = e.at[2, :fout].set(p["shift"])
        es.append(e)
        dims.append((finp, foutp))
        kin = foutp
    return dict(ws=tuple(ws), es=tuple(es), dims=tuple(dims),
                k0=input_size, k0p=k0p,
                n=params[-1]["w"].shape[1], n_pad=dims[-1][1])


def mlp_forward(packed, x, *, negative_slope=0.2, tm_max=None):
    """Fused eval-mode MLP forward.  x: (batch, input_size) f32.
    `packed` comes from pack_mlp_params (pre-padded / pre-cast weights)."""
    M, K0 = x.shape
    assert K0 == packed["k0"], (K0, packed["k0"])
    if tm_max is None:
        tm_max = _default_tm_max()

    # Batch tiling: rows padded to a sublane-tile multiple; the row grid axis
    # is "parallel" so larger batches shard across v7x's 2 TensorCores.
    tm = min(_round_up(M, _SUBLANE), tm_max)
    Mp = _round_up(M, tm)
    K0p = packed["k0p"]

    if Mp == M and K0p == K0:
        xp = x                                  # no-op padding: skip the copy
    else:
        xp = jnp.zeros((Mp, K0p), x.dtype).at[:M, :K0].set(x)

    dims = packed["dims"]
    Np, N = packed["n_pad"], packed["n"]

    kernel = functools.partial(_mlp_fused_kernel,
                               negative_slope=negative_slope,
                               has_act=_HAS_ACT, has_bn=_HAS_BN)

    resident = lambda i: (0, 0)   # weights/epilogues: same block every step
    # TODO(synk): single-buffer the resident weight/epilogue operands
    # (pipeline_mode=pl.Buffered(1)) to reclaim ~3.2 MiB VMEM when tm grows.

    out = pl.pallas_call(
        kernel,
        out_shape=jax.ShapeDtypeStruct((Mp, Np), jnp.float32),
        grid_spec=pltpu.PrefetchScalarGridSpec(
            num_scalar_prefetch=0,
            grid=(Mp // tm,),
            in_specs=[
                pl.BlockSpec((tm, K0p), lambda i: (i, 0)),     # x rows
                pl.BlockSpec(dims[0], resident),               # W0 (full)
                pl.BlockSpec(dims[1], resident),               # W1 (full)
                pl.BlockSpec(dims[2], resident),               # W2 (full)
                pl.BlockSpec(dims[3], resident),               # W3 (full)
                pl.BlockSpec((3, dims[0][1]), resident),       # bias/scale/shift 0
                pl.BlockSpec((3, dims[1][1]), resident),
                pl.BlockSpec((3, dims[2][1]), resident),
                pl.BlockSpec((3, dims[3][1]), resident),
            ],
            out_specs=pl.BlockSpec((tm, Np), lambda i: (i, 0)),
        ),
        compiler_params=pltpu.CompilerParams(
            dimension_semantics=("parallel",),
            # bf16 weights (double-buffered) + a 256-row tile's intermediates
            # stay well under 32 MiB scoped VMEM on v5e/v6e/v7x.
            vmem_limit_bytes=32 * 1024 * 1024),
    )(xp, *packed["ws"], *packed["es"])

    if Mp == M and Np == N:
        return out                              # no-op slice: skip the copy
    return out[:M, :N]


def init_mlp_params(key, input_size, output_size):
    """Deterministic synthetic params mirroring MLP.__init__ shapes."""
    sizes = [(input_size, 2048), (2048, 512), (512, 128), (128, output_size)]
    params = []
    for (fin, fout), bn in zip(sizes, _HAS_BN):
        key, kw, kb, kg, kbeta, km, kv = jax.random.split(key, 7)
        bound = 1.0 / jnp.sqrt(fin)
        w = jax.random.uniform(kw, (fin, fout), jnp.float32, -bound, bound)
        b = jax.random.uniform(kb, (fout,), jnp.float32, -bound, bound)
        if bn:
            gamma = 1.0 + 0.1 * jax.random.normal(kg, (fout,), jnp.float32)
            beta = 0.1 * jax.random.normal(kbeta, (fout,), jnp.float32)
            r_mean = 0.1 * jax.random.normal(km, (fout,), jnp.float32)
            r_var = jnp.abs(1.0 + 0.1 * jax.random.normal(kv, (fout,),
                                                          jnp.float32))
            eps = 1e-5
            scale = gamma / jnp.sqrt(r_var + eps)   # fold BN (eval mode)
            shift = beta - r_mean * scale
        else:
            scale = jnp.ones((fout,), jnp.float32)
            shift = jnp.zeros((fout,), jnp.float32)
        params.append(dict(w=w, b=b, scale=scale, shift=shift))
    return params


if __name__ == "__main__":
    key = jax.random.PRNGKey(0)
    batch, input_size, output_size = 8, 256, 64

    kp, kx = jax.random.split(key)
    params = init_mlp_params(kp, input_size, output_size)
    packed = pack_mlp_params(params, input_size)        # one-time pre-pack
    x = jax.random.normal(kx, (batch, input_size), jnp.float32)

    out = mlp_forward(packed, x)
    out = jax.block_until_ready(out)
    assert out.shape == (batch, output_size), out.shape

    # Pure-JAX reference with matched precision (bf16 weights/activations into
    # the matmul, f32 accumulation and epilogue), eval-mode semantics.
    def ref_forward(params, x):
        h = x
        for li, p in enumerate(params):
            h = jnp.dot(h.astype(jnp.bfloat16), p["w"].astype(jnp.bfloat16),
                        preferred_element_type=jnp.float32)
            h = h + p["b"]
            if _HAS_ACT[li]:
                h = jnp.where(h > 0, h, 0.2 * h)
            if _HAS_BN[li]:
                h = h * p["scale"] + p["shift"]
        return h

    ref = ref_forward(params, x)
    err = float(jnp.max(jnp.abs(out - ref)))
    assert jnp.allclose(out, ref, atol=1e-2, rtol=1e-2), err

    print("KERNEL_OK")
</pallas_src>

<mosaic_0001>
module attributes {stable_mosaic.version = 11 : i64} {
  func.func @_mlp_fused_kernel(%arg0: i32, %arg1: memref<8x256xf32, #tpu.memory_space<vmem>>, %arg2: memref<256x2048xbf16, #tpu.memory_space<vmem>>, %arg3: memref<2048x512xbf16, #tpu.memory_space<vmem>>, %arg4: memref<512x128xbf16, #tpu.memory_space<vmem>>, %arg5: memref<128x128xbf16, #tpu.memory_space<vmem>>, %arg6: memref<3x2048xf32, #tpu.memory_space<vmem>>, %arg7: memref<3x512xf32, #tpu.memory_space<vmem>>, %arg8: memref<3x128xf32, #tpu.memory_space<vmem>>, %arg9: memref<3x128xf32, #tpu.memory_space<vmem>>, %arg10: memref<8x128xf32, #tpu.memory_space<vmem>>) attributes {dimension_semantics = [#tpu.dimension_semantics<parallel>], iteration_bounds = array<i64: 1>, scalar_prefetch = 0 : i64, scratch_operands = 0 : i64, tpu.core_type = #tpu.core_type<tc>, window_params = [{transform_indices = @transform_0, window_bounds = array<i64: 8, 256>}, {pipeline_mode = #tpu.pipeline_mode<synchronous>, transform_indices = @transform_1, window_bounds = array<i64: 256, 2048>}, {pipeline_mode = #tpu.pipeline_mode<synchronous>, transform_indices = @transform_2, window_bounds = array<i64: 2048, 512>}, {pipeline_mode = #tpu.pipeline_mode<synchronous>, transform_indices = @transform_3, window_bounds = array<i64: 512, 128>}, {pipeline_mode = #tpu.pipeline_mode<synchronous>, transform_indices = @transform_4, window_bounds = array<i64: 128, 128>}, {pipeline_mode = #tpu.pipeline_mode<synchronous>, transform_indices = @transform_5, window_bounds = array<i64: 3, 2048>}, {pipeline_mode = #tpu.pipeline_mode<synchronous>, transform_indices = @transform_6, window_bounds = array<i64: 3, 512>}, {pipeline_mode = #tpu.pipeline_mode<synchronous>, transform_indices = @transform_7, window_bounds = array<i64: 3, 128>}, {pipeline_mode = #tpu.pipeline_mode<synchronous>, transform_indices = @transform_8, window_bounds = array<i64: 3, 128>}, {transform_indices = @transform_9, window_bounds = array<i64: 8, 128>}]} {
    %c0 = arith.constant 0 : index
    %c0_0 = arith.constant 0 : index
    %0 = vector.load %arg1[%c0, %c0_0] : memref<8x256xf32, #tpu.memory_space<vmem>>, vector<8x256xf32>
    %1 = arith.truncf %0 : vector<8x256xf32> to vector<8x256xbf16>
    %c0_1 = arith.constant 0 : index
    %c0_2 = arith.constant 0 : index
    %2 = vector.load %arg2[%c0_1, %c0_2] : memref<256x2048xbf16, #tpu.memory_space<vmem>>, vector<256x2048xbf16>
    %cst = arith.constant dense<0.000000e+00> : vector<8x2048xf32>
    %3 = tpu.matmul %1, %2, %cst {dimension_numbers = #tpu.dot_dimension_numbers<[1], [0], [0], [1], [0, 0, 1, 1], [], []>} : vector<8x256xbf16>, vector<256x2048xbf16>, vector<8x2048xf32> -> vector<8x2048xf32>
    %c0_3 = arith.constant 0 : index
    %c0_4 = arith.constant 0 : index
    %4 = vector.load %arg6[%c0_3, %c0_4] : memref<3x2048xf32, #tpu.memory_space<vmem>>, vector<1x2048xf32>
    %5 = vector.broadcast %4 : vector<1x2048xf32> to vector<8x2048xf32>
    %6 = arith.addf %3, %5 : vector<8x2048xf32>
    %cst_5 = arith.constant 0.000000e+00 : f32
    %7 = vector.broadcast %cst_5 : f32 to vector<8x2048xf32>
    %8 = arith.cmpf ogt, %6, %7 : vector<8x2048xf32>
    %cst_6 = arith.constant 2.000000e-01 : f32
    %9 = vector.broadcast %cst_6 : f32 to vector<8x2048xf32>
    %10 = arith.mulf %9, %6 : vector<8x2048xf32>
    %11 = arith.select %8, %6, %10 : vector<8x2048xi1>, vector<8x2048xf32>
    %12 = arith.truncf %11 : vector<8x2048xf32> to vector<8x2048xbf16>
    %c0_7 = arith.constant 0 : index
    %c0_8 = arith.constant 0 : index
    %13 = vector.load %arg3[%c0_7, %c0_8] : memref<2048x512xbf16, #tpu.memory_space<vmem>>, vector<2048x512xbf16>
    %cst_9 = arith.constant dense<0.000000e+00> : vector<8x512xf32>
    %14 = tpu.matmul %12, %13, %cst_9 {dimension_numbers = #tpu.dot_dimension_numbers<[1], [0], [0], [1], [0, 0, 1, 1], [], []>} : vector<8x2048xbf16>, vector<2048x512xbf16>, vector<8x512xf32> -> vector<8x512xf32>
    %c0_10 = arith.constant 0 : index
    %c0_11 = arith.constant 0 : index
    %15 = vector.load %arg7[%c0_10, %c0_11] : memref<3x512xf32, #tpu.memory_space<vmem>>, vector<1x512xf32>
    %16 = vector.broadcast %15 : vector<1x512xf32> to vector<8x512xf32>
    %17 = arith.addf %14, %16 : vector<8x512xf32>
    %c1 = arith.constant 1 : index
    %c0_12 = arith.constant 0 : index
    %18 = vector.load %arg7[%c1, %c0_12] : memref<3x512xf32, #tpu.memory_space<vmem>>, vector<1x512xf32>
    %cst_13 = arith.constant 0.000000e+00 : f32
    %19 = vector.broadcast %cst_13 : f32 to vector<8x512xf32>
    %20 = arith.cmpf ogt, %17, %19 : vector<8x512xf32>
    %cst_14 = arith.constant 2.000000e-01 : f32
    %21 = vector.broadcast %cst_14 : f32 to vector<1x512xf32>
    %22 = arith.mulf %21, %18 : vector<1x512xf32>
    %23 = vector.shape_cast %18 : vector<1x512xf32> to vector<1x512xf32>
    %24 = vector.broadcast %23 : vector<1x512xf32> to vector<8x512xf32>
    %25 = vector.shape_cast %22 : vector<1x512xf32> to vector<1x512xf32>
    %26 = vector.broadcast %25 : vector<1x512xf32> to vector<8x512xf32>
    %27 = arith.select %20, %24, %26 : vector<8x512xi1>, vector<8x512xf32>
    %28 = arith.mulf %27, %17 : vector<8x512xf32>
    %c2 = arith.constant 2 : index
    %c0_15 = arith.constant 0 : index
    %29 = vector.load %arg7[%c2, %c0_15] : memref<3x512xf32, #tpu.memory_space<vmem>>, vector<1x512xf32>
    %30 = vector.broadcast %29 : vector<1x512xf32> to vector<8x512xf32>
    %31 = arith.addf %28, %30 : vector<8x512xf32>
    %32 = arith.truncf %31 : vector<8x512xf32> to vector<8x512xbf16>
    %c0_16 = arith.constant 0 : index
    %c0_17 = arith.constant 0 : index
    %33 = vector.load %arg4[%c0_16, %c0_17] : memref<512x128xbf16, #tpu.memory_space<vmem>>, vector<512x128xbf16>
    %cst_18 = arith.constant dense<0.000000e+00> : vector<8x128xf32>
    %34 = tpu.matmul %32, %33, %cst_18 {dimension_numbers = #tpu.dot_dimension_numbers<[1], [0], [0], [1], [0, 0, 1, 1], [], []>} : vector<8x512xbf16>, vector<512x128xbf16>, vector<8x128xf32> -> vector<8x128xf32>
    %c0_19 = arith.constant 0 : index
    %c0_20 = arith.constant 0 : index
    %35 = vector.load %arg8[%c0_19, %c0_20] : memref<3x128xf32, #tpu.memory_space<vmem>>, vector<1x128xf32>
    %36 = vector.broadcast %35 : vector<1x128xf32> to vector<8x128xf32>
    %37 = arith.addf %34, %36 : vector<8x128xf32>
    %c1_21 = arith.constant 1 : index
    %c0_22 = arith.constant 0 : index
    %38 = vector.load %arg8[%c1_21, %c0_22] : memref<3x128xf32, #tpu.memory_space<vmem>>, vector<1x128xf32>
    %cst_23 = arith.constant 0.000000e+00 : f32
    %39 = vector.broadcast %cst_23 : f32 to vector<8x128xf32>
    %40 = arith.cmpf ogt, %37, %39 : vector<8x128xf32>
    %cst_24 = arith.constant 2.000000e-01 : f32
    %41 = vector.broadcast %cst_24 : f32 to vector<1x128xf32>
    %42 = arith.mulf %41, %38 : vector<1x128xf32>
    %43 = vector.shape_cast %38 : vector<1x128xf32> to vector<1x128xf32>
    %44 = vector.broadcast %43 : vector<1x128xf32> to vector<8x128xf32>
    %45 = vector.shape_cast %42 : vector<1x128xf32> to vector<1x128xf32>
    %46 = vector.broadcast %45 : vector<1x128xf32> to vector<8x128xf32>
    %47 = arith.select %40, %44, %46 : vector<8x128xi1>, vector<8x128xf32>
    %48 = arith.mulf %47, %37 : vector<8x128xf32>
    %c2_25 = arith.constant 2 : index
    %c0_26 = arith.constant 0 : index
    %49 = vector.load %arg8[%c2_25, %c0_26] : memref<3x128xf32, #tpu.memory_space<vmem>>, vector<1x128xf32>
    %50 = vector.broadcast %49 : vector<1x128xf32> to vector<8x128xf32>
    %51 = arith.addf %48, %50 : vector<8x128xf32>
    %52 = arith.truncf %51 : vector<8x128xf32> to vector<8x128xbf16>
    %c0_27 = arith.constant 0 : index
    %c0_28 = arith.constant 0 : index
    %53 = vector.load %arg5[%c0_27, %c0_28] : memref<128x128xbf16, #tpu.memory_space<vmem>>, vector<128x128xbf16>
    %cst_29 = arith.constant dense<0.000000e+00> : vector<8x128xf32>
    %54 = tpu.matmul %52, %53, %cst_29 {dimension_numbers = #tpu.dot_dimension_numbers<[1], [0], [0], [1], [0, 0, 1, 1], [], []>} : vector<8x128xbf16>, vector<128x128xbf16>, vector<8x128xf32> -> vector<8x128xf32>
    %c0_30 = arith.constant 0 : index
    %c0_31 = arith.constant 0 : index
    %55 = vector.load %arg9[%c0_30, %c0_31] : memref<3x128xf32, #tpu.memory_space<vmem>>, vector<1x128xf32>
    %56 = vector.broadcast %55 : vector<1x128xf32> to vector<8x128xf32>
    %57 = arith.addf %54, %56 : vector<8x128xf32>
    %c0_32 = arith.constant 0 : index
    %c0_33 = arith.constant 0 : index
    %58 = vector.load %arg10[%c0_32, %c0_33] : memref<8x128xf32, #tpu.memory_space<vmem>>, vector<8x128xf32>
    tpu.vector_store %arg10[%c0_32, %c0_33], %57 {strides = array<i32>} : memref<8x128xf32, #tpu.memory_space<vmem>>, vector<8x128xf32>,
    return
  }
  func.func @transform_0(%arg0: i32) -> (i32, i32) {
    %c0_i32 = arith.constant 0 : i32
    %c0_i32_0 = arith.constant 0 : i32
    return %arg0, %c0_i32 : i32, i32
  }
  func.func @transform_1(%arg0: i32) -> (i32, i32) {
    %c0_i32 = arith.constant 0 : i32
    %c0_i32_0 = arith.constant 0 : i32
    %c0_i32_1 = arith.constant 0 : i32
    return %c0_i32, %c0_i32_0 : i32, i32
  }
  func.func @transform_2(%arg0: i32) -> (i32, i32) {
    %c0_i32 = arith.constant 0 : i32
    %c0_i32_0 = arith.constant 0 : i32
    %c0_i32_1 = arith.constant 0 : i32
    return %c0_i32, %c0_i32_0 : i32, i32
  }
  func.func @transform_3(%arg0: i32) -> (i32, i32) {
    %c0_i32 = arith.constant 0 : i32
    %c0_i32_0 = arith.constant 0 : i32
    %c0_i32_1 = arith.constant 0 : i32
    return %c0_i32, %c0_i32_0 : i32, i32
  }
  func.func @transform_4(%arg0: i32) -> (i32, i32) {
    %c0_i32 = arith.constant 0 : i32
    %c0_i32_0 = arith.constant 0 : i32
    %c0_i32_1 = arith.constant 0 : i32
    return %c0_i32, %c0_i32_0 : i32, i32
  }
  func.func @transform_5(%arg0: i32) -> (i32, i32) {
    %c0_i32 = arith.constant 0 : i32
    %c0_i32_0 = arith.constant 0 : i32
    %c0_i32_1 = arith.constant 0 : i32
    return %c0_i32, %c0_i32_0 : i32, i32
  }
  func.func @transform_6(%arg0: i32) -> (i32, i32) {
    %c0_i32 = arith.constant 0 : i32
    %c0_i32_0 = arith.constant 0 : i32
    %c0_i32_1 = arith.constant 0 : i32
    return %c0_i32, %c0_i32_0 : i32, i32
  }
  func.func @transform_7(%arg0: i32) -> (i32, i32) {
    %c0_i32 = arith.constant 0 : i32
    %c0_i32_0 = arith.constant 0 : i32
    %c0_i32_1 = arith.constant 0 : i32
    return %c0_i32, %c0_i32_0 : i32, i32
  }
  func.func @transform_8(%arg0: i32) -> (i32, i32) {
    %c0_i32 = arith.constant 0 : i32
    %c0_i32_0 = arith.constant 0 : i32
    %c0_i32_1 = arith.constant 0 : i32
    return %c0_i32, %c0_i32_0 : i32, i32
  }
  func.func @transform_9(%arg0: i32) -> (i32, i32) {
    %c0_i32 = arith.constant 0 : i32
    %c0_i32_0 = arith.constant 0 : i32
    return %arg0, %c0_i32 : i32, i32
  }
}

</mosaic_0001>

<bundles_post_ra>
// kernel: tpu_custom_call.1
= control target key start
LH: loop header
LB: loop body
LE: loop exit
PB: predicated region body
PF: predicated region fallthrough
CT: control target
= control target key end

     0   :  { %14 = vsyncpa [#allocation3], 0  ;;  %s8760_s0 = inlined_call_operand.hbm [shape: f32[8,256], index: 0, kind: input, shape index: {}]   ;;  %s8761_s1 = inlined_call_operand.hbm [shape: bf16[256,2048], index: 1, kind: input, shape index: {}]   ;;  %s8762_s2 = inlined_call_operand.hbm [shape: bf16[2048,512], index: 2, kind: input, shape index: {}]   ;;  %s8763_s3 = inlined_call_operand.hbm [shape: bf16[512,128], index: 3, kind: input, shape index: {}]   ;;  %s8764_s4 = inlined_call_operand.hbm [shape: bf16[128,128], index: 4, kind: input, shape index: {}]   ;;  %s8765_s5 = inlined_call_operand.hbm [shape: f32[3,2048], index: 5, kind: input, shape index: {}]   ;;  %s8766_s6 = inlined_call_operand.hbm [shape: f32[3,512], index: 6, kind: input, shape index: {}]   ;;  %s8767_s7 = inlined_call_operand.hbm [shape: f32[3,128], index: 7, kind: input, shape index: {}]   ;;  %s8768_s8 = inlined_call_operand.hbm [shape: f32[3,128], index: 8, kind: input, shape index: {}]   ;;  %s8769_s9 = inlined_call_operand.hbm [shape: f32[8,128], index: 9, kind: output, shape index: {}]  }
   0x1   :  { %15 = vsyncpa [#allocation6], 0 }
   0x2   :  { %16 = vsyncpa [#allocation9], 0 }
   0x3   :  { %17 = vsyncpa [#allocation12], 0 }
   0x4   :  { %18 = vsyncpa [#allocation15], 0 }
   0x5   :  { %19 = vsyncpa [#allocation4], 0  ;;  %s8414_s30 = smov [#allocation5]  }
   0x6   :  { %s35_s10 = sshll.u32 %s8414_s30, 4  ;;  %s36_s10 = int_to_ptr.vmem [resolvable:$true] %s35_s10 }
   0x7   :  { %s8210_s11 = scalar_lea.vmem %s36_s10, 32768  ;;  %p8215_p1 = scmp.lt.s32.totalorder %s36_s10, %s36_s10 }
   0x8   :  { %p8211_p0 = scmp.ne.s32.totalorder %s36_s10, %s8210_s11  ;;  %p8216_p2 = scmp.lt.s32.totalorder %s8210_s11, %s8210_s11 }
   0xa   :  { %p8217_p3 = por %p8216_p2, %p8215_p1 }
   0xc   :  { %p8218_p4 = pnand %p8217_p3, %p8211_p0 }
   0xe   :  { %8221 = shalt.err (!%p8218_p4)
}
   0xf   :  { %s8415_s12 = smov 1024   ;;  %s8416_s13 = smov 64  }
  0x10   :  { %41 = dma.hbm_to_vmem [thread:$0]  %s8761_s1, 32768, %s36_s10, [#allocation6], %s8415_s12, %s8415_s12, %s8416_s13  }
  0x11   :  { %s8417_s16 = smov [#allocation8]  }
  0x12   :  { %s59_s17 = sshll.u32 %s8417_s16, 4  ;;  %s60_s17 = int_to_ptr.vmem [resolvable:$true] %s59_s17 }
  0x13   :  { %s8230_s18 = scalar_lea.vmem %s60_s17, 4096  ;;  %p8235_p6 = scmp.lt.s32.totalorder %s60_s17, %s60_s17 }
  0x14   :  { %p8231_p5 = scmp.ne.s32.totalorder %s60_s17, %s8230_s18  ;;  %p8236_p7 = scmp.lt.s32.totalorder %s8230_s18, %s8230_s18 }
  0x16   :  { %p8237_p8 = por %p8236_p7, %p8235_p6 }
  0x18   :  { %p8238_p9 = pnand %p8237_p8, %p8231_p5 }
  0x1a   :  { %8241 = shalt.err (!%p8238_p9)
}
  0x1b   :  { %s8418_s19 = smov 4   ;;  %s8419_s22 = smov [#allocation11]  }
  0x1c   :  { %65 = dma.hbm_to_vmem [thread:$0]  %s8763_s3, 4096, %s60_s17, [#allocation9], %s8416_s13, %s8416_s13, %s8418_s19  }
  0x1d   :  { %s84_s1 = sshll.u32 %s8419_s22, 4  ;;  %s8420_s23 = smov [#allocation14]   ;;  %s85_s1 = int_to_ptr.vmem [resolvable:$true] %s84_s1 }
  0x1e   :  { %s104_s24 = sshll.u32 %s8420_s23, 4  ;;  %s8250_s25 = scalar_lea.vmem %s85_s1, 1024  ;;  %s105_s24 = int_to_ptr.vmem [resolvable:$true] %s104_s24 }
  0x1f   :  { %p8251_p10 = scmp.ne.s32.totalorder %s85_s1, %s8250_s25  ;;  %p8255_p11 = scmp.lt.s32.totalorder %s85_s1, %s85_s1 }
  0x20   :  { %p8256_p12 = scmp.lt.s32.totalorder %s8250_s25, %s8250_s25 }
  0x22   :  { %p8257_p13 = por %p8256_p12, %p8255_p11 }
  0x24   :  { %p8258_p0 = pnand %p8257_p13, %p8251_p10 }
  0x26   :  { %8261 = shalt.err (!%p8258_p0)
}
  0x27   :  { %87 = dma.hbm_to_vmem [thread:$0]  %s8765_s5, 1024, %s85_s1, [#allocation12]  }
  0x28   :  { %s8270_s28 = scalar_lea.vmem %s105_s24, 64  ;;  %p8275_p2 = scmp.lt.s32.totalorder %s105_s24, %s105_s24 }
  0x29   :  { %p8271_p1 = scmp.ne.s32.totalorder %s105_s24, %s8270_s28  ;;  %p8276_p3 = scmp.lt.s32.totalorder %s8270_s28, %s8270_s28 }
  0x2b   :  { %p8277_p4 = por %p8276_p3, %p8275_p2 }
  0x2d   :  { %p8278_p5 = pnand %p8277_p4, %p8271_p1 }
  0x2f   :  { %8281 = shalt.err (!%p8278_p5)
}
  0x30   :  { %107 = dma.hbm_to_vmem [thread:$0]  %s8767_s7, 64, %s105_s24, [#allocation15]  }
  0x31   :  { %s8421_s30 = smov [#allocation2]   ;;  %s8422_s11 = smov [#allocation7]  }
  0x32   :  { %s26_s10 = sshll.u32 %s8421_s30, 4  ;;  %s47_s12 = sshll.u32 %s8422_s11, 4  ;;  %s27_s10 = int_to_ptr.vmem [resolvable:$true] %s26_s10  ;;  %s48_s12 = int_to_ptr.vmem [resolvable:$true] %s47_s12 }
  0x33   :  { %s8290_s14 = scalar_lea.vmem %s27_s10, 256  ;;  %p8295_p7 = scmp.lt.s32.totalorder %s27_s10, %s27_s10 }
  0x34   :  { %p8291_p6 = scmp.ne.s32.totalorder %s27_s10, %s8290_s14  ;;  %p8296_p8 = scmp.lt.s32.totalorder %s8290_s14, %s8290_s14 }
  0x36   :  { %p8297_p9 = por %p8296_p8, %p8295_p7 }
  0x38   :  { %p8298_p10 = pnand %p8297_p9, %p8291_p6 }
  0x3a   :  { %8301 = shalt.err (!%p8298_p10)
}
  0x3b   :  { %29 = dma.hbm_to_vmem [thread:$0]  %s8760_s0, 256, %s27_s10, [#allocation3]  }
  0x3c   :  { %s8310_s16 = scalar_lea.vmem %s48_s12, 65536  ;;  %p8315_p12 = scmp.lt.s32.totalorder %s48_s12, %s48_s12 }
  0x3d   :  { %p8311_p11 = scmp.ne.s32.totalorder %s48_s12, %s8310_s16  ;;  %p8316_p13 = scmp.lt.s32.totalorder %s8310_s16, %s8310_s16 }
  0x3f   :  { %p8317_p0 = por %p8316_p13, %p8315_p12 }
  0x41   :  { %p8318_p1 = pnand %p8317_p0, %p8311_p11 }
  0x43   :  { %8321 = shalt.err (!%p8318_p1)
}
  0x44   :  { %s8423_s7 = smov 256   ;;  %s8424_s17 = smov 16  }
  0x45   :  { %53 = dma.hbm_to_vmem [thread:$0]  %s8762_s2, 65536, %s48_s12, [#allocation6], %s8423_s7, %s8423_s7, %s8424_s17  }
  0x46   :  { %s8425_s21 = smov [#allocation10]   ;;  %s8426_s1 = smov [#allocation13]  }
  0x47   :  { %s71_s22 = sshll.u32 %s8425_s21, 4  ;;  %s94_s23 = sshll.u32 %s8426_s1, 4  ;;  %s72_s22 = int_to_ptr.vmem [resolvable:$true] %s71_s22  ;;  %s95_s23 = int_to_ptr.vmem [resolvable:$true] %s94_s23 }
  0x48   :  { %s8330_s0 = scalar_lea.vmem %s72_s22, 1024  ;;  %p8335_p3 = scmp.lt.s32.totalorder %s72_s22, %s72_s22 }
  0x49   :  { %p8331_p2 = scmp.ne.s32.totalorder %s72_s22, %s8330_s0  ;;  %p8336_p4 = scmp.lt.s32.totalorder %s8330_s0, %s8330_s0 }
  0x4b   :  { %p8337_p5 = por %p8336_p4, %p8335_p3 }
  0x4d   :  { %p8338_p6 = pnand %p8337_p5, %p8331_p2 }
  0x4f   :  { %8341 = shalt.err (!%p8338_p6)
}
  0x50   :  { %77 = dma.hbm_to_vmem [thread:$0]  %s8764_s4, 1024, %s72_s22, [#allocation9], %s8416_s13, %s8416_s13, %s8418_s19  }
  0x51   :  { %s8350_s2 = scalar_lea.vmem %s95_s23, 256  ;;  %p8355_p8 = scmp.lt.s32.totalorder %s95_s23, %s95_s23 }
  0x52   :  { %p8351_p7 = scmp.ne.s32.totalorder %s95_s23, %s8350_s2  ;;  %p8356_p9 = scmp.lt.s32.totalorder %s8350_s2, %s8350_s2 }
  0x54   :  { %p8357_p10 = por %p8356_p9, %p8355_p8 }
  0x56   :  { %p8358_p11 = pnand %p8357_p10, %p8351_p7 }
  0x58   :  { %8361 = shalt.err (!%p8358_p11)
}
  0x59   :  { %97 = dma.hbm_to_vmem [thread:$0]  %s8766_s6, 256, %s95_s23, [#allocation12]  }
  0x5a   :  { %s8427_s28 = smov [#allocation16]  }
  0x5b   :  { %s114_s3 = sshll.u32 %s8427_s28, 4  ;;  %s115_s3 = int_to_ptr.vmem [resolvable:$true] %s114_s3 }
  0x5c   :  { %s8370_s29 = scalar_lea.vmem %s115_s3, 64  ;;  %p8375_p13 = scmp.lt.s32.totalorder %s115_s3, %s115_s3 }
  0x5d   :  { %p8371_p12 = scmp.ne.s32.totalorder %s115_s3, %s8370_s29  ;;  %p8376_p0 = scmp.lt.s32.totalorder %s8370_s29, %s8370_s29 }
  0x5f   :  { %p8377_p1 = por %p8376_p0, %p8375_p13 }
  0x61   :  { %p8378_p2 = pnand %p8377_p1, %p8371_p12 }
  0x63   :  { %8381 = shalt.err (!%p8378_p2)
}
  0x64   :  { %117 = dma.hbm_to_vmem [thread:$0]  %s8768_s8, 64, %s115_s3, [#allocation15]  }
  0x65   :  { %8402 = dma.done.wait [#allocation3], 256  }
  0x66   :  { %8403 = vsyncadd [#allocation3], 4294967040 }
  0x67   :  { %8404 = dma.done.wait [#allocation6], 98304  }
  0x68   :  { %8405 = vsyncadd [#allocation6], 4294868992 }
  0x69   :  { %8406 = dma.done.wait [#allocation9], 5120  }
  0x6a   :  { %8407 = vsyncadd [#allocation9], 4294962176 }
  0x6b   :  { %8408 = dma.done.wait [#allocation12], 1280  }
  0x6c   :  { %8409 = vsyncadd [#allocation12], 4294966016 }
  0x6d   :  { %8410 = dma.done.wait [#allocation15], 128  }
  0x6e   :  { %8411 = vsyncadd [#allocation15], 4294967168  ;;  %v262_v0 = vld [vmem:[#allocation5 + $0x380] sm:$0xff]  ;;  %v263_v2 = vld [vmem:[#allocation5 + $0x388] sm:$0xff]  ;;  %s8430_s6 = smov [#allocation17]  }
  0x6f   :  { %v270_v1 = vld [vmem:[#allocation5 + $0x3c0] sm:$0xff]  ;;  %v271_v4 = vld [vmem:[#allocation5 + $0x3c8] sm:$0xff]  ;;  %v147_v53 = vld [vmem:[#allocation2 + $0x8] sm:$0xff]  ;;  %s6478_s8 = sshll.u32 %s8430_s6, 4  ;;  %s6479_s8 = int_to_ptr.vmem [resolvable:$true] %s6478_s8 }
  0x70   :  { %v6604_v3 = vcombine.high %v262_v0, %v270_v1  ;;  %v6603_v5 = vcombine.low %v262_v0, %v270_v1  ;;  %v246_v6 = vld [vmem:[#allocation5 + $0x300] sm:$0xff]  ;;  %v6606_v8 = vcombine.high %v263_v2, %v271_v4  ;;  %v6605_v9 = vcombine.low %v263_v2, %v271_v4  ;;  %v247_v11 = vld [vmem:[#allocation5 + $0x308] sm:$0xff]  ;;  %s8382_s19 = scalar_lea.vmem %s6479_s8, 128  ;;  %p8387_p4 = scmp.lt.s32.totalorder %s6479_s8, %s6479_s8 }
  0x71   :  { %v254_v7 = vld [vmem:[#allocation5 + $0x340] sm:$0xff]  ;;  %v255_v12 = vld [vmem:[#allocation5 + $0x348] sm:$0xff]  ;;  %v8515_v57 = vpack.c.bf16 %v147_v53, %v147_v53  ;;  %p8383_p3 = scmp.ne.s32.totalorder %s6479_s8, %s8382_s19  ;;  %p8388_p5 = scmp.lt.s32.totalorder %s8382_s19, %s8382_s19 }
  0x72   :  { %v6588_v10 = vcombine.high %v246_v6, %v254_v7  ;;  %v230_v13 = vld [vmem:[#allocation5 + $0x280] sm:$0xff]  ;;  %1771 = vmatprep.subr.bf16.mxu0 %v6604_v3  ;;  %v6590_v14 = vcombine.high %v247_v11, %v255_v12  ;;  %v231_v16 = vld [vmem:[#allocation5 + $0x288] sm:$0xff]  ;;  %1812 = vmatprep.subr.bf16.mxu1 %v6606_v8  ;;  %v6587_v18 = vcombine.low %v246_v6, %v254_v7 }
  0x73   :  { %v238_v15 = vld [vmem:[#allocation5 + $0x2c0] sm:$0xff]  ;;  %v239_v17 = vld [vmem:[#allocation5 + $0x2c8] sm:$0xff]  ;;  %1772 = vmatpush1.bf16.msra.mxu0 %v6603_v5  ;;  %1813 = vmatpush1.bf16.msra.mxu1 %v6605_v9  ;;  %v6589_v19 = vcombine.low %v247_v11, %v255_v12  ;;  %p8389_p6 = por %p8388_p5, %p8387_p4 }
  0x74   :  { %1773 = vmatprep.subr.bf16.mxu0 %v6588_v10  ;;  %v6572_v20 = vcombine.high %v230_v13, %v238_v15  ;;  %1814 = vmatprep.subr.bf16.mxu1 %v6590_v14  ;;  %v6574_v21 = vcombine.high %v231_v16, %v239_v17  ;;  %v214_v22 = vld [vmem:[#allocation5 + $0x200] sm:$0xff]  ;;  %v215_v24 = vld [vmem:[#allocation5 + $0x208] sm:$0xff]  ;;  %v6571_v26 = vcombine.low %v230_v13, %v238_v15 }
  0x75   :  { %v222_v23 = vld [vmem:[#allocation5 + $0x240] sm:$0xff]  ;;  %v223_v25 = vld [vmem:[#allocation5 + $0x248] sm:$0xff]  ;;  %v6573_v27 = vcombine.low %v231_v16, %v239_v17  ;;  %1803 = vmatprep.mubr.bf16.mxu0 %v8515_v57  ;;  %1844 = vmatprep.mubr.bf16.mxu1 %v8515_v57  ;;  %p8390_p7 = pnand %p8389_p6, %p8383_p3 }
  0x76   :  { %v6556_v28 = vcombine.high %v214_v22, %v222_v23  ;;  %v6558_v29 = vcombine.high %v215_v24, %v223_v25  ;;  %v198_v30 = vld [vmem:[#allocation5 + $0x180] sm:$0xff]  ;;  %v199_v32 = vld [vmem:[#allocation5 + $0x188] sm:$0xff]  ;;  %v6555_v34 = vcombine.low %v214_v22, %v222_v23  ;;  %v6557_v35 = vcombine.low %v215_v24, %v223_v25 }
  0x77   :  { %1774 = vmatpush1.bf16.msra.mxu0 %v6587_v18  ;;  %1815 = vmatpush1.bf16.msra.mxu1 %v6589_v19  ;;  %v206_v31 = vld [vmem:[#allocation5 + $0x1c0] sm:$0xff]  ;;  %v207_v33 = vld [vmem:[#allocation5 + $0x1c8] sm:$0xff] }
  0x78   :  { %1775 = vmatprep.subr.bf16.mxu0 %v6572_v20  ;;  %1816 = vmatprep.subr.bf16.mxu1 %v6574_v21  ;;  %v6540_v36 = vcombine.high %v198_v30, %v206_v31  ;;  %v6542_v37 = vcombine.high %v199_v32, %v207_v33  ;;  %v182_v38 = vld [vmem:[#allocation5 + $0x100] sm:$0xff]  ;;  %v183_v40 = vld [vmem:[#allocation5 + $0x108] sm:$0xff]  ;;  %v6539_v42 = vcombine.low %v198_v30, %v206_v31 }
  0x79   :  { %v190_v39 = vld [vmem:[#allocation5 + $0x140] sm:$0xff]  ;;  %v191_v41 = vld [vmem:[#allocation5 + $0x148] sm:$0xff]  ;;  %v6541_v43 = vcombine.low %v199_v32, %v207_v33 }
  0x7a   :  { %v6524_v44 = vcombine.high %v182_v38, %v190_v39  ;;  %v6526_v45 = vcombine.high %v183_v40, %v191_v41  ;;  %v166_v46 = vld [vmem:[#allocation5 + $0x80] sm:$0xff]  ;;  %v167_v48 = vld [vmem:[#allocation5 + $0x88] sm:$0xff]  ;;  %v6523_v50 = vcombine.low %v182_v38, %v190_v39  ;;  %v6525_v51 = vcombine.low %v183_v40, %v191_v41 }
  0x7b   :  { %1776 = vmatpush1.bf16.msra.mxu0 %v6571_v26  ;;  %1817 = vmatpush1.bf16.msra.mxu1 %v6573_v27  ;;  %v174_v47 = vld [vmem:[#allocation5 + $0xc0] sm:$0xff]  ;;  %v175_v49 = vld [vmem:[#allocation5 + $0xc8] sm:$0xff] }
  0x7c   :  { %1777 = vmatprep.subr.bf16.mxu0 %v6556_v28  ;;  %1818 = vmatprep.subr.bf16.mxu1 %v6558_v29  ;;  %v6508_v52 = vcombine.high %v166_v46, %v174_v47  ;;  %v6510_v54 = vcombine.high %v167_v48, %v175_v49  ;;  %v150_v55 = vld [vmem:[#allocation5] sm:$0xff]  ;;  %v151_v58 = vld [vmem:[#allocation5 + $0x8] sm:$0xff]  ;;  %v6507_v60 = vcombine.low %v166_v46, %v174_v47 }
  0x7d   :  { %v158_v56 = vld [vmem:[#allocation5 + $0x40] sm:$0xff]  ;;  %v159_v59 = vld [vmem:[#allocation5 + $0x48] sm:$0xff]  ;;  %v6509_v61 = vcombine.low %v167_v48, %v175_v49 }
  0x7e   :  { %v6492_v62 = vcombine.high %v150_v55, %v158_v56  ;;  %v6494_v63 = vcombine.high %v151_v58, %v159_v59  ;;  %v390_v0 = vld [vmem:[#allocation5 + $0x780] sm:$0xff]  ;;  %v391_v2 = vld [vmem:[#allocation5 + $0x788] sm:$0xff]  ;;  %v6491_v4 = vcombine.low %v150_v55, %v158_v56  ;;  %v6493_v5 = vcombine.low %v151_v58, %v159_v59 }
  0x7f   :  { %1778 = vmatpush1.bf16.msra.mxu0 %v6555_v34  ;;  %1819 = vmatpush1.bf16.msra.mxu1 %v6557_v35  ;;  %v398_v1 = vld [vmem:[#allocation5 + $0x7c0] sm:$0xff]  ;;  %v399_v3 = vld [vmem:[#allocation5 + $0x7c8] sm:$0xff] }
  0x80   :  { %1779 = vmatprep.subr.bf16.mxu0 %v6540_v36  ;;  %1820 = vmatprep.subr.bf16.mxu1 %v6542_v37  ;;  %v6732_v6 = vcombine.high %v390_v0, %v398_v1  ;;  %v6734_v7 = vcombine.high %v391_v2, %v399_v3  ;;  %v374_v8 = vld [vmem:[#allocation5 + $0x700] sm:$0xff]  ;;  %v375_v10 = vld [vmem:[#allocation5 + $0x708] sm:$0xff]  ;;  %v6731_v12 = vcombine.low %v390_v0, %v398_v1  ;;  %v264_v1 = vld [vmem:[#allocation5 + $0x390] sm:$0xff] }
  0x81   :  { %v382_v9 = vld [vmem:[#allocation5 + $0x740] sm:$0xff]  ;;  %v383_v11 = vld [vmem:[#allocation5 + $0x748] sm:$0xff]  ;;  %v6733_v13 = vcombine.low %v391_v2, %v399_v3  ;;  %v272_v2 = vld [vmem:[#allocation5 + $0x3d0] sm:$0xff] }
  0x82   :  { %v6716_v14 = vcombine.high %v374_v8, %v382_v9  ;;  %v6718_v15 = vcombine.high %v375_v10, %v383_v11  ;;  %v358_v16 = vld [vmem:[#allocation5 + $0x680] sm:$0xff]  ;;  %v359_v18 = vld [vmem:[#allocation5 + $0x688] sm:$0xff]  ;;  %v6715_v20 = vcombine.low %v374_v8, %v382_v9  ;;  %v6717_v21 = vcombine.low %v375_v10, %v383_v11  ;;  %v265_v3 = vld [vmem:[#allocation5 + $0x398] sm:$0xff] }
  0x83   :  { %1780 = vmatpush1.bf16.msra.mxu0 %v6539_v42  ;;  %1821 = vmatpush1.bf16.msra.mxu1 %v6541_v43  ;;  %v366_v17 = vld [vmem:[#allocation5 + $0x6c0] sm:$0xff]  ;;  %v367_v19 = vld [vmem:[#allocation5 + $0x6c8] sm:$0xff]  ;;  %v6608_v8 = vcombine.high %v264_v1, %v272_v2  ;;  %v248_v10 = vld [vmem:[#allocation5 + $0x310] sm:$0xff] }
  0x84   :  { %1781 = vmatprep.subr.bf16.mxu0 %v6524_v44  ;;  %1822 = vmatprep.subr.bf16.mxu1 %v6526_v45  ;;  %v6700_v22 = vcombine.high %v358_v16, %v366_v17  ;;  %v6702_v23 = vcombine.high %v359_v18, %v367_v19  ;;  %v342_v24 = vld [vmem:[#allocation5 + $0x600] sm:$0xff]  ;;  %v343_v26 = vld [vmem:[#allocation5 + $0x608] sm:$0xff]  ;;  %v6699_v28 = vcombine.low %v358_v16, %v366_v17  ;;  %v256_v11 = vld [vmem:[#allocation5 + $0x350] sm:$0xff] }
  0x85   :  { %v350_v25 = vld [vmem:[#allocation5 + $0x640] sm:$0xff]  ;;  %v351_v27 = vld [vmem:[#allocation5 + $0x648] sm:$0xff]  ;;  %v6701_v29 = vcombine.low %v359_v18, %v367_v19  ;;  %v6592_v17 = vcombine.high %v248_v10, %v256_v11  ;;  %v232_v18 = vld [vmem:[#allocation5 + $0x290] sm:$0xff] }
  0x86   :  { %v6684_v30 = vcombine.high %v342_v24, %v350_v25  ;;  %v6686_v31 = vcombine.high %v343_v26, %v351_v27  ;;  %v326_v32 = vld [vmem:[#allocation5 + $0x580] sm:$0xff]  ;;  %v327_v34 = vld [vmem:[#allocation5 + $0x588] sm:$0xff]  ;;  %v6683_v36 = vcombine.low %v342_v24, %v350_v25  ;;  %v6685_v37 = vcombine.low %v343_v26, %v351_v27  ;;  %v240_v19 = vld [vmem:[#allocation5 + $0x2d0] sm:$0xff] }
  0x87   :  { %1782 = vmatpush1.bf16.msra.mxu0 %v6523_v50  ;;  %1823 = vmatpush1.bf16.msra.mxu1 %v6525_v51  ;;  %v334_v33 = vld [vmem:[#allocation5 + $0x5c0] sm:$0xff]  ;;  %v335_v35 = vld [vmem:[#allocation5 + $0x5c8] sm:$0xff]  ;;  %v6576_v25 = vcombine.high %v232_v18, %v240_v19  ;;  %v216_v26 = vld [vmem:[#allocation5 + $0x210] sm:$0xff] }
  0x88   :  { %1783 = vmatprep.subr.bf16.mxu0 %v6508_v52  ;;  %1824 = vmatprep.subr.bf16.mxu1 %v6510_v54  ;;  %v6668_v38 = vcombine.high %v326_v32, %v334_v33  ;;  %v6670_v39 = vcombine.high %v327_v34, %v335_v35  ;;  %v310_v40 = vld [vmem:[#allocation5 + $0x500] sm:$0xff]  ;;  %v311_v42 = vld [vmem:[#allocation5 + $0x508] sm:$0xff]  ;;  %v6667_v44 = vcombine.low %v326_v32, %v334_v33  ;;  %v224_v27 = vld [vmem:[#allocation5 + $0x250] sm:$0xff] }
  0x89   :  { %v318_v41 = vld [vmem:[#allocation5 + $0x540] sm:$0xff]  ;;  %v319_v43 = vld [vmem:[#allocation5 + $0x548] sm:$0xff]  ;;  %v6669_v45 = vcombine.low %v327_v34, %v335_v35  ;;  %v6560_v33 = vcombine.high %v216_v26, %v224_v27  ;;  %v200_v34 = vld [vmem:[#allocation5 + $0x190] sm:$0xff] }
  0x8a   :  { %v6652_v46 = vcombine.high %v310_v40, %v318_v41  ;;  %v6654_v47 = vcombine.high %v311_v42, %v319_v43  ;;  %v294_v48 = vld [vmem:[#allocation5 + $0x480] sm:$0xff]  ;;  %v295_v50 = vld [vmem:[#allocation5 + $0x488] sm:$0xff]  ;;  %v6651_v52 = vcombine.low %v310_v40, %v318_v41  ;;  %v6653_v53 = vcombine.low %v311_v42, %v319_v43  ;;  %v208_v35 = vld [vmem:[#allocation5 + $0x1d0] sm:$0xff] }
  0x8b   :  { %1784 = vmatpush1.bf16.msra.mxu0 %v6507_v60  ;;  %1825 = vmatpush1.bf16.msra.mxu1 %v6509_v61  ;;  %v302_v49 = vld [vmem:[#allocation5 + $0x4c0] sm:$0xff]  ;;  %v303_v51 = vld [vmem:[#allocation5 + $0x4c8] sm:$0xff]  ;;  %v6544_v41 = vcombine.high %v200_v34, %v208_v35  ;;  %v184_v42 = vld [vmem:[#allocation5 + $0x110] sm:$0xff] }
  0x8c   :  { %1785 = vmatprep.subr.bf16.mxu0 %v6492_v62  ;;  %1826 = vmatprep.subr.bf16.mxu1 %v6494_v63  ;;  %v6636_v54 = vcombine.high %v294_v48, %v302_v49  ;;  %v6638_v55 = vcombine.high %v295_v50, %v303_v51  ;;  %v278_v56 = vld [vmem:[#allocation5 + $0x400] sm:$0xff]  ;;  %v279_v59 = vld [vmem:[#allocation5 + $0x408] sm:$0xff]  ;;  %v6635_v61 = vcombine.low %v294_v48, %v302_v49  ;;  %v192_v43 = vld [vmem:[#allocation5 + $0x150] sm:$0xff] }
  0x8d   :  { %v286_v58 = vld [vmem:[#allocation5 + $0x440] sm:$0xff]  ;;  %v287_v60 = vld [vmem:[#allocation5 + $0x448] sm:$0xff]  ;;  %v6637_v62 = vcombine.low %v295_v50, %v303_v51  ;;  %v6528_v49 = vcombine.high %v184_v42, %v192_v43  ;;  %v168_v50 = vld [vmem:[#allocation5 + $0x90] sm:$0xff] }
  0x8e   :  { %v6620_v63 = vcombine.high %v278_v56, %v286_v58  ;;  %v6622_v0 = vcombine.high %v279_v59, %v287_v60  ;;  %v176_v51 = vld [vmem:[#allocation5 + $0xd0] sm:$0xff] }
  0x8f   :  { %1786 = vmatpush1.bf16.msra.mxu0 %v6491_v4  ;;  %1827 = vmatpush1.bf16.msra.mxu1 %v6493_v5  ;;  %v273_v4 = vld [vmem:[#allocation5 + $0x3d8] sm:$0xff]  ;;  %v6619_v5 = vcombine.low %v278_v56, %v286_v58  ;;  %v6512_v58 = vcombine.high %v168_v50, %v176_v51 }
  0x90   :  { %1787 = vmatprep.subr.bf16.mxu0 %v6732_v6  ;;  %1828 = vmatprep.subr.bf16.mxu1 %v6734_v7  ;;  %v146_v6 = vld [vmem:[#allocation2] sm:$0xff]  ;;  %v6621_v7 = vcombine.low %v279_v59, %v287_v60  ;;  %v6610_v9 = vcombine.high %v265_v3, %v273_v4  ;;  %v6609_v16 = vcombine.low %v265_v3, %v273_v4 }
  0x91   :  { %v152_v59 = vld [vmem:[#allocation5 + $0x10] sm:$0xff] }
  0x92   :  { %v160_v60 = vld [vmem:[#allocation5 + $0x50] sm:$0xff] }
  0x93   :  { %1788 = vmatpush2.bf16.msra.mxu0 %v6731_v12  ;;  %1829 = vmatpush2.bf16.msra.mxu1 %v6733_v13  ;;  %v8519_v12 = vpack.c.bf16 %v146_v6, %v146_v6  ;;  %v249_v13 = vld [vmem:[#allocation5 + $0x318] sm:$0xff]  ;;  %v392_v3 = vld [vmem:[#allocation5 + $0x790] sm:$0xff] }
  0x94   :  { %1789 = vmatprep.subr.bf16.mxu0 %v6716_v14  ;;  %1830 = vmatprep.subr.bf16.mxu1 %v6718_v15  ;;  %v257_v14 = vld [vmem:[#allocation5 + $0x358] sm:$0xff]  ;;  %v6607_v15 = vcombine.low %v264_v1, %v272_v2  ;;  %v6496_v2 = vcombine.high %v152_v59, %v160_v60  ;;  %v400_v4 = vld [vmem:[#allocation5 + $0x7d0] sm:$0xff] }
  0x95   :  { %v6593_v24 = vcombine.low %v249_v13, %v257_v14 }
  0x97   :  { %1790 = vmatpush2.bf16.msra.mxu0 %v6715_v20  ;;  %1831 = vmatpush2.bf16.msra.mxu1 %v6717_v21  ;;  %v233_v20 = vld [vmem:[#allocation5 + $0x298] sm:$0xff]  ;;  %v6594_v21 = vcombine.high %v249_v13, %v257_v14  ;;  %v384_v13 = vld [vmem:[#allocation5 + $0x750] sm:$0xff] }
  0x98   :  { %1791 = vmatprep.subr.bf16.mxu0 %v6700_v22  ;;  %1832 = vmatprep.subr.bf16.mxu1 %v6702_v23  ;;  %v241_v22 = vld [vmem:[#allocation5 + $0x2d8] sm:$0xff]  ;;  %v6591_v23 = vcombine.low %v248_v10, %v256_v11  ;;  %v6736_v10 = vcombine.high %v392_v3, %v400_v4  ;;  %v376_v11 = vld [vmem:[#allocation5 + $0x710] sm:$0xff] }
  0x99   :  { %v6577_v32 = vcombine.low %v233_v20, %v241_v22  ;;  %v377_v14 = vld [vmem:[#allocation5 + $0x718] sm:$0xff] }
  0x9b   :  { %1792 = vmatpush2.bf16.msra.mxu0 %v6699_v28  ;;  %1833 = vmatpush2.bf16.msra.mxu1 %v6701_v29  ;;  %v217_v28 = vld [vmem:[#allocation5 + $0x218] sm:$0xff]  ;;  %v6578_v29 = vcombine.high %v233_v20, %v241_v22  ;;  %v360_v20 = vld [vmem:[#allocation5 + $0x690] sm:$0xff] }
  0x9c   :  { %1793 = vmatprep.subr.bf16.mxu0 %v6684_v30  ;;  %1834 = vmatprep.subr.bf16.mxu1 %v6686_v31  ;;  %v225_v30 = vld [vmem:[#allocation5 + $0x258] sm:$0xff]  ;;  %v6575_v31 = vcombine.low %v232_v18, %v240_v19  ;;  %v6720_v19 = vcombine.high %v376_v11, %v384_v13 }
  0x9d   :  { %v6561_v40 = vcombine.low %v217_v28, %v225_v30  ;;  %v361_v22 = vld [vmem:[#allocation5 + $0x698] sm:$0xff] }
  0x9f   :  { %1794 = vmatpush2.bf16.msra.mxu0 %v6683_v36  ;;  %1835 = vmatpush2.bf16.msra.mxu1 %v6685_v37  ;;  %v201_v36 = vld [vmem:[#allocation5 + $0x198] sm:$0xff]  ;;  %v6562_v37 = vcombine.high %v217_v28, %v225_v30  ;;  %v344_v28 = vld [vmem:[#allocation5 + $0x610] sm:$0xff] }
  0xa0   :  { %1795 = vmatprep.subr.bf16.mxu0 %v6668_v38  ;;  %1836 = vmatprep.subr.bf16.mxu1 %v6670_v39  ;;  %v209_v38 = vld [vmem:[#allocation5 + $0x1d8] sm:$0xff]  ;;  %v6559_v39 = vcombine.low %v216_v26, %v224_v27 }
  0xa1   :  { %v6545_v48 = vcombine.low %v201_v36, %v209_v38  ;;  %v345_v30 = vld [vmem:[#allocation5 + $0x618] sm:$0xff] }
  0xa3   :  { %1796 = vmatpush2.bf16.msra.mxu0 %v6667_v44  ;;  %1837 = vmatpush2.bf16.msra.mxu1 %v6669_v45  ;;  %v185_v44 = vld [vmem:[#allocation5 + $0x118] sm:$0xff]  ;;  %v6546_v45 = vcombine.high %v201_v36, %v209_v38  ;;  %v328_v36 = vld [vmem:[#allocation5 + $0x590] sm:$0xff] }
  0xa4   :  { %1797 = vmatprep.subr.bf16.mxu0 %v6652_v46  ;;  %1838 = vmatprep.subr.bf16.mxu1 %v6654_v47  ;;  %v193_v46 = vld [vmem:[#allocation5 + $0x158] sm:$0xff]  ;;  %v6543_v47 = vcombine.low %v200_v34, %v208_v35 }
  0xa5   :  { %v6529_v56 = vcombine.low %v185_v44, %v193_v46  ;;  %v329_v38 = vld [vmem:[#allocation5 + $0x598] sm:$0xff] }
  0xa7   :  { %1798 = vmatpush2.bf16.msra.mxu0 %v6651_v52  ;;  %1839 = vmatpush2.bf16.msra.mxu1 %v6653_v53  ;;  %v169_v52 = vld [vmem:[#allocation5 + $0x98] sm:$0xff]  ;;  %v6530_v53 = vcombine.high %v185_v44, %v193_v46  ;;  %v312_v44 = vld [vmem:[#allocation5 + $0x510] sm:$0xff] }
  0xa8   :  { %1799 = vmatprep.subr.bf16.mxu0 %v6636_v54  ;;  %1840 = vmatprep.subr.bf16.mxu1 %v6638_v55  ;;  %v177_v54 = vld [vmem:[#allocation5 + $0xd8] sm:$0xff]  ;;  %v6527_v55 = vcombine.low %v184_v42, %v192_v43 }
  0xa9   :  { %v6513_v1 = vcombine.low %v169_v52, %v177_v54  ;;  %v313_v46 = vld [vmem:[#allocation5 + $0x518] sm:$0xff] }
  0xab   :  { %1800 = vmatpush2.bf16.msra.mxu0 %v6635_v61  ;;  %1841 = vmatpush2.bf16.msra.mxu1 %v6637_v62  ;;  %v153_v61 = vld [vmem:[#allocation5 + $0x18] sm:$0xff]  ;;  %v6514_v62 = vcombine.high %v169_v52, %v177_v54  ;;  %v296_v52 = vld [vmem:[#allocation5 + $0x490] sm:$0xff] }
  0xac   :  { %1801 = vmatprep.subr.bf16.mxu0 %v6620_v63  ;;  %1842 = vmatprep.subr.bf16.mxu1 %v6622_v0  ;;  %v161_v63 = vld [vmem:[#allocation5 + $0x58] sm:$0xff]  ;;  %v6511_v0 = vcombine.low %v168_v50, %v176_v51 }
  0xad   :  { %v6498_v6 = vcombine.high %v153_v61, %v161_v63  ;;  %v297_v54 = vld [vmem:[#allocation5 + $0x498] sm:$0xff] }
  0xaf   :  { %1802 = vmatpush2.bf16.msra.mxu0 %v6619_v5  ;;  %1843 = vmatpush2.bf16.msra.mxu1 %v6621_v7  ;;  %v393_v5 = vld [vmem:[#allocation5 + $0x798] sm:$0xff] }
  0xb0   :  { %1853 = vmatprep.subr.bf16.mxu0 %v6608_v8  ;;  %1894 = vmatprep.subr.bf16.mxu1 %v6610_v9  ;;  %v401_v7 = vld [vmem:[#allocation5 + $0x7d8] sm:$0xff]  ;;  %v6495_v8 = vcombine.low %v152_v59, %v160_v60  ;;  %v6497_v9 = vcombine.low %v153_v61, %v161_v63  ;;  %v280_v61 = vld [vmem:[#allocation5 + $0x410] sm:$0xff] }
  0xb1   :  { %v6737_v18 = vcombine.low %v393_v5, %v401_v7  ;;  %v281_v63 = vld [vmem:[#allocation5 + $0x418] sm:$0xff] }
  0xb2   :  { %1804 = vmatmul.mubr.bf16.vlgmr.msra.gmra.mxu0 %v8519_v12  ;;  %1845 = vmatmul.mubr.bf16.vlgmr.msra.gmra.mxu1 %v8519_v12 }
  0xb3   :  { %1854 = vmatpush1.bf16.msra.mxu0 %v6607_v15  ;;  %1895 = vmatpush1.bf16.msra.mxu1 %v6609_v16  ;;  %v6738_v15 = vcombine.high %v393_v5, %v401_v7  ;;  %v385_v16 = vld [vmem:[#allocation5 + $0x758] sm:$0xff]  ;;  %v266_v5 = vld [vmem:[#allocation5 + $0x3a0] sm:$0xff]  ;;  %v267_v7 = vld [vmem:[#allocation5 + $0x3a8] sm:$0xff] }
  0xb4   :  { %1855 = vmatprep.subr.bf16.mxu0 %v6592_v17  ;;  %1896 = vmatprep.subr.bf16.mxu1 %v6594_v21  ;;  %v6735_v17 = vcombine.low %v392_v3, %v400_v4  ;;  %v368_v21 = vld [vmem:[#allocation5 + $0x6d0] sm:$0xff]  ;;  %v6721_v26 = vcombine.low %v377_v14, %v385_v16 }
  0xb5   :  { %1885 = vmatprep.mubr.bf16.mxu0 %v8515_v57  ;;  %1926 = vmatprep.mubr.bf16.mxu1 %v8515_v57  ;;  %v6704_v27 = vcombine.high %v360_v20, %v368_v21 }
  0xb7   :  { %1856 = vmatpush1.bf16.msra.mxu0 %v6591_v23  ;;  %1897 = vmatpush1.bf16.msra.mxu1 %v6593_v24  ;;  %v6722_v23 = vcombine.high %v377_v14, %v385_v16  ;;  %v369_v24 = vld [vmem:[#allocation5 + $0x6d8] sm:$0xff]  ;;  %v250_v14 = vld [vmem:[#allocation5 + $0x320] sm:$0xff]  ;;  %v251_v16 = vld [vmem:[#allocation5 + $0x328] sm:$0xff] }
  0xb8   :  { %1857 = vmatprep.subr.bf16.mxu0 %v6576_v25  ;;  %1898 = vmatprep.subr.bf16.mxu1 %v6578_v29  ;;  %v6719_v25 = vcombine.low %v376_v11, %v384_v13  ;;  %v352_v29 = vld [vmem:[#allocation5 + $0x650] sm:$0xff]  ;;  %v6705_v34 = vcombine.low %v361_v22, %v369_v24 }
  0xb9   :  { %v6688_v35 = vcombine.high %v344_v28, %v352_v29 }
  0xbb   :  { %1858 = vmatpush1.bf16.msra.mxu0 %v6575_v31  ;;  %1899 = vmatpush1.bf16.msra.mxu1 %v6577_v32  ;;  %v6706_v31 = vcombine.high %v361_v22, %v369_v24  ;;  %v353_v32 = vld [vmem:[#allocation5 + $0x658] sm:$0xff]  ;;  %v242_v24 = vld [vmem:[#allocation5 + $0x2e0] sm:$0xff] }
  0xbc   :  { %1859 = vmatprep.subr.bf16.mxu0 %v6560_v33  ;;  %1900 = vmatprep.subr.bf16.mxu1 %v6562_v37  ;;  %v6703_v33 = vcombine.low %v360_v20, %v368_v21  ;;  %v336_v37 = vld [vmem:[#allocation5 + $0x5d0] sm:$0xff]  ;;  %v6689_v42 = vcombine.low %v345_v30, %v353_v32 }
  0xbd   :  { %v6672_v43 = vcombine.high %v328_v36, %v336_v37 }
  0xbf   :  { %1860 = vmatpush1.bf16.msra.mxu0 %v6559_v39  ;;  %1901 = vmatpush1.bf16.msra.mxu1 %v6561_v40  ;;  %v6690_v39 = vcombine.high %v345_v30, %v353_v32  ;;  %v337_v40 = vld [vmem:[#allocation5 + $0x5d8] sm:$0xff]  ;;  %v226_v32 = vld [vmem:[#allocation5 + $0x260] sm:$0xff] }
  0xc0   :  { %1861 = vmatprep.subr.bf16.mxu0 %v6544_v41  ;;  %1902 = vmatprep.subr.bf16.mxu1 %v6546_v45  ;;  %v6687_v41 = vcombine.low %v344_v28, %v352_v29  ;;  %v320_v45 = vld [vmem:[#allocation5 + $0x550] sm:$0xff]  ;;  %v6673_v50 = vcombine.low %v329_v38, %v337_v40 }
  0xc1   :  { %v6656_v51 = vcombine.high %v312_v44, %v320_v45 }
  0xc3   :  { %1862 = vmatpush1.bf16.msra.mxu0 %v6543_v47  ;;  %1903 = vmatpush1.bf16.msra.mxu1 %v6545_v48  ;;  %v6674_v47 = vcombine.high %v329_v38, %v337_v40  ;;  %v321_v48 = vld [vmem:[#allocation5 + $0x558] sm:$0xff]  ;;  %v210_v40 = vld [vmem:[#allocation5 + $0x1e0] sm:$0xff] }
  0xc4   :  { %1863 = vmatprep.subr.bf16.mxu0 %v6528_v49  ;;  %1904 = vmatprep.subr.bf16.mxu1 %v6530_v53  ;;  %v6671_v49 = vcombine.low %v328_v36, %v336_v37  ;;  %v304_v53 = vld [vmem:[#allocation5 + $0x4d0] sm:$0xff]  ;;  %v6657_v59 = vcombine.low %v313_v46, %v321_v48 }
  0xc5   :  { %v6640_v60 = vcombine.high %v296_v52, %v304_v53 }
  0xc7   :  { %1864 = vmatpush1.bf16.msra.mxu0 %v6527_v55  ;;  %1905 = vmatpush1.bf16.msra.mxu1 %v6529_v56  ;;  %v6658_v55 = vcombine.high %v313_v46, %v321_v48  ;;  %v305_v56 = vld [vmem:[#allocation5 + $0x4d8] sm:$0xff]  ;;  %v194_v48 = vld [vmem:[#allocation5 + $0x160] sm:$0xff] }
  0xc8   :  { %1865 = vmatprep.subr.bf16.mxu0 %v6512_v58  ;;  %1906 = vmatprep.subr.bf16.mxu1 %v6514_v62  ;;  %v6655_v58 = vcombine.low %v312_v44, %v320_v45  ;;  %v288_v62 = vld [vmem:[#allocation5 + $0x450] sm:$0xff]  ;;  %v6641_v3 = vcombine.low %v297_v54, %v305_v56 }
  0xc9   :  { %v6624_v4 = vcombine.high %v280_v61, %v288_v62 }
  0xcb   :  { %1866 = vmatpush1.bf16.msra.mxu0 %v6511_v0  ;;  %1907 = vmatpush1.bf16.msra.mxu1 %v6513_v1  ;;  %v6642_v0 = vcombine.high %v297_v54, %v305_v56  ;;  %v289_v1 = vld [vmem:[#allocation5 + $0x458] sm:$0xff]  ;;  %v170_v54 = vld [vmem:[#allocation5 + $0xa0] sm:$0xff]  ;;  %v171_v56 = vld [vmem:[#allocation5 + $0xa8] sm:$0xff] }
  0xcc   :  { %1867 = vmatprep.subr.bf16.mxu0 %v6496_v2  ;;  %1908 = vmatprep.subr.bf16.mxu1 %v6498_v6  ;;  %v6639_v2 = vcombine.low %v296_v52, %v304_v53  ;;  %v274_v6 = vld [vmem:[#allocation5 + $0x3e0] sm:$0xff]  ;;  %v6625_v11 = vcombine.low %v281_v63, %v289_v1 }
  0xcd   :  { %v6612_v13 = vcombine.high %v266_v5, %v274_v6 }
  0xcf   :  { %1868 = vmatpush1.bf16.msra.mxu0 %v6495_v8  ;;  %1909 = vmatpush1.bf16.msra.mxu1 %v6497_v9  ;;  %v6626_v8 = vcombine.high %v281_v63, %v289_v1  ;;  %v275_v9 = vld [vmem:[#allocation5 + $0x3e8] sm:$0xff]  ;;  %v154_v63 = vld [vmem:[#allocation5 + $0x20] sm:$0xff] }
  0xd0   :  { %1869 = vmatprep.subr.bf16.mxu0 %v6736_v10  ;;  %1910 = vmatprep.subr.bf16.mxu1 %v6738_v15  ;;  %v6623_v10 = vcombine.low %v280_v61, %v288_v62  ;;  %v258_v15 = vld [vmem:[#allocation5 + $0x360] sm:$0xff]  ;;  %v6613_v20 = vcombine.low %v267_v7, %v275_v9  ;;  %v155_v1 = vld [vmem:[#allocation5 + $0x28] sm:$0xff] }
  0xd1   :  { %v6596_v21 = vcombine.high %v250_v14, %v258_v15 }
  0xd3   :  { %1870 = vmatpush2.bf16.msra.mxu0 %v6735_v17  ;;  %1911 = vmatpush2.bf16.msra.mxu1 %v6737_v18  ;;  %v6614_v17 = vcombine.high %v267_v7, %v275_v9  ;;  %v259_v18 = vld [vmem:[#allocation5 + $0x368] sm:$0xff]  ;;  %v394_v7 = vld [vmem:[#allocation5 + $0x7a0] sm:$0xff] }
  0xd4   :  { %1871 = vmatprep.subr.bf16.mxu0 %v6720_v19  ;;  %1912 = vmatprep.subr.bf16.mxu1 %v6722_v23  ;;  %v6611_v19 = vcombine.low %v266_v5, %v274_v6  ;;  %v6598_v22 = vcombine.high %v251_v16, %v259_v18  ;;  %v234_v23 = vld [vmem:[#allocation5 + $0x2a0] sm:$0xff]  ;;  %v6597_v28 = vcombine.low %v251_v16, %v259_v18  ;;  %v395_v9 = vld [vmem:[#allocation5 + $0x7a8] sm:$0xff] }
  0xd5   :  { %v6580_v29 = vcombine.high %v234_v23, %v242_v24  ;;  %v378_v16 = vld [vmem:[#allocation5 + $0x720] sm:$0xff]  ;;  %v379_v18 = vld [vmem:[#allocation5 + $0x728] sm:$0xff] }
  0xd7   :  { %1872 = vmatpush2.bf16.msra.mxu0 %v6719_v25  ;;  %1913 = vmatpush2.bf16.msra.mxu1 %v6721_v26  ;;  %v235_v25 = vld [vmem:[#allocation5 + $0x2a8] sm:$0xff] }
  0xd8   :  { %1873 = vmatprep.subr.bf16.mxu0 %v6704_v27  ;;  %1914 = vmatprep.subr.bf16.mxu1 %v6706_v31  ;;  %v243_v26 = vld [vmem:[#allocation5 + $0x2e8] sm:$0xff]  ;;  %v6595_v27 = vcombine.low %v250_v14, %v258_v15  ;;  %v218_v31 = vld [vmem:[#allocation5 + $0x220] sm:$0xff] }
  0xd9   :  { %v6582_v30 = vcombine.high %v235_v25, %v243_v26  ;;  %v6581_v36 = vcombine.low %v235_v25, %v243_v26  ;;  %v6564_v37 = vcombine.high %v218_v31, %v226_v32  ;;  %v370_v25 = vld [vmem:[#allocation5 + $0x6e0] sm:$0xff]  ;;  %v363_v26 = vld [vmem:[#allocation5 + $0x6a8] sm:$0xff] }
  0xdb   :  { %1874 = vmatpush2.bf16.msra.mxu0 %v6703_v33  ;;  %1915 = vmatpush2.bf16.msra.mxu1 %v6705_v34  ;;  %v219_v33 = vld [vmem:[#allocation5 + $0x228] sm:$0xff] }
  0xdc   :  { %1875 = vmatprep.subr.bf16.mxu0 %v6688_v35  ;;  %1916 = vmatprep.subr.bf16.mxu1 %v6690_v39  ;;  %v227_v34 = vld [vmem:[#allocation5 + $0x268] sm:$0xff]  ;;  %v6579_v35 = vcombine.low %v234_v23, %v242_v24  ;;  %v202_v39 = vld [vmem:[#allocation5 + $0x1a0] sm:$0xff] }
  0xdd   :  { %v6566_v38 = vcombine.high %v219_v33, %v227_v34  ;;  %v6565_v44 = vcombine.low %v219_v33, %v227_v34  ;;  %v6548_v45 = vcombine.high %v202_v39, %v210_v40  ;;  %v362_v24 = vld [vmem:[#allocation5 + $0x6a0] sm:$0xff]  ;;  %v347_v34 = vld [vmem:[#allocation5 + $0x628] sm:$0xff] }
  0xde   :  { %v354_v33 = vld [vmem:[#allocation5 + $0x660] sm:$0xff] }
  0xdf   :  { %1876 = vmatpush2.bf16.msra.mxu0 %v6687_v41  ;;  %1917 = vmatpush2.bf16.msra.mxu1 %v6689_v42  ;;  %v203_v41 = vld [vmem:[#allocation5 + $0x1a8] sm:$0xff] }
  0xe0   :  { %1877 = vmatprep.subr.bf16.mxu0 %v6672_v43  ;;  %1918 = vmatprep.subr.bf16.mxu1 %v6674_v47  ;;  %v211_v42 = vld [vmem:[#allocation5 + $0x1e8] sm:$0xff]  ;;  %v6563_v43 = vcombine.low %v218_v31, %v226_v32  ;;  %v186_v47 = vld [vmem:[#allocation5 + $0x120] sm:$0xff]  ;;  %v6708_v31 = vcombine.high %v362_v24, %v370_v25 }
  0xe1   :  { %v6550_v46 = vcombine.high %v203_v41, %v211_v42  ;;  %v6549_v52 = vcombine.low %v203_v41, %v211_v42  ;;  %v6532_v53 = vcombine.high %v186_v47, %v194_v48  ;;  %v346_v32 = vld [vmem:[#allocation5 + $0x620] sm:$0xff]  ;;  %v331_v42 = vld [vmem:[#allocation5 + $0x5a8] sm:$0xff] }
  0xe2   :  { %v338_v41 = vld [vmem:[#allocation5 + $0x5e0] sm:$0xff] }
  0xe3   :  { %1878 = vmatpush2.bf16.msra.mxu0 %v6671_v49  ;;  %1919 = vmatpush2.bf16.msra.mxu1 %v6673_v50  ;;  %v187_v49 = vld [vmem:[#allocation5 + $0x128] sm:$0xff] }
  0xe4   :  { %1879 = vmatprep.subr.bf16.mxu0 %v6656_v51  ;;  %1920 = vmatprep.subr.bf16.mxu1 %v6658_v55  ;;  %v195_v50 = vld [vmem:[#allocation5 + $0x168] sm:$0xff]  ;;  %v6547_v51 = vcombine.low %v202_v39, %v210_v40  ;;  %v178_v55 = vld [vmem:[#allocation5 + $0xe0] sm:$0xff]  ;;  %v6692_v39 = vcombine.high %v346_v32, %v354_v33 }
  0xe5   :  { %v6533_v61 = vcombine.low %v187_v49, %v195_v50  ;;  %v6516_v62 = vcombine.high %v170_v54, %v178_v55  ;;  %v330_v40 = vld [vmem:[#allocation5 + $0x5a0] sm:$0xff] }
  0xe7   :  { %1880 = vmatpush2.bf16.msra.mxu0 %v6655_v58  ;;  %1921 = vmatpush2.bf16.msra.mxu1 %v6657_v59  ;;  %v6534_v58 = vcombine.high %v187_v49, %v195_v50  ;;  %v179_v59 = vld [vmem:[#allocation5 + $0xe8] sm:$0xff]  ;;  %v322_v49 = vld [vmem:[#allocation5 + $0x560] sm:$0xff] }
  0xe8   :  { %1881 = vmatprep.subr.bf16.mxu0 %v6640_v60  ;;  %1922 = vmatprep.subr.bf16.mxu1 %v6642_v0  ;;  %v6531_v60 = vcombine.low %v186_v47, %v194_v48  ;;  %v162_v0 = vld [vmem:[#allocation5 + $0x60] sm:$0xff]  ;;  %v6517_v5 = vcombine.low %v171_v56, %v179_v59  ;;  %v6676_v47 = vcombine.high %v330_v40, %v338_v41  ;;  %v315_v50 = vld [vmem:[#allocation5 + $0x528] sm:$0xff] }
  0xe9   :  { %v6500_v6 = vcombine.high %v154_v63, %v162_v0  ;;  %v314_v48 = vld [vmem:[#allocation5 + $0x520] sm:$0xff] }
  0xeb   :  { %1882 = vmatpush2.bf16.msra.mxu0 %v6639_v2  ;;  %1923 = vmatpush2.bf16.msra.mxu1 %v6641_v3  ;;  %v6518_v2 = vcombine.high %v171_v56, %v179_v59  ;;  %v163_v3 = vld [vmem:[#allocation5 + $0x68] sm:$0xff]  ;;  %v298_v56 = vld [vmem:[#allocation5 + $0x4a0] sm:$0xff] }
  0xec   :  { %1883 = vmatprep.subr.bf16.mxu0 %v6624_v4  ;;  %1924 = vmatprep.subr.bf16.mxu1 %v6626_v8  ;;  %v6515_v4 = vcombine.low %v170_v54, %v178_v55  ;;  %v402_v8 = vld [vmem:[#allocation5 + $0x7e0] sm:$0xff]  ;;  %v6501_v14 = vcombine.low %v155_v1, %v163_v3  ;;  %v6660_v55 = vcombine.high %v314_v48, %v322_v49  ;;  %v299_v59 = vld [vmem:[#allocation5 + $0x4a8] sm:$0xff] }
  0xed   :  { %v6740_v15 = vcombine.high %v394_v7, %v402_v8 }
  0xef   :  { %1884 = vmatpush2.bf16.msra.mxu0 %v6623_v10  ;;  %1925 = vmatpush2.bf16.msra.mxu1 %v6625_v11  ;;  %v6502_v10 = vcombine.high %v155_v1, %v163_v3  ;;  %v403_v11 = vld [vmem:[#allocation5 + $0x7e8] sm:$0xff]  ;;  %v282_v1 = vld [vmem:[#allocation5 + $0x420] sm:$0xff] }
  0xf0   :  { %1935 = vmatprep.subr.bf16.mxu0 %v6612_v13  ;;  %1976 = vmatprep.subr.bf16.mxu1 %v6614_v17  ;;  %v6499_v13 = vcombine.low %v154_v63, %v162_v0  ;;  %v386_v17 = vld [vmem:[#allocation5 + $0x760] sm:$0xff]  ;;  %v283_v3 = vld [vmem:[#allocation5 + $0x428] sm:$0xff] }
  0xf1   :  { %v6724_v23 = vcombine.high %v378_v16, %v386_v17 }
  0xf2   :  { %1886 = vmatmul.mubr.bf16.vlgmr.msra.gmra.mxu0 %v8519_v12  ;;  %1927 = vmatmul.mubr.bf16.vlgmr.msra.gmra.mxu1 %v8519_v12 }
  0xf3   :  { %1936 = vmatpush1.bf16.msra.mxu0 %v6611_v19  ;;  %1977 = vmatpush1.bf16.msra.mxu1 %v6613_v20  ;;  %v6742_v19 = vcombine.high %v395_v9, %v403_v11  ;;  %v387_v20 = vld [vmem:[#allocation5 + $0x768] sm:$0xff] }
  0xf4   :  { %1937 = vmatprep.subr.bf16.mxu0 %v6596_v21  ;;  %1978 = vmatprep.subr.bf16.mxu1 %v6598_v22  ;;  %v6739_v21 = vcombine.low %v394_v7, %v402_v8  ;;  %v6741_v22 = vcombine.low %v395_v9, %v403_v11  ;;  %v268_v9 = vld [vmem:[#allocation5 + $0x3b0] sm:$0xff]  ;;  %v269_v11 = vld [vmem:[#allocation5 + $0x3b8] sm:$0xff] }
  0xf5   :  { %1967 = vmatprep.mubr.bf16.mxu0 %v8515_v57  ;;  %2008 = vmatprep.mubr.bf16.mxu1 %v8515_v57 }
  0xf7   :  { %1938 = vmatpush1.bf16.msra.mxu0 %v6595_v27  ;;  %1979 = vmatpush1.bf16.msra.mxu1 %v6597_v28  ;;  %v6726_v27 = vcombine.high %v379_v18, %v387_v20  ;;  %v371_v28 = vld [vmem:[#allocation5 + $0x6e8] sm:$0xff] }
  0xf8   :  { %1939 = vmatprep.subr.bf16.mxu0 %v6580_v29  ;;  %1980 = vmatprep.subr.bf16.mxu1 %v6582_v30  ;;  %v6723_v29 = vcombine.low %v378_v16, %v386_v17  ;;  %v6725_v30 = vcombine.low %v379_v18, %v387_v20  ;;  %v252_v18 = vld [vmem:[#allocation5 + $0x330] sm:$0xff]  ;;  %v253_v20 = vld [vmem:[#allocation5 + $0x338] sm:$0xff] }
  0xfb   :  { %1940 = vmatpush1.bf16.msra.mxu0 %v6579_v35  ;;  %1981 = vmatpush1.bf16.msra.mxu1 %v6581_v36  ;;  %v6710_v35 = vcombine.high %v363_v26, %v371_v28  ;;  %v355_v36 = vld [vmem:[#allocation5 + $0x668] sm:$0xff] }
  0xfc   :  { %1941 = vmatprep.subr.bf16.mxu0 %v6564_v37  ;;  %1982 = vmatprep.subr.bf16.mxu1 %v6566_v38  ;;  %v6707_v37 = vcombine.low %v362_v24, %v370_v25  ;;  %v6709_v38 = vcombine.low %v363_v26, %v371_v28  ;;  %v244_v28 = vld [vmem:[#allocation5 + $0x2f0] sm:$0xff] }
  0xff   :  { %1942 = vmatpush1.bf16.msra.mxu0 %v6563_v43  ;;  %1983 = vmatpush1.bf16.msra.mxu1 %v6565_v44  ;;  %v6694_v43 = vcombine.high %v347_v34, %v355_v36  ;;  %v339_v44 = vld [vmem:[#allocation5 + $0x5e8] sm:$0xff] }
 0x100   :  { %1943 = vmatprep.subr.bf16.mxu0 %v6548_v45  ;;  %1984 = vmatprep.subr.bf16.mxu1 %v6550_v46  ;;  %v6691_v45 = vcombine.low %v346_v32, %v354_v33  ;;  %v6693_v46 = vcombine.low %v347_v34, %v355_v36  ;;  %v6677_v54 = vcombine.low %v331_v42, %v339_v44  ;;  %v228_v36 = vld [vmem:[#allocation5 + $0x270] sm:$0xff] }
 0x103   :  { %1944 = vmatpush1.bf16.msra.mxu0 %v6547_v51  ;;  %1985 = vmatpush1.bf16.msra.mxu1 %v6549_v52  ;;  %v6678_v51 = vcombine.high %v331_v42, %v339_v44  ;;  %v323_v52 = vld [vmem:[#allocation5 + $0x568] sm:$0xff]  ;;  %v212_v44 = vld [vmem:[#allocation5 + $0x1f0] sm:$0xff] }
 0x104   :  { %1945 = vmatprep.subr.bf16.mxu0 %v6532_v53  ;;  %1986 = vmatprep.subr.bf16.mxu1 %v6534_v58  ;;  %v6675_v53 = vcombine.low %v330_v40, %v338_v41  ;;  %v306_v58 = vld [vmem:[#allocation5 + $0x4e0] sm:$0xff]  ;;  %v6661_v63 = vcombine.low %v315_v50, %v323_v52 }
 0x105   :  { %v6644_v0 = vcombine.high %v298_v56, %v306_v58 }
 0x107   :  { %1946 = vmatpush1.bf16.msra.mxu0 %v6531_v60  ;;  %1987 = vmatpush1.bf16.msra.mxu1 %v6533_v61  ;;  %v6662_v60 = vcombine.high %v315_v50, %v323_v52  ;;  %v307_v61 = vld [vmem:[#allocation5 + $0x4e8] sm:$0xff]  ;;  %v188_v50 = vld [vmem:[#allocation5 + $0x130] sm:$0xff]  ;;  %v189_v52 = vld [vmem:[#allocation5 + $0x138] sm:$0xff] }
 0x108   :  { %1947 = vmatprep.subr.bf16.mxu0 %v6516_v62  ;;  %1988 = vmatprep.subr.bf16.mxu1 %v6518_v2  ;;  %v6659_v62 = vcombine.low %v314_v48, %v322_v49  ;;  %v290_v2 = vld [vmem:[#allocation5 + $0x460] sm:$0xff]  ;;  %v6645_v7 = vcombine.low %v299_v59, %v307_v61 }
 0x109   :  { %v6628_v8 = vcombine.high %v282_v1, %v290_v2 }
 0x10b   :  { %1948 = vmatpush1.bf16.msra.mxu0 %v6515_v4  ;;  %1989 = vmatpush1.bf16.msra.mxu1 %v6517_v5  ;;  %v6646_v4 = vcombine.high %v299_v59, %v307_v61  ;;  %v291_v5 = vld [vmem:[#allocation5 + $0x468] sm:$0xff]  ;;  %v180_v59 = vld [vmem:[#allocation5 + $0xf0] sm:$0xff] }
 0x10c   :  { %1949 = vmatprep.subr.bf16.mxu0 %v6500_v6  ;;  %1990 = vmatprep.subr.bf16.mxu1 %v6502_v10  ;;  %v6643_v6 = vcombine.low %v298_v56, %v306_v58  ;;  %v276_v10 = vld [vmem:[#allocation5 + $0x3f0] sm:$0xff]  ;;  %v6629_v16 = vcombine.low %v283_v3, %v291_v5 }
 0x10d   :  { %v6616_v17 = vcombine.high %v268_v9, %v276_v10  ;;  %v172_v58 = vld [vmem:[#allocation5 + $0xb0] sm:$0xff] }
 0x10f   :  { %1950 = vmatpush1.bf16.msra.mxu0 %v6499_v13  ;;  %1991 = vmatpush1.bf16.msra.mxu1 %v6501_v14  ;;  %v6630_v13 = vcombine.high %v283_v3, %v291_v5  ;;  %v277_v14 = vld [vmem:[#allocation5 + $0x3f8] sm:$0xff]  ;;  %v164_v3 = vld [vmem:[#allocation5 + $0x70] sm:$0xff] }
 0x110   :  { %1951 = vmatprep.subr.bf16.mxu0 %v6740_v15  ;;  %1992 = vmatprep.subr.bf16.mxu1 %v6742_v19  ;;  %v6627_v15 = vcombine.low %v282_v1, %v290_v2  ;;  %v260_v19 = vld [vmem:[#allocation5 + $0x370] sm:$0xff]  ;;  %v6617_v24 = vcombine.low %v269_v11, %v277_v14  ;;  %v6520_v1 = vcombine.high %v172_v58, %v180_v59 }
 0x111   :  { %v6600_v25 = vcombine.high %v252_v18, %v260_v19  ;;  %v156_v2 = vld [vmem:[#allocation5 + $0x30] sm:$0xff] }
 0x113   :  { %1952 = vmatpush2.bf16.msra.mxu0 %v6739_v21  ;;  %1993 = vmatpush2.bf16.msra.mxu1 %v6741_v22  ;;  %v6618_v21 = vcombine.high %v269_v11, %v277_v14  ;;  %v261_v22 = vld [vmem:[#allocation5 + $0x378] sm:$0xff]  ;;  %v404_v11 = vld [vmem:[#allocation5 + $0x7f0] sm:$0xff] }
 0x114   :  { %1953 = vmatprep.subr.bf16.mxu0 %v6724_v23  ;;  %1994 = vmatprep.subr.bf16.mxu1 %v6726_v27  ;;  %v6615_v23 = vcombine.low %v268_v9, %v276_v10  ;;  %v6602_v26 = vcombine.high %v253_v20, %v261_v22  ;;  %v236_v27 = vld [vmem:[#allocation5 + $0x2b0] sm:$0xff]  ;;  %v6601_v32 = vcombine.low %v253_v20, %v261_v22 }
 0x115   :  { %v6584_v33 = vcombine.high %v236_v27, %v244_v28  ;;  %v6504_v9 = vcombine.high %v156_v2, %v164_v3  ;;  %v396_v10 = vld [vmem:[#allocation5 + $0x7b0] sm:$0xff] }
 0x116   :  { %v388_v20 = vld [vmem:[#allocation5 + $0x770] sm:$0xff] }
 0x117   :  { %1954 = vmatpush2.bf16.msra.mxu0 %v6723_v29  ;;  %1995 = vmatpush2.bf16.msra.mxu1 %v6725_v30  ;;  %v237_v29 = vld [vmem:[#allocation5 + $0x2b8] sm:$0xff] }
 0x118   :  { %1955 = vmatprep.subr.bf16.mxu0 %v6708_v31  ;;  %1996 = vmatprep.subr.bf16.mxu1 %v6710_v35  ;;  %v245_v30 = vld [vmem:[#allocation5 + $0x2f8] sm:$0xff]  ;;  %v6599_v31 = vcombine.low %v252_v18, %v260_v19  ;;  %v220_v35 = vld [vmem:[#allocation5 + $0x230] sm:$0xff]  ;;  %v6744_v18 = vcombine.high %v396_v10, %v404_v11 }
 0x119   :  { %v6586_v34 = vcombine.high %v237_v29, %v245_v30  ;;  %v6585_v40 = vcombine.low %v237_v29, %v245_v30  ;;  %v6568_v41 = vcombine.high %v220_v35, %v228_v36  ;;  %v380_v19 = vld [vmem:[#allocation5 + $0x730] sm:$0xff]  ;;  %v365_v29 = vld [vmem:[#allocation5 + $0x6b8] sm:$0xff] }
 0x11b   :  { %1956 = vmatpush2.bf16.msra.mxu0 %v6707_v37  ;;  %1997 = vmatpush2.bf16.msra.mxu1 %v6709_v38  ;;  %v221_v37 = vld [vmem:[#allocation5 + $0x238] sm:$0xff] }
 0x11c   :  { %1957 = vmatprep.subr.bf16.mxu0 %v6692_v39  ;;  %1998 = vmatprep.subr.bf16.mxu1 %v6694_v43  ;;  %v229_v38 = vld [vmem:[#allocation5 + $0x278] sm:$0xff]  ;;  %v6583_v39 = vcombine.low %v236_v27, %v244_v28  ;;  %v204_v43 = vld [vmem:[#allocation5 + $0x1b0] sm:$0xff] }
 0x11d   :  { %v6570_v42 = vcombine.high %v221_v37, %v229_v38  ;;  %v6569_v48 = vcombine.low %v221_v37, %v229_v38  ;;  %v6552_v49 = vcombine.high %v204_v43, %v212_v44  ;;  %v364_v27 = vld [vmem:[#allocation5 + $0x6b0] sm:$0xff]  ;;  %v349_v37 = vld [vmem:[#allocation5 + $0x638] sm:$0xff] }
 0x11e   :  { %v372_v28 = vld [vmem:[#allocation5 + $0x6f0] sm:$0xff] }
 0x11f   :  { %1958 = vmatpush2.bf16.msra.mxu0 %v6691_v45  ;;  %1999 = vmatpush2.bf16.msra.mxu1 %v6693_v46  ;;  %v205_v45 = vld [vmem:[#allocation5 + $0x1b8] sm:$0xff] }
 0x120   :  { %1959 = vmatprep.subr.bf16.mxu0 %v6676_v47  ;;  %2000 = vmatprep.subr.bf16.mxu1 %v6678_v51  ;;  %v213_v46 = vld [vmem:[#allocation5 + $0x1f8] sm:$0xff]  ;;  %v6567_v47 = vcombine.low %v220_v35, %v228_v36  ;;  %v196_v51 = vld [vmem:[#allocation5 + $0x170] sm:$0xff] }
 0x121   :  { %v6536_v56 = vcombine.high %v188_v50, %v196_v51  ;;  %v348_v35 = vld [vmem:[#allocation5 + $0x630] sm:$0xff] }
 0x122   :  { %v356_v36 = vld [vmem:[#allocation5 + $0x670] sm:$0xff] }
 0x123   :  { %1960 = vmatpush2.bf16.msra.mxu0 %v6675_v53  ;;  %2001 = vmatpush2.bf16.msra.mxu1 %v6677_v54  ;;  %v197_v53 = vld [vmem:[#allocation5 + $0x178] sm:$0xff]  ;;  %v6551_v54 = vcombine.low %v204_v43, %v212_v44  ;;  %v332_v43 = vld [vmem:[#allocation5 + $0x5b0] sm:$0xff] }
 0x124   :  { %1961 = vmatprep.subr.bf16.mxu0 %v6660_v55  ;;  %2002 = vmatprep.subr.bf16.mxu1 %v6662_v60  ;;  %v6553_v55 = vcombine.low %v205_v45, %v213_v46  ;;  %v173_v60 = vld [vmem:[#allocation5 + $0xb8] sm:$0xff]  ;;  %v6538_v61 = vcombine.high %v189_v52, %v197_v53  ;;  %v340_v44 = vld [vmem:[#allocation5 + $0x5f0] sm:$0xff] }
 0x127   :  { %1962 = vmatpush2.bf16.msra.mxu0 %v6659_v62  ;;  %2003 = vmatpush2.bf16.msra.mxu1 %v6661_v63  ;;  %v181_v62 = vld [vmem:[#allocation5 + $0xf8] sm:$0xff]  ;;  %v6535_v63 = vcombine.low %v188_v50, %v196_v51  ;;  %v316_v50 = vld [vmem:[#allocation5 + $0x530] sm:$0xff] }
 0x128   :  { %1963 = vmatprep.subr.bf16.mxu0 %v6644_v0  ;;  %2004 = vmatprep.subr.bf16.mxu1 %v6646_v4  ;;  %v6537_v0 = vcombine.low %v189_v52, %v197_v53  ;;  %v157_v4 = vld [vmem:[#allocation5 + $0x38] sm:$0xff]  ;;  %v6522_v5 = vcombine.high %v173_v60, %v181_v62  ;;  %v324_v51 = vld [vmem:[#allocation5 + $0x570] sm:$0xff] }
 0x129   :  { %v317_v52 = vld [vmem:[#allocation5 + $0x538] sm:$0xff] }
 0x12b   :  { %1964 = vmatpush2.bf16.msra.mxu0 %v6643_v6  ;;  %2005 = vmatpush2.bf16.msra.mxu1 %v6645_v7  ;;  %v165_v6 = vld [vmem:[#allocation5 + $0x78] sm:$0xff]  ;;  %v6519_v7 = vcombine.low %v172_v58, %v180_v59  ;;  %v6664_v58 = vcombine.high %v316_v50, %v324_v51  ;;  %v300_v59 = vld [vmem:[#allocation5 + $0x4b0] sm:$0xff] }
 0x12c   :  { %1965 = vmatprep.subr.bf16.mxu0 %v6628_v8  ;;  %2006 = vmatprep.subr.bf16.mxu1 %v6630_v13  ;;  %v6521_v8 = vcombine.low %v173_v60, %v181_v62  ;;  %v397_v13 = vld [vmem:[#allocation5 + $0x7b8] sm:$0xff]  ;;  %v6506_v14 = vcombine.high %v157_v4, %v165_v6  ;;  %v308_v60 = vld [vmem:[#allocation5 + $0x4f0] sm:$0xff] }
 0x12f   :  { %1966 = vmatpush2.bf16.msra.mxu0 %v6627_v15  ;;  %2007 = vmatpush2.bf16.msra.mxu1 %v6629_v16  ;;  %v405_v15 = vld [vmem:[#allocation5 + $0x7f8] sm:$0xff]  ;;  %v6503_v16 = vcombine.low %v156_v2, %v164_v3  ;;  %v6648_v2 = vcombine.high %v300_v59, %v308_v60  ;;  %v284_v3 = vld [vmem:[#allocation5 + $0x430] sm:$0xff] }
 0x130   :  { %2017 = vmatprep.subr.bf16.mxu0 %v6616_v17  ;;  %2058 = vmatprep.subr.bf16.mxu1 %v6618_v21  ;;  %v6505_v17 = vcombine.low %v157_v4, %v165_v6  ;;  %v381_v21 = vld [vmem:[#allocation5 + $0x738] sm:$0xff]  ;;  %v6746_v22 = vcombine.high %v397_v13, %v405_v15  ;;  %v292_v4 = vld [vmem:[#allocation5 + $0x470] sm:$0xff] }
 0x132   :  { %1968 = vmatmul.mubr.bf16.vlgmr.msra.gmra.mxu0 %v8519_v12  ;;  %2009 = vmatmul.mubr.bf16.vlgmr.msra.gmra.mxu1 %v8519_v12 }
 0x133   :  { %2018 = vmatpush1.bf16.msra.mxu0 %v6615_v23  ;;  %2059 = vmatpush1.bf16.msra.mxu1 %v6617_v24  ;;  %v389_v23 = vld [vmem:[#allocation5 + $0x778] sm:$0xff]  ;;  %v6743_v24 = vcombine.low %v396_v10, %v404_v11  ;;  %v6632_v11 = vcombine.high %v284_v3, %v292_v4 }
 0x134   :  { %2019 = vmatprep.subr.bf16.mxu0 %v6600_v25  ;;  %2060 = vmatprep.subr.bf16.mxu1 %v6602_v26  ;;  %v6745_v25 = vcombine.low %v397_v13, %v405_v15  ;;  %v6728_v26 = vcombine.high %v380_v19, %v388_v20  ;;  %v6730_v30 = vcombine.high %v381_v21, %v389_v23 }
 0x135   :  { %2049 = vmatprep.mubr.bf16.mxu0 %v8515_v57  ;;  %2090 = vmatprep.mubr.bf16.mxu1 %v8515_v57  ;;  %v6554_v57 = vcombine.high %v205_v45, %v213_v46  ;;  %v333_v45 = vld [vmem:[#allocation5 + $0x5b8] sm:$0xff] }
 0x137   :  { %2020 = vmatpush1.bf16.msra.mxu0 %v6599_v31  ;;  %2061 = vmatpush1.bf16.msra.mxu1 %v6601_v32  ;;  %v373_v31 = vld [vmem:[#allocation5 + $0x6f8] sm:$0xff]  ;;  %v6727_v32 = vcombine.low %v380_v19, %v388_v20  ;;  %v7392_v19 = vld [vmem:[#allocation7 + $0xe0] ss:$16 sps:$4 sm:$0xff]  }
 0x138   :  { %2021 = vmatprep.subr.bf16.mxu0 %v6584_v33  ;;  %2062 = vmatprep.subr.bf16.mxu1 %v6586_v34  ;;  %v6729_v33 = vcombine.low %v381_v21, %v389_v23  ;;  %v6712_v34 = vcombine.high %v364_v27, %v372_v28  ;;  %v6714_v38 = vcombine.high %v365_v29, %v373_v31  ;;  %v8538_v21 = vld [vmem:[#allocation11] ss:$4 sm:$0xff] }
 0x13b   :  { %2022 = vmatpush1.bf16.msra.mxu0 %v6583_v39  ;;  %2063 = vmatpush1.bf16.msra.mxu1 %v6585_v40  ;;  %v357_v39 = vld [vmem:[#allocation5 + $0x678] sm:$0xff]  ;;  %v6711_v40 = vcombine.low %v364_v27, %v372_v28  ;;  %v7403_v27 = vld [vmem:[#allocation7 + $0x2c4] ss:$16 sps:$4 sm:$0xff]  }
 0x13c   :  { %2023 = vmatprep.subr.bf16.mxu0 %v6568_v41  ;;  %2064 = vmatprep.subr.bf16.mxu1 %v6570_v42  ;;  %v6713_v41 = vcombine.low %v365_v29, %v373_v31  ;;  %v6696_v42 = vcombine.high %v348_v35, %v356_v36  ;;  %v6698_v46 = vcombine.high %v349_v37, %v357_v39  ;;  %v7406_v31 = vld [vmem:[#allocation7 + $0xa4] ss:$16 sps:$4 sm:$0xff]  }
 0x13f   :  { %2024 = vmatpush1.bf16.msra.mxu0 %v6567_v47  ;;  %2065 = vmatpush1.bf16.msra.mxu1 %v6569_v48  ;;  %v341_v47 = vld [vmem:[#allocation5 + $0x5f8] sm:$0xff]  ;;  %v6695_v48 = vcombine.low %v348_v35, %v356_v36  ;;  %v7409_v36 = vld [vmem:[#allocation7 + $0x2a4] ss:$16 sps:$4 sm:$0xff]  }
 0x140   :  { %2025 = vmatprep.subr.bf16.mxu0 %v6552_v49  ;;  %2066 = vmatprep.subr.bf16.mxu1 %v6554_v57  ;;  %v6697_v49 = vcombine.low %v349_v37, %v357_v39  ;;  %v6680_v57 = vcombine.high %v332_v43, %v340_v44  ;;  %v6682_v53 = vcombine.high %v333_v45, %v341_v47 }
 0x143   :  { %2026 = vmatpush1.bf16.msra.mxu0 %v6551_v54  ;;  %2067 = vmatpush1.bf16.msra.mxu1 %v6553_v55  ;;  %v325_v54 = vld [vmem:[#allocation5 + $0x578] sm:$0xff]  ;;  %v6679_v55 = vcombine.low %v332_v43, %v340_v44 }
 0x144   :  { %2027 = vmatprep.subr.bf16.mxu0 %v6536_v56  ;;  %2068 = vmatprep.subr.bf16.mxu1 %v6538_v61  ;;  %v6681_v56 = vcombine.low %v333_v45, %v341_v47  ;;  %v301_v61 = vld [vmem:[#allocation5 + $0x4b8] sm:$0xff]  ;;  %v6666_v62 = vcombine.high %v317_v52, %v325_v54  ;;  %v7412_v47 = vld [vmem:[#allocation7 + $0x84] ss:$16 sps:$4 sm:$0xff]  }
 0x147   :  { %2028 = vmatpush1.bf16.msra.mxu0 %v6535_v63  ;;  %2069 = vmatpush1.bf16.msra.mxu1 %v6537_v0  ;;  %v309_v63 = vld [vmem:[#allocation5 + $0x4f8] sm:$0xff]  ;;  %v6663_v0 = vcombine.low %v316_v50, %v324_v51  ;;  %v7413_v50 = vld [vmem:[#allocation7 + $0x280] ss:$16 sps:$4 sm:$0xff]   ;;  %v7418_v51 = vld [vmem:[#allocation7 + $0x64] ss:$16 sps:$4 sm:$0xff]  }
 0x148   :  { %2029 = vmatprep.subr.bf16.mxu0 %v6520_v1  ;;  %2070 = vmatprep.subr.bf16.mxu1 %v6522_v5  ;;  %v6665_v1 = vcombine.low %v317_v52, %v325_v54  ;;  %v285_v5 = vld [vmem:[#allocation5 + $0x438] sm:$0xff]  ;;  %v6650_v6 = vcombine.high %v301_v61, %v309_v63  ;;  %v6649_v10 = vcombine.low %v301_v61, %v309_v63  ;;  %v7416_v54 = vld [vmem:[#allocation7 + $0x60] ss:$16 sps:$4 sm:$0xff]   ;;  %v7430_v61 = vld [vmem:[#allocation7 + $0x24] ss:$16 sps:$4 sm:$0xff]  }
 0x149   :  { %v7433_v63 = vld [vmem:[#allocation7 + $0x224] ss:$16 sps:$4 sm:$0xff]  }
 0x14b   :  { %2030 = vmatpush1.bf16.msra.mxu0 %v6519_v7  ;;  %2071 = vmatpush1.bf16.msra.mxu1 %v6521_v8  ;;  %v293_v7 = vld [vmem:[#allocation5 + $0x478] sm:$0xff]  ;;  %v6647_v8 = vcombine.low %v300_v59, %v308_v60  ;;  %v7427_v59 = vld [vmem:[#allocation7 + $0x244] ss:$16 sps:$4 sm:$0xff]   ;;  %v7425_v60 = vld [vmem:[#allocation7 + $0x240] ss:$16 sps:$4 sm:$0xff]  }
 0x14c   :  { %2031 = vmatprep.subr.bf16.mxu0 %v6504_v9  ;;  %2072 = vmatprep.subr.bf16.mxu1 %v6506_v14  ;;  %v411_v9 = vlaneseq  ;;  %v6634_v13 = vcombine.high %v285_v5, %v293_v7  ;;  %v6631_v14 = vcombine.low %v284_v3, %v292_v4  ;;  %v7439_v3 = vld [vmem:[#allocation7 + $0x204] ss:$16 sps:$4 sm:$0xff]   ;;  %v7437_v4 = vld [vmem:[#allocation7 + $0x200] ss:$16 sps:$4 sm:$0xff]  }
 0x14e   :  { %v8533_v15 = vshrl.u32 %v411_v9, 7  ;;  %v7448_v9 = vld [vmem:[#allocation7 + $0x1c4] ss:$16 sps:$4 sm:$0xff]  }
 0x14f   :  { %2032 = vmatpush1.bf16.msra.mxu0 %v6503_v16  ;;  %2073 = vmatpush1.bf16.msra.mxu1 %v6505_v17  ;;  %v6633_v16 = vcombine.low %v285_v5, %v293_v7  ;;  %v7394_v17 = vld [vmem:[#allocation7 + $0xe4] ss:$16 sps:$4 sm:$0xff]  }
 0x150   :  { %2033 = vmatprep.subr.bf16.mxu0 %v6744_v18  ;;  %2074 = vmatprep.subr.bf16.mxu1 %v6746_v22  ;;  %v7397_v18 = vld [vmem:[#allocation7 + $0x2e4] ss:$16 sps:$4 sm:$0xff]   ;;  %v8536_v20 = vsub.s32 1, %v8533_v15  ;;  %v7395_v22 = vld [vmem:[#allocation7 + $0x2e0] ss:$16 sps:$4 sm:$0xff]   ;;  %v8541_v23 = vsub.s32 3, %v8533_v15 }
 0x151   :  { %v7442_v5 = vld [vmem:[#allocation7 + $0x1e4] ss:$16 sps:$4 sm:$0xff]  }
 0x152   :  { %v426_v29 = vrot.slane %v8538_v21, %v8541_v23  ;;  %v7445_v7 = vld [vmem:[#allocation7 + $0x3e4] ss:$16 sps:$4 sm:$0xff]  }
 0x153   :  { %2034 = vmatpush2.bf16.msra.mxu0 %v6743_v24  ;;  %2075 = vmatpush2.bf16.msra.mxu1 %v6745_v25  ;;  %v7400_v24 = vld [vmem:[#allocation7 + $0xc4] ss:$16 sps:$4 sm:$0xff]   ;;  %v418_v25 = vrot.slane %v8538_v21, %v8536_v20 }
 0x154   :  { %2035 = vmatprep.subr.bf16.mxu0 %v6728_v26  ;;  %2076 = vmatprep.subr.bf16.mxu1 %v6730_v30  ;;  %v7398_v26 = vld [vmem:[#allocation7 + $0xc0] ss:$16 sps:$4 sm:$0xff]  }
 0x155   :  { %v7401_v30 = vld [vmem:[#allocation7 + $0x2c0] ss:$16 sps:$4 sm:$0xff]  }
 0x157   :  { %2036 = vmatpush2.bf16.msra.mxu0 %v6727_v32  ;;  %2077 = vmatpush2.bf16.msra.mxu1 %v6729_v33 }
 0x158   :  { %2037 = vmatprep.subr.bf16.mxu0 %v6712_v34  ;;  %2078 = vmatprep.subr.bf16.mxu1 %v6714_v38 }
 0x15b   :  { %2038 = vmatpush2.bf16.msra.mxu0 %v6711_v40  ;;  %2079 = vmatpush2.bf16.msra.mxu1 %v6713_v41  ;;  %v7404_v41 = vld [vmem:[#allocation7 + $0xa0] ss:$16 sps:$4 sm:$0xff]  }
 0x15c   :  { %2039 = vmatprep.subr.bf16.mxu0 %v6696_v42  ;;  %2080 = vmatprep.subr.bf16.mxu1 %v6698_v46  ;;  %v7410_v46 = vld [vmem:[#allocation7 + $0x80] ss:$16 sps:$4 sm:$0xff]  }
 0x15f   :  { %2040 = vmatpush2.bf16.msra.mxu0 %v6695_v48  ;;  %2081 = vmatpush2.bf16.msra.mxu1 %v6697_v49  ;;  %v7415_v48 = vld [vmem:[#allocation7 + $0x284] ss:$16 sps:$4 sm:$0xff]  }
 0x160   :  { %2041 = vmatprep.subr.bf16.mxu0 %v6680_v57  ;;  %2082 = vmatprep.subr.bf16.mxu1 %v6682_v53  ;;  %v7421_v53 = vld [vmem:[#allocation7 + $0x264] ss:$16 sps:$4 sm:$0xff]  }
 0x163   :  { %2042 = vmatpush2.bf16.msra.mxu0 %v6679_v55  ;;  %2083 = vmatpush2.bf16.msra.mxu1 %v6681_v56  ;;  %v7419_v55 = vld [vmem:[#allocation7 + $0x260] ss:$16 sps:$4 sm:$0xff]   ;;  %v7424_v56 = vld [vmem:[#allocation7 + $0x44] ss:$16 sps:$4 sm:$0xff]  }
 0x164   :  { %2043 = vmatprep.subr.bf16.mxu0 %v6664_v58  ;;  %2084 = vmatprep.subr.bf16.mxu1 %v6666_v62  ;;  %v7422_v58 = vld [vmem:[#allocation7 + $0x40] ss:$16 sps:$4 sm:$0xff]  }
 0x165   :  { %v7428_v62 = vld [vmem:[#allocation7 + $0x20] ss:$16 sps:$4 sm:$0xff]  }
 0x167   :  { %2044 = vmatpush2.bf16.msra.mxu0 %v6663_v0  ;;  %2085 = vmatpush2.bf16.msra.mxu1 %v6665_v1  ;;  %v7431_v0 = vld [vmem:[#allocation7 + $0x220] ss:$16 sps:$4 sm:$0xff]   ;;  %v7436_v1 = vld [vmem:[#allocation7 + $0x4] ss:$16 sps:$4 sm:$0xff]  }
 0x168   :  { %2045 = vmatprep.subr.bf16.mxu0 %v6648_v2  ;;  %2086 = vmatprep.subr.bf16.mxu1 %v6650_v6  ;;  %v7434_v2 = vld [vmem:[#allocation7] ss:$16 sps:$4 sm:$0xff]  }
 0x169   :  { %v7440_v6 = vld [vmem:[#allocation7 + $0x1e0] ss:$16 sps:$4 sm:$0xff]  }
 0x16b   :  { %2046 = vmatpush2.bf16.msra.mxu0 %v6647_v8  ;;  %2087 = vmatpush2.bf16.msra.mxu1 %v6649_v10  ;;  %v7443_v8 = vld [vmem:[#allocation7 + $0x3e0] ss:$16 sps:$4 sm:$0xff]  }
 0x16c   :  { %2047 = vmatprep.subr.bf16.mxu0 %v6632_v11  ;;  %2088 = vmatprep.subr.bf16.mxu1 %v6634_v13  ;;  %v7446_v10 = vld [vmem:[#allocation7 + $0x1c0] ss:$16 sps:$4 sm:$0xff]   ;;  %v7451_v11 = vld [vmem:[#allocation7 + $0x3c4] ss:$16 sps:$4 sm:$0xff]  }
 0x16d   :  { %v7449_v13 = vld [vmem:[#allocation7 + $0x3c0] ss:$16 sps:$4 sm:$0xff]  }
 0x16f   :  { %2048 = vmatpush2.bf16.msra.mxu0 %v6631_v14  ;;  %2089 = vmatpush2.bf16.msra.mxu1 %v6633_v16  ;;  %v7454_v14 = vld [vmem:[#allocation7 + $0x1a4] ss:$16 sps:$4 sm:$0xff]   ;;  %v7452_v16 = vld [vmem:[#allocation7 + $0x1a0] ss:$16 sps:$4 sm:$0xff]  }
 0x170   :  { %5257 = vmatprep.subr.bf16.mxu0 %v7394_v17  ;;  %5298 = vmatprep.subr.bf16.mxu1 %v7397_v18  ;;  %v7457_v17 = vld [vmem:[#allocation7 + $0x3a4] ss:$16 sps:$4 sm:$0xff]   ;;  %v7455_v18 = vld [vmem:[#allocation7 + $0x3a0] ss:$16 sps:$4 sm:$0xff]  }
 0x172   :  { %v8545_v28 = vpop.f32.mrf.mxu0  ;;  %2050 = vmatmul.mubr.bf16.vlgmr.msra.gmra.mxu0 %v8519_v12  ;;  %v8550_v32 = vpop.f32.mrf.mxu1  ;;  %2091 = vmatmul.mubr.bf16.vlgmr.msra.gmra.mxu1 %v8519_v12  ;;  %v7407_v12 = vld [vmem:[#allocation7 + $0x2a0] ss:$16 sps:$4 sm:$0xff]  }
 0x173   :  { %5258 = vmatpush1.bf16.msra.mxu0 %v7392_v19  ;;  %5299 = vmatpush1.bf16.msra.mxu1 %v7395_v22  ;;  %v7460_v19 = vld [vmem:[#allocation7 + $0x184] ss:$16 sps:$4 sm:$0xff]   ;;  %v7458_v22 = vld [vmem:[#allocation7 + $0x180] ss:$16 sps:$4 sm:$0xff]  }
 0x174   :  { %v1807_v33 = vpop.f32.mrf.mxu0  ;;  %5259 = vmatprep.subr.bf16.mxu0 %v7400_v24  ;;  %v1848_v35 = vpop.f32.mrf.mxu1  ;;  %5300 = vmatprep.subr.bf16.mxu1 %v7403_v27  ;;  %v7463_v24 = vld [vmem:[#allocation7 + $0x384] ss:$16 sps:$4 sm:$0xff]   ;;  %v8560_v27 = vsub.s32 0, %v8533_v15 }
 0x175   :  { %v1808_v34 = vadd.f32 %v1807_v33, %v418_v25  ;;  %v1849_v37 = vadd.f32 %v1848_v35, %v426_v29  ;;  %v7461_v25 = vld [vmem:[#allocation7 + $0x380] ss:$16 sps:$4 sm:$0xff]  }
 0x176   :  { %v1809_v38 = vpop.f32.mrf.mxu0  ;;  %v1850_v40 = vpop.f32.mrf.mxu1  ;;  %v7464_v29 = vld [vmem:[#allocation7 + $0x160] ss:$16 sps:$4 sm:$0xff]   ;;  %v414_v35 = vrot.slane %v8538_v21, %v8560_v27 }
 0x177   :  { %vm2100_vm0 = vcmp.gt.f32.partialorder %v1808_v34, 0.0  ;;  %v2116_v39 = vmul.f32 0.2, %v1808_v34  ;;  %5260 = vmatpush1.bf16.msra.mxu0 %v7398_v26  ;;  %vm2102_vm1 = vcmp.gt.f32.partialorder %v1849_v37, 0.0  ;;  %v2118_v42 = vmul.f32 0.2, %v1849_v37  ;;  %5301 = vmatpush1.bf16.msra.mxu1 %v7401_v30 }
 0x178   :  { %v1810_v43 = vpop.f32.mrf.mxu0  ;;  %5261 = vmatprep.subr.bf16.mxu0 %v7406_v31  ;;  %v1851_v44 = vpop.f32.mrf.mxu1  ;;  %5302 = vmatprep.subr.bf16.mxu1 %v7409_v36  ;;  %v7466_v26 = vld [vmem:[#allocation7 + $0x164] ss:$16 sps:$4 sm:$0xff]   ;;  %v8563_v31 = vsub.s32 2, %v8533_v15  ;;  %v7467_v33 = vld [vmem:[#allocation7 + $0x360] ss:$16 sps:$4 sm:$0xff]  }
 0x179   :  { %v2132_v45 = vsel %vm2100_vm0, %v1808_v34, %v2116_v39  ;;  %v2134_v57 = vsel %vm2102_vm1, %v1849_v37, %v2118_v42  ;;  %v7469_v30 = vld [vmem:[#allocation7 + $0x364] ss:$16 sps:$4 sm:$0xff]   ;;  %v7470_v36 = vld [vmem:[#allocation7 + $0x140] ss:$16 sps:$4 sm:$0xff]  }
 0x17a   :  { %v8553_v49 = vpack.c.bf16 %v2132_v45, %v2132_v45  ;;  %v8555_v52 = vpack.c.bf16 %v2134_v57, %v2134_v57  ;;  %v7472_v34 = vld [vmem:[#allocation7 + $0x144] ss:$16 sps:$4 sm:$0xff]   ;;  %v422_v38 = vrot.slane %v8538_v21, %v8563_v31  ;;  %v7473_v39 = vld [vmem:[#allocation7 + $0x340] ss:$16 sps:$4 sm:$0xff]  }
 0x17b   :  { %5262 = vmatpush1.bf16.msra.mxu0 %v7404_v41  ;;  %5303 = vmatpush1.bf16.msra.mxu1 %v7407_v12  ;;  %v7475_v37 = vld [vmem:[#allocation7 + $0x344] ss:$16 sps:$4 sm:$0xff]   ;;  %v1806_v41 = vadd.f32 %v8545_v28, %v414_v35  ;;  %v7476_v42 = vld [vmem:[#allocation7 + $0x120] ss:$16 sps:$4 sm:$0xff]  }
 0x17c   :  { %5289 = vmatprep.mubr.bf16.mxu0 %v8553_v49  ;;  %5330 = vmatprep.mubr.bf16.mxu1 %v8555_v52  ;;  %v7478_v40 = vld [vmem:[#allocation7 + $0x124] ss:$16 sps:$4 sm:$0xff]   ;;  %v1847_v12 = vadd.f32 %v8550_v32, %v422_v38  ;;  %v7479_v44 = vld [vmem:[#allocation7 + $0x320] ss:$16 sps:$4 sm:$0xff]  }
 0x17d   :  { %5263 = vmatprep.subr.bf16.mxu0 %v7412_v47  ;;  %5304 = vmatprep.subr.bf16.mxu1 %v7415_v48  ;;  %v7481_v43 = vld [vmem:[#allocation7 + $0x324] ss:$16 sps:$4 sm:$0xff]   ;;  %v7482_v47 = vld [vmem:[#allocation7 + $0x100] ss:$16 sps:$4 sm:$0xff]   ;;  %vm2099_vm2 = vcmp.gt.f32.partialorder %v1806_v41, 0.0 }
 0x17e   :  { %v7484_v45 = vld [vmem:[#allocation7 + $0x104] ss:$16 sps:$4 sm:$0xff]   ;;  %v2117_v57 = vmul.f32 0.2, %v1847_v12  ;;  %vm2101_vm3 = vcmp.gt.f32.partialorder %v1847_v12, 0.0 }
 0x17f   :  { %5264 = vmatpush1.bf16.msra.mxu0 %v7410_v46  ;;  %5305 = vmatpush1.bf16.msra.mxu1 %v7413_v50  ;;  %v2115_v46 = vmul.f32 0.2, %v1806_v41  ;;  %v7487_v48 = vld [vmem:[#allocation7 + $0x304] ss:$16 sps:$4 sm:$0xff]   ;;  %v7485_v28 = vld [vmem:[#allocation7 + $0x300] ss:$16 sps:$4 sm:$0xff]  }
 0x180   :  { %5265 = vmatprep.subr.bf16.mxu0 %v7418_v51  ;;  %5306 = vmatprep.subr.bf16.mxu1 %v7421_v53  ;;  %v7490_v50 = vld [vmem:[#allocation7 + $0x4e4] ss:$16 sps:$4 sm:$0xff]   ;;  %v7488_v32 = vld [vmem:[#allocation7 + $0x4e0] ss:$16 sps:$4 sm:$0xff]  }
 0x181   :  { %v7493_v51 = vld [vmem:[#allocation7 + $0x6e4] ss:$16 sps:$4 sm:$0xff]   ;;  %v2131_v53 = vsel %vm2099_vm2, %v1806_v41, %v2115_v46  ;;  %v7515_v38 = vld [vmem:[#allocation7 + $0x660] ss:$16 sps:$4 sm:$0xff]  }
 0x182   :  { %v7523_v41 = vld [vmem:[#allocation7 + $0x644] ss:$16 sps:$4 sm:$0xff]  }
 0x183   :  { %5266 = vmatpush1.bf16.msra.mxu0 %v7416_v54  ;;  %5307 = vmatpush1.bf16.msra.mxu1 %v7419_v55  ;;  %v433_v54 = vsub.s32 5, %v8533_v15  ;;  %v2133_v55 = vsel %vm2101_vm3, %v1847_v12, %v2117_v57  ;;  %v7524_v12 = vld [vmem:[#allocation7 + $0x420] ss:$16 sps:$4 sm:$0xff]   ;;  %v7532_v46 = vld [vmem:[#allocation7 + $0x404] ss:$16 sps:$4 sm:$0xff]  }
 0x184   :  { %5267 = vmatprep.subr.bf16.mxu0 %v7424_v56  ;;  %5308 = vmatprep.subr.bf16.mxu1 %v7427_v59  ;;  %v7491_v56 = vld [vmem:[#allocation7 + $0x6e0] ss:$16 sps:$4 sm:$0xff]   ;;  %v7496_v59 = vld [vmem:[#allocation7 + $0x4c4] ss:$16 sps:$4 sm:$0xff]  }
 0x185   :  { %v7533_v57 = vld [vmem:[#allocation7 + $0x600] ss:$16 sps:$4 sm:$0xff]  }
 0x187   :  { %5268 = vmatpush1.bf16.msra.mxu0 %v7422_v58  ;;  %5309 = vmatpush1.bf16.msra.mxu1 %v7425_v60  ;;  %v441_v58 = vsub.s32 7, %v8533_v15  ;;  %v8573_v60 = vpack.c.bf16 %v2131_v53, %v2131_v53  ;;  %v7539_v53 = vld [vmem:[#allocation7 + $0x7e0] ss:$16 sps:$4 sm:$0xff]  }
 0x188   :  { %5269 = vmatprep.subr.bf16.mxu0 %v7430_v61  ;;  %5310 = vmatprep.subr.bf16.mxu1 %v7433_v63  ;;  %v8575_v61 = vpack.c.bf16 %v2133_v55, %v2133_v55  ;;  %v7494_v63 = vld [vmem:[#allocation7 + $0x4c0] ss:$16 sps:$4 sm:$0xff]  }
 0x189   :  { %v7542_v55 = vld [vmem:[#allocation7 + $0x5c0] ss:$16 sps:$4 sm:$0xff]  }
 0x18b   :  { %5270 = vmatpush1.bf16.msra.mxu0 %v7428_v62  ;;  %5311 = vmatpush1.bf16.msra.mxu1 %v7431_v0  ;;  %v434_v62 = vrot.slane %v8538_v21, %v433_v54  ;;  %v7499_v0 = vld [vmem:[#allocation7 + $0x6c4] ss:$16 sps:$4 sm:$0xff]  }
 0x18c   :  { %5271 = vmatprep.subr.bf16.mxu0 %v7436_v1  ;;  %5312 = vmatprep.subr.bf16.mxu1 %v7439_v3  ;;  %v7497_v3 = vld [vmem:[#allocation7 + $0x6c0] ss:$16 sps:$4 sm:$0xff]  }
 0x18f   :  { %5272 = vmatpush1.bf16.msra.mxu0 %v7434_v2  ;;  %5313 = vmatpush1.bf16.msra.mxu1 %v7437_v4  ;;  %v442_v2 = vrot.slane %v8538_v21, %v441_v58  ;;  %v7502_v4 = vld [vmem:[#allocation7 + $0x4a4] ss:$16 sps:$4 sm:$0xff]   ;;  %v7500_v21 = vld [vmem:[#allocation7 + $0x4a0] ss:$16 sps:$4 sm:$0xff]  }
 0x190   :  { %5273 = vmatprep.subr.bf16.mxu0 %v7442_v5  ;;  %5314 = vmatprep.subr.bf16.mxu1 %v7445_v7 }
 0x193   :  { %5274 = vmatpush2.bf16.msra.mxu0 %v7440_v6  ;;  %5315 = vmatpush2.bf16.msra.mxu1 %v7443_v8 }
 0x194   :  { %5275 = vmatprep.subr.bf16.mxu0 %v7448_v9  ;;  %5316 = vmatprep.subr.bf16.mxu1 %v7451_v11  ;;  %v7505_v9 = vld [vmem:[#allocation7 + $0x6a4] ss:$16 sps:$4 sm:$0xff]  }
 0x197   :  { %5276 = vmatpush2.bf16.msra.mxu0 %v7446_v10  ;;  %5317 = vmatpush2.bf16.msra.mxu1 %v7449_v13 }
 0x198   :  { %5277 = vmatprep.subr.bf16.mxu0 %v7454_v14  ;;  %5318 = vmatprep.subr.bf16.mxu1 %v7457_v17 }
 0x19b   :  { %5278 = vmatpush2.bf16.msra.mxu0 %v7452_v16  ;;  %5319 = vmatpush2.bf16.msra.mxu1 %v7455_v18  ;;  %v7503_v18 = vld [vmem:[#allocation7 + $0x6a0] ss:$16 sps:$4 sm:$0xff]  }
 0x19c   :  { %5279 = vmatprep.subr.bf16.mxu0 %v7460_v19  ;;  %5320 = vmatprep.subr.bf16.mxu1 %v7463_v24  ;;  %v7506_v24 = vld [vmem:[#allocation7 + $0x480] ss:$16 sps:$4 sm:$0xff]  }
 0x19f   :  { %5280 = vmatpush2.bf16.msra.mxu0 %v7458_v22  ;;  %5321 = vmatpush2.bf16.msra.mxu1 %v7461_v25  ;;  %v7508_v25 = vld [vmem:[#allocation7 + $0x484] ss:$16 sps:$4 sm:$0xff]  }
 0x1a0   :  { %5281 = vmatprep.subr.bf16.mxu0 %v7466_v26  ;;  %5322 = vmatprep.subr.bf16.mxu1 %v7469_v30  ;;  %v7511_v26 = vld [vmem:[#allocation7 + $0x684] ss:$16 sps:$4 sm:$0xff]  }
 0x1a3   :  { %5282 = vmatpush2.bf16.msra.mxu0 %v7464_v29  ;;  %5323 = vmatpush2.bf16.msra.mxu1 %v7467_v33  ;;  %v7509_v33 = vld [vmem:[#allocation7 + $0x680] ss:$16 sps:$4 sm:$0xff]  }
 0x1a4   :  { %5283 = vmatprep.subr.bf16.mxu0 %v7472_v34  ;;  %5324 = vmatprep.subr.bf16.mxu1 %v7475_v37  ;;  %v7514_v34 = vld [vmem:[#allocation7 + $0x464] ss:$16 sps:$4 sm:$0xff]   ;;  %v7512_v37 = vld [vmem:[#allocation7 + $0x460] ss:$16 sps:$4 sm:$0xff]  }
 0x1a7   :  { %5284 = vmatpush2.bf16.msra.mxu0 %v7470_v36  ;;  %5325 = vmatpush2.bf16.msra.mxu1 %v7473_v39  ;;  %v7517_v36 = vld [vmem:[#allocation7 + $0x664] ss:$16 sps:$4 sm:$0xff]  }
 0x1a8   :  { %5285 = vmatprep.subr.bf16.mxu0 %v7478_v40  ;;  %5326 = vmatprep.subr.bf16.mxu1 %v7481_v43  ;;  %v7520_v39 = vld [vmem:[#allocation7 + $0x444] ss:$16 sps:$4 sm:$0xff]   ;;  %v7518_v40 = vld [vmem:[#allocation7 + $0x440] ss:$16 sps:$4 sm:$0xff]  }
 0x1a9   :  { %v7526_v43 = vld [vmem:[#allocation7 + $0x424] ss:$16 sps:$4 sm:$0xff]  }
 0x1ab   :  { %5286 = vmatpush2.bf16.msra.mxu0 %v7476_v42  ;;  %5327 = vmatpush2.bf16.msra.mxu1 %v7479_v44  ;;  %v7521_v42 = vld [vmem:[#allocation7 + $0x640] ss:$16 sps:$4 sm:$0xff]   ;;  %v7529_v44 = vld [vmem:[#allocation7 + $0x624] ss:$16 sps:$4 sm:$0xff]  }
 0x1ac   :  { %5287 = vmatprep.subr.bf16.mxu0 %v7484_v45  ;;  %5328 = vmatprep.subr.bf16.mxu1 %v7487_v48  ;;  %v7527_v45 = vld [vmem:[#allocation7 + $0x620] ss:$16 sps:$4 sm:$0xff]   ;;  %v7535_v48 = vld [vmem:[#allocation7 + $0x604] ss:$16 sps:$4 sm:$0xff]  }
 0x1af   :  { %5288 = vmatpush2.bf16.msra.mxu0 %v7482_v47  ;;  %5329 = vmatpush2.bf16.msra.mxu1 %v7485_v28  ;;  %v7530_v47 = vld [vmem:[#allocation7 + $0x400] ss:$16 sps:$4 sm:$0xff]   ;;  %v7538_v28 = vld [vmem:[#allocation7 + $0x5e4] ss:$16 sps:$4 sm:$0xff]  }
 0x1b0   :  { %5339 = vmatprep.subr.bf16.mxu0 %v7490_v50  ;;  %5380 = vmatprep.subr.bf16.mxu1 %v7493_v51  ;;  %v7536_v50 = vld [vmem:[#allocation7 + $0x5e0] ss:$16 sps:$4 sm:$0xff]   ;;  %v7541_v51 = vld [vmem:[#allocation7 + $0x7e4] ss:$16 sps:$4 sm:$0xff]  }
 0x1b2   :  { %v8580_v1 = vpop.f32.mrf.mxu0  ;;  %5290 = vmatmul.mubr.bf16.vlgmr.msra.gmra.mxu0 %v8573_v60  ;;  %v8586_v5 = vpop.f32.mrf.mxu1  ;;  %5331 = vmatmul.mubr.bf16.vlgmr.msra.gmra.mxu1 %v8575_v61 }
 0x1b3   :  { %5340 = vmatpush1.bf16.msra.mxu0 %v7488_v32  ;;  %5381 = vmatpush1.bf16.msra.mxu1 %v7491_v56  ;;  %v7544_v32 = vld [vmem:[#allocation7 + $0x5c4] ss:$16 sps:$4 sm:$0xff]  }
 0x1b4   :  { %v1889_v6 = vpop.f32.mrf.mxu0  ;;  %5341 = vmatprep.subr.bf16.mxu0 %v7496_v59  ;;  %v1930_v8 = vpop.f32.mrf.mxu1  ;;  %5382 = vmatprep.subr.bf16.mxu1 %v7499_v0  ;;  %v7547_v56 = vld [vmem:[#allocation7 + $0x7c4] ss:$16 sps:$4 sm:$0xff]   ;;  %v7545_v59 = vld [vmem:[#allocation7 + $0x7c0] ss:$16 sps:$4 sm:$0xff]  }
 0x1b5   :  { %v1890_v7 = vadd.f32 %v1889_v6, %v434_v62  ;;  %v1931_v10 = vadd.f32 %v1930_v8, %v442_v2  ;;  %v7550_v62 = vld [vmem:[#allocation7 + $0x5a4] ss:$16 sps:$4 sm:$0xff]   ;;  %v7551_v2 = vld [vmem:[#allocation7 + $0x7a0] ss:$16 sps:$4 sm:$0xff]   ;;  %v437_v8 = vsub.s32 6, %v8533_v15 }
 0x1b6   :  { %v1891_v11 = vpop.f32.mrf.mxu0  ;;  %v1932_v14 = vpop.f32.mrf.mxu1  ;;  %v7553_v0 = vld [vmem:[#allocation7 + $0x7a4] ss:$16 sps:$4 sm:$0xff]  }
 0x1b7   :  { %vm2104_vm4 = vcmp.gt.f32.partialorder %v1890_v7, 0.0  ;;  %v2120_v13 = vmul.f32 0.2, %v1890_v7  ;;  %5342 = vmatpush1.bf16.msra.mxu0 %v7494_v63  ;;  %vm2106_vm5 = vcmp.gt.f32.partialorder %v1931_v10, 0.0  ;;  %v2122_v16 = vmul.f32 0.2, %v1931_v10  ;;  %5383 = vmatpush1.bf16.msra.mxu1 %v7497_v3 }
 0x1b8   :  { %v1892_v17 = vpop.f32.mrf.mxu0  ;;  %5343 = vmatprep.subr.bf16.mxu0 %v7502_v4  ;;  %v1933_v19 = vpop.f32.mrf.mxu1  ;;  %5384 = vmatprep.subr.bf16.mxu1 %v7505_v9  ;;  %v7548_v63 = vld [vmem:[#allocation7 + $0x5a0] ss:$16 sps:$4 sm:$0xff]   ;;  %v7556_v3 = vld [vmem:[#allocation7 + $0x584] ss:$16 sps:$4 sm:$0xff]  }
 0x1b9   :  { %v2136_v22 = vsel %vm2104_vm4, %v1890_v7, %v2120_v13  ;;  %v2138_v30 = vsel %vm2106_vm5, %v1931_v10, %v2122_v16  ;;  %v7554_v4 = vld [vmem:[#allocation7 + $0x580] ss:$16 sps:$4 sm:$0xff]   ;;  %v7559_v6 = vld [vmem:[#allocation7 + $0x784] ss:$16 sps:$4 sm:$0xff]   ;;  %v429_v7 = vsub.s32 4, %v8533_v15  ;;  %vm8429_vm4 = vmmov 0  }
 0x1ba   :  { %v8589_v29 = vpack.c.bf16 %v2136_v22, %v2136_v22  ;;  %v8591_v35 = vpack.c.bf16 %v2138_v30, %v2138_v30  ;;  %v7557_v9 = vld [vmem:[#allocation7 + $0x780] ss:$16 sps:$4 sm:$0xff]   ;;  %v7562_v10 = vld [vmem:[#allocation7 + $0x564] ss:$16 sps:$4 sm:$0xff]  }
 0x1bb   :  { %5344 = vmatpush1.bf16.msra.mxu0 %v7500_v21  ;;  %5385 = vmatpush1.bf16.msra.mxu1 %v7503_v18  ;;  %v7565_v11 = vld [vmem:[#allocation7 + $0x764] ss:$16 sps:$4 sm:$0xff]   ;;  %v7560_v13 = vld [vmem:[#allocation7 + $0x560] ss:$16 sps:$4 sm:$0xff]  }
 0x1bc   :  { %5371 = vmatprep.mubr.bf16.mxu0 %v8589_v29  ;;  %5412 = vmatprep.mubr.bf16.mxu1 %v8591_v35  ;;  %v7563_v14 = vld [vmem:[#allocation7 + $0x760] ss:$16 sps:$4 sm:$0xff]   ;;  %v7568_v21 = vld [vmem:[#allocation7 + $0x544] ss:$16 sps:$4 sm:$0xff]  }
 0x1bd   :  { %5345 = vmatprep.subr.bf16.mxu0 %v7508_v25  ;;  %5386 = vmatprep.subr.bf16.mxu1 %v7511_v26  ;;  %v8200_v16 = vld [vmem:[#allocation11] ss:$4 sm:$0xff] }
 0x1be   :  { %v430_v17 = vrot.slane %v8200_v16, %v429_v7  ;;  %v7571_v18 = vld [vmem:[#allocation7 + $0x744] ss:$16 sps:$4 sm:$0xff]   ;;  %v438_v19 = vrot.slane %v8200_v16, %v437_v8  ;;  %v7566_v22 = vld [vmem:[#allocation7 + $0x540] ss:$16 sps:$4 sm:$0xff]  }
 0x1bf   :  { %5346 = vmatpush1.bf16.msra.mxu0 %v7506_v24  ;;  %5387 = vmatpush1.bf16.msra.mxu1 %v7509_v33  ;;  %v7569_v24 = vld [vmem:[#allocation7 + $0x740] ss:$16 sps:$4 sm:$0xff]   ;;  %v7574_v25 = vld [vmem:[#allocation7 + $0x524] ss:$16 sps:$4 sm:$0xff]  }
 0x1c0   :  { %5347 = vmatprep.subr.bf16.mxu0 %v7514_v34  ;;  %5388 = vmatprep.subr.bf16.mxu1 %v7517_v36  ;;  %v1888_v26 = vadd.f32 %v8580_v1, %v430_v17  ;;  %v7577_v30 = vld [vmem:[#allocation7 + $0x724] ss:$16 sps:$4 sm:$0xff]   ;;  %v1929_v33 = vadd.f32 %v8586_v5, %v438_v19  ;;  %v7572_v34 = vld [vmem:[#allocation7 + $0x520] ss:$16 sps:$4 sm:$0xff]  }
 0x1c1   :  { %v7575_v36 = vld [vmem:[#allocation7 + $0x720] ss:$16 sps:$4 sm:$0xff]   ;;  %v7589_v5 = vld [vmem:[#allocation7 + $0xae4] ss:$16 sps:$4 sm:$0xff]  }
 0x1c2   :  { %vm2103_vm6 = vcmp.gt.f32.partialorder %v1888_v26, 0.0  ;;  %vm2105_vm7 = vcmp.gt.f32.partialorder %v1929_v33, 0.0  ;;  %v7581_v1 = vld [vmem:[#allocation7 + $0x700] ss:$16 sps:$4 sm:$0xff]   ;;  %v7604_v17 = vld [vmem:[#allocation7 + $0x884] ss:$16 sps:$4 sm:$0xff]  }
 0x1c3   :  { %5348 = vmatpush1.bf16.msra.mxu0 %v7512_v37  ;;  %5389 = vmatpush1.bf16.msra.mxu1 %v7515_v38  ;;  %v7580_v37 = vld [vmem:[#allocation7 + $0x504] ss:$16 sps:$4 sm:$0xff]   ;;  %v2119_v38 = vmul.f32 0.2, %v1888_v26 }
 0x1c4   :  { %5349 = vmatprep.subr.bf16.mxu0 %v7520_v39  ;;  %5390 = vmatprep.subr.bf16.mxu1 %v7523_v41  ;;  %v7583_v39 = vld [vmem:[#allocation7 + $0x704] ss:$16 sps:$4 sm:$0xff]   ;;  %v7578_v41 = vld [vmem:[#allocation7 + $0x500] ss:$16 sps:$4 sm:$0xff]  }
 0x1c5   :  { %v7772_v15 = vld [vmem:[#allocation7 + $0xd04] ss:$16 sps:$4 sm:$0xff]  }
 0x1c7   :  { %5350 = vmatpush1.bf16.msra.mxu0 %v7518_v40  ;;  %5391 = vmatpush1.bf16.msra.mxu1 %v7521_v42  ;;  %v2121_v40 = vmul.f32 0.2, %v1929_v33  ;;  %v7586_v42 = vld [vmem:[#allocation7 + $0x8e4] ss:$16 sps:$4 sm:$0xff]  }
 0x1c8   :  { %5351 = vmatprep.subr.bf16.mxu0 %v7526_v43  ;;  %5392 = vmatprep.subr.bf16.mxu1 %v7529_v44  ;;  %v2135_v43 = vsel %vm2103_vm6, %v1888_v26, %v2119_v38  ;;  %v7584_v44 = vld [vmem:[#allocation7 + $0x8e0] ss:$16 sps:$4 sm:$0xff]   ;;  %v7619_v38 = vld [vmem:[#allocation7 + $0xa44] ss:$16 sps:$4 sm:$0xff]  }
 0x1c9   :  { %v7605_v26 = vld [vmem:[#allocation7 + $0xa80] ss:$16 sps:$4 sm:$0xff]  }
 0x1cb   :  { %5352 = vmatpush1.bf16.msra.mxu0 %v7524_v12  ;;  %5393 = vmatpush1.bf16.msra.mxu1 %v7527_v45  ;;  %v2137_v12 = vsel %vm2105_vm7, %v1929_v33, %v2121_v40  ;;  %v8603_v45 = vpack.c.bf16 %v2135_v43, %v2135_v43  ;;  %v7613_v33 = vld [vmem:[#allocation7 + $0xa64] ss:$16 sps:$4 sm:$0xff]   ;;  %v7617_v40 = vld [vmem:[#allocation7 + $0xa40] ss:$16 sps:$4 sm:$0xff]  }
 0x1cc   :  { %5353 = vmatprep.subr.bf16.mxu0 %v7532_v46  ;;  %5394 = vmatprep.subr.bf16.mxu1 %v7535_v48  ;;  %v8605_v46 = vld [vmem:[#allocation11 + $0x20] ss:$4 sm:$0xff] }
 0x1cd   :  { %v7592_v48 = vld [vmem:[#allocation7 + $0x8c4] ss:$16 sps:$4 sm:$0xff]   ;;  %v7623_v43 = vld [vmem:[#allocation7 + $0xa20] ss:$16 sps:$4 sm:$0xff]  }
 0x1cf   :  { %5354 = vmatpush1.bf16.msra.mxu0 %v7530_v47  ;;  %5395 = vmatpush1.bf16.msra.mxu1 %v7533_v57  ;;  %v7587_v47 = vld [vmem:[#allocation7 + $0xae0] ss:$16 sps:$4 sm:$0xff]   ;;  %v8607_v57 = vpack.c.bf16 %v2137_v12, %v2137_v12  ;;  %v7631_v12 = vld [vmem:[#allocation7 + $0xa04] ss:$16 sps:$4 sm:$0xff]  }
 0x1d0   :  { %5355 = vmatprep.subr.bf16.mxu0 %v7538_v28  ;;  %5396 = vmatprep.subr.bf16.mxu1 %v7541_v51  ;;  %v450_v28 = vrot.slane %v8605_v46, %v8536_v20 }
 0x1d3   :  { %5356 = vmatpush2.bf16.msra.mxu0 %v7536_v50  ;;  %5397 = vmatpush2.bf16.msra.mxu1 %v7539_v53  ;;  %v7595_v50 = vld [vmem:[#allocation7 + $0xac4] ss:$16 sps:$4 sm:$0xff]   ;;  %v458_v53 = vrot.slane %v8605_v46, %v8541_v23 }
 0x1d4   :  { %5357 = vmatprep.subr.bf16.mxu0 %v7544_v32  ;;  %5398 = vmatprep.subr.bf16.mxu1 %v7547_v56 }
 0x1d7   :  { %5358 = vmatpush2.bf16.msra.mxu0 %v7542_v55  ;;  %5399 = vmatpush2.bf16.msra.mxu1 %v7545_v59  ;;  %v7590_v55 = vld [vmem:[#allocation7 + $0x8c0] ss:$16 sps:$4 sm:$0xff]  }
 0x1d8   :  { %5359 = vmatprep.subr.bf16.mxu0 %v7550_v62  ;;  %5400 = vmatprep.subr.bf16.mxu1 %v7553_v0  ;;  %v7593_v59 = vld [vmem:[#allocation7 + $0xac0] ss:$16 sps:$4 sm:$0xff]   ;;  %v7598_v62 = vld [vmem:[#allocation7 + $0x8a4] ss:$16 sps:$4 sm:$0xff]  }
 0x1db   :  { %5360 = vmatpush2.bf16.msra.mxu0 %v7548_v63  ;;  %5401 = vmatpush2.bf16.msra.mxu1 %v7551_v2  ;;  %v7601_v2 = vld [vmem:[#allocation7 + $0xaa4] ss:$16 sps:$4 sm:$0xff]  }
 0x1dc   :  { %5361 = vmatprep.subr.bf16.mxu0 %v7556_v3  ;;  %5402 = vmatprep.subr.bf16.mxu1 %v7559_v6 }
 0x1df   :  { %5362 = vmatpush2.bf16.msra.mxu0 %v7554_v4  ;;  %5403 = vmatpush2.bf16.msra.mxu1 %v7557_v9 }
 0x1e0   :  { %5363 = vmatprep.subr.bf16.mxu0 %v7562_v10  ;;  %5404 = vmatprep.subr.bf16.mxu1 %v7565_v11  ;;  %v7596_v10 = vld [vmem:[#allocation7 + $0x8a0] ss:$16 sps:$4 sm:$0xff]  }
 0x1e3   :  { %5364 = vmatpush2.bf16.msra.mxu0 %v7560_v13  ;;  %5405 = vmatpush2.bf16.msra.mxu1 %v7563_v14  ;;  %v7599_v14 = vld [vmem:[#allocation7 + $0xaa0] ss:$16 sps:$4 sm:$0xff]  }
 0x1e4   :  { %5365 = vmatprep.subr.bf16.mxu0 %v7568_v21  ;;  %5406 = vmatprep.subr.bf16.mxu1 %v7571_v18 }
 0x1e7   :  { %5366 = vmatpush2.bf16.msra.mxu0 %v7566_v22  ;;  %5407 = vmatpush2.bf16.msra.mxu1 %v7569_v24  ;;  %v7607_v22 = vld [vmem:[#allocation7 + $0xa84] ss:$16 sps:$4 sm:$0xff]  }
 0x1e8   :  { %5367 = vmatprep.subr.bf16.mxu0 %v7574_v25  ;;  %5408 = vmatprep.subr.bf16.mxu1 %v7577_v30  ;;  %v7602_v25 = vld [vmem:[#allocation7 + $0x880] ss:$16 sps:$4 sm:$0xff]   ;;  %v7610_v30 = vld [vmem:[#allocation7 + $0x864] ss:$16 sps:$4 sm:$0xff]  }
 0x1eb   :  { %5368 = vmatpush2.bf16.msra.mxu0 %v7572_v34  ;;  %5409 = vmatpush2.bf16.msra.mxu1 %v7575_v36  ;;  %v7608_v34 = vld [vmem:[#allocation7 + $0x860] ss:$16 sps:$4 sm:$0xff]  }
 0x1ec   :  { %5369 = vmatprep.subr.bf16.mxu0 %v7580_v37  ;;  %5410 = vmatprep.subr.bf16.mxu1 %v7583_v39  ;;  %v7611_v36 = vld [vmem:[#allocation7 + $0xa60] ss:$16 sps:$4 sm:$0xff]   ;;  %v7616_v37 = vld [vmem:[#allocation7 + $0x844] ss:$16 sps:$4 sm:$0xff]  }
 0x1ed   :  { %v7614_v39 = vld [vmem:[#allocation7 + $0x840] ss:$16 sps:$4 sm:$0xff]  }
 0x1ef   :  { %5370 = vmatpush2.bf16.msra.mxu0 %v7578_v41  ;;  %5411 = vmatpush2.bf16.msra.mxu1 %v7581_v1  ;;  %v7622_v41 = vld [vmem:[#allocation7 + $0x824] ss:$16 sps:$4 sm:$0xff]  }
 0x1f0   :  { %5421 = vmatprep.subr.bf16.mxu0 %v7586_v42  ;;  %5462 = vmatprep.subr.bf16.mxu1 %v7589_v5  ;;  %v7625_v1 = vld [vmem:[#allocation7 + $0xa24] ss:$16 sps:$4 sm:$0xff]   ;;  %v7620_v42 = vld [vmem:[#allocation7 + $0x820] ss:$16 sps:$4 sm:$0xff]  }
 0x1f1   :  { %v7628_v5 = vld [vmem:[#allocation7 + $0x804] ss:$16 sps:$4 sm:$0xff]  }
 0x1f2   :  { %v8611_v51 = vpop.f32.mrf.mxu0  ;;  %5372 = vmatmul.mubr.bf16.vlgmr.msra.gmra.mxu0 %v8603_v45  ;;  %v8616_v32 = vpop.f32.mrf.mxu1  ;;  %5413 = vmatmul.mubr.bf16.vlgmr.msra.gmra.mxu1 %v8607_v57 }
 0x1f3   :  { %5422 = vmatpush1.bf16.msra.mxu0 %v7584_v44  ;;  %5463 = vmatpush1.bf16.msra.mxu1 %v7587_v47  ;;  %v7626_v44 = vld [vmem:[#allocation7 + $0x800] ss:$16 sps:$4 sm:$0xff]  }
 0x1f4   :  { %v1971_v56 = vpop.f32.mrf.mxu0  ;;  %5423 = vmatprep.subr.bf16.mxu0 %v7592_v48  ;;  %v2012_v0 = vpop.f32.mrf.mxu1  ;;  %5464 = vmatprep.subr.bf16.mxu1 %v7595_v50  ;;  %v7629_v47 = vld [vmem:[#allocation7 + $0xa00] ss:$16 sps:$4 sm:$0xff]   ;;  %v7634_v48 = vld [vmem:[#allocation7 + $0x9e4] ss:$16 sps:$4 sm:$0xff]  }
 0x1f5   :  { %v1972_v63 = vadd.f32 %v1971_v56, %v450_v28  ;;  %v2013_v3 = vadd.f32 %v2012_v0, %v458_v53  ;;  %v7637_v28 = vld [vmem:[#allocation7 + $0xbe4] ss:$16 sps:$4 sm:$0xff]   ;;  %v7632_v50 = vld [vmem:[#allocation7 + $0x9e0] ss:$16 sps:$4 sm:$0xff]  }
 0x1f6   :  { %v1973_v4 = vpop.f32.mrf.mxu0  ;;  %v2014_v9 = vpop.f32.mrf.mxu1  ;;  %v7635_v53 = vld [vmem:[#allocation7 + $0xbe0] ss:$16 sps:$4 sm:$0xff]   ;;  %v7643_v56 = vld [vmem:[#allocation7 + $0xbc4] ss:$16 sps:$4 sm:$0xff]  }
 0x1f7   :  { %vm2108_vm8 = vcmp.gt.f32.partialorder %v1972_v63, 0.0  ;;  %v2124_v6 = vmul.f32 0.2, %v1972_v63  ;;  %5424 = vmatpush1.bf16.msra.mxu0 %v7590_v55  ;;  %vm2110_vm9 = vcmp.gt.f32.partialorder %v2013_v3, 0.0  ;;  %v2126_v11 = vmul.f32 0.2, %v2013_v3  ;;  %5465 = vmatpush1.bf16.msra.mxu1 %v7593_v59 }
 0x1f8   :  { %v1974_v13 = vpop.f32.mrf.mxu0  ;;  %5425 = vmatprep.subr.bf16.mxu0 %v7598_v62  ;;  %v2015_v21 = vpop.f32.mrf.mxu1  ;;  %5466 = vmatprep.subr.bf16.mxu1 %v7601_v2  ;;  %v7640_v55 = vld [vmem:[#allocation7 + $0x9c4] ss:$16 sps:$4 sm:$0xff]   ;;  %v7638_v59 = vld [vmem:[#allocation7 + $0x9c0] ss:$16 sps:$4 sm:$0xff]  }
 0x1f9   :  { %v2140_v16 = vsel %vm2108_vm8, %v1972_v63, %v2124_v6  ;;  %v2142_v19 = vsel %vm2110_vm9, %v2013_v3, %v2126_v11  ;;  %v7641_v62 = vld [vmem:[#allocation7 + $0xbc0] ss:$16 sps:$4 sm:$0xff]   ;;  %v7646_v63 = vld [vmem:[#allocation7 + $0x9a4] ss:$16 sps:$4 sm:$0xff]  }
 0x1fa   :  { %v8619_v18 = vpack.c.bf16 %v2140_v16, %v2140_v16  ;;  %v8621_v24 = vpack.c.bf16 %v2142_v19, %v2142_v19  ;;  %v7649_v0 = vld [vmem:[#allocation7 + $0xba4] ss:$16 sps:$4 sm:$0xff]   ;;  %v7644_v2 = vld [vmem:[#allocation7 + $0x9a0] ss:$16 sps:$4 sm:$0xff]  }
 0x1fb   :  { %5426 = vmatpush1.bf16.msra.mxu0 %v7596_v10  ;;  %5467 = vmatpush1.bf16.msra.mxu1 %v7599_v14  ;;  %v7647_v3 = vld [vmem:[#allocation7 + $0xba0] ss:$16 sps:$4 sm:$0xff]   ;;  %v7652_v4 = vld [vmem:[#allocation7 + $0x984] ss:$16 sps:$4 sm:$0xff]  }
 0x1fc   :  { %5453 = vmatprep.mubr.bf16.mxu0 %v8619_v18  ;;  %5494 = vmatprep.mubr.bf16.mxu1 %v8621_v24  ;;  %v7655_v6 = vld [vmem:[#allocation7 + $0xb84] ss:$16 sps:$4 sm:$0xff]   ;;  %v7650_v9 = vld [vmem:[#allocation7 + $0x980] ss:$16 sps:$4 sm:$0xff]  }
 0x1fd   :  { %5427 = vmatprep.subr.bf16.mxu0 %v7604_v17  ;;  %5468 = vmatprep.subr.bf16.mxu1 %v7607_v22  ;;  %v7653_v10 = vld [vmem:[#allocation7 + $0xb80] ss:$16 sps:$4 sm:$0xff]   ;;  %v7658_v11 = vld [vmem:[#allocation7 + $0x964] ss:$16 sps:$4 sm:$0xff]   ;;  %v446_v17 = vrot.slane %v8605_v46, %v8560_v27  ;;  %v454_v22 = vrot.slane %v8605_v46, %v8563_v31 }
 0x1fe   :  { %v7661_v13 = vld [vmem:[#allocation7 + $0xb64] ss:$16 sps:$4 sm:$0xff]   ;;  %v7656_v14 = vld [vmem:[#allocation7 + $0x960] ss:$16 sps:$4 sm:$0xff]  }
 0x1ff   :  { %5428 = vmatpush1.bf16.msra.mxu0 %v7602_v25  ;;  %5469 = vmatpush1.bf16.msra.mxu1 %v7605_v26  ;;  %v7659_v21 = vld [vmem:[#allocation7 + $0xb60] ss:$16 sps:$4 sm:$0xff]   ;;  %v7664_v16 = vld [vmem:[#allocation7 + $0x944] ss:$16 sps:$4 sm:$0xff]  }
 0x200   :  { %5429 = vmatprep.subr.bf16.mxu0 %v7610_v30  ;;  %5470 = vmatprep.subr.bf16.mxu1 %v7613_v33  ;;  %v7667_v19 = vld [vmem:[#allocation7 + $0xb44] ss:$16 sps:$4 sm:$0xff]   ;;  %v7662_v25 = vld [vmem:[#allocation7 + $0x940] ss:$16 sps:$4 sm:$0xff]   ;;  %v1970_v33 = vadd.f32 %v8611_v51, %v446_v17 }
 0x201   :  { %v7665_v26 = vld [vmem:[#allocation7 + $0xb40] ss:$16 sps:$4 sm:$0xff]   ;;  %v7670_v30 = vld [vmem:[#allocation7 + $0x924] ss:$16 sps:$4 sm:$0xff]  }
 0x202   :  { %vm2107_vm10 = vcmp.gt.f32.partialorder %v1970_v33, 0.0  ;;  %v7677_v51 = vld [vmem:[#allocation7 + $0xb00] ss:$16 sps:$4 sm:$0xff]  }
 0x203   :  { %5430 = vmatpush1.bf16.msra.mxu0 %v7608_v34  ;;  %5471 = vmatpush1.bf16.msra.mxu1 %v7611_v36  ;;  %v7673_v34 = vld [vmem:[#allocation7 + $0xb24] ss:$16 sps:$4 sm:$0xff]   ;;  %v2011_v36 = vadd.f32 %v8616_v32, %v454_v22 }
 0x204   :  { %5431 = vmatprep.subr.bf16.mxu0 %v7616_v37  ;;  %5472 = vmatprep.subr.bf16.mxu1 %v7619_v38  ;;  %v7668_v37 = vld [vmem:[#allocation7 + $0x920] ss:$16 sps:$4 sm:$0xff]   ;;  %v7685_v32 = vld [vmem:[#allocation7 + $0xee4] ss:$16 sps:$4 sm:$0xff]  }
 0x205   :  { %v7671_v38 = vld [vmem:[#allocation7 + $0xb20] ss:$16 sps:$4 sm:$0xff]   ;;  %vm2109_vm11 = vcmp.gt.f32.partialorder %v2011_v36, 0.0  ;;  %v7700_v22 = vld [vmem:[#allocation7 + $0xc84] ss:$16 sps:$4 sm:$0xff]  }
 0x207   :  { %5432 = vmatpush1.bf16.msra.mxu0 %v7614_v39  ;;  %5473 = vmatpush1.bf16.msra.mxu1 %v7617_v40  ;;  %v7676_v39 = vld [vmem:[#allocation7 + $0x904] ss:$16 sps:$4 sm:$0xff]   ;;  %v2123_v40 = vmul.f32 0.2, %v1970_v33 }
 0x208   :  { %5433 = vmatprep.subr.bf16.mxu0 %v7622_v41  ;;  %5474 = vmatprep.subr.bf16.mxu1 %v7625_v1  ;;  %v7679_v41 = vld [vmem:[#allocation7 + $0xb04] ss:$16 sps:$4 sm:$0xff]   ;;  %v2125_v1 = vmul.f32 0.2, %v2011_v36 }
 0x20b   :  { %5434 = vmatpush1.bf16.msra.mxu0 %v7620_v42  ;;  %5475 = vmatpush1.bf16.msra.mxu1 %v7623_v43  ;;  %v7674_v42 = vld [vmem:[#allocation7 + $0x900] ss:$16 sps:$4 sm:$0xff]   ;;  %v7682_v43 = vld [vmem:[#allocation7 + $0xce4] ss:$16 sps:$4 sm:$0xff]  }
 0x20c   :  { %5435 = vmatprep.subr.bf16.mxu0 %v7628_v5  ;;  %5476 = vmatprep.subr.bf16.mxu1 %v7631_v12  ;;  %v2139_v5 = vsel %vm2107_vm10, %v1970_v33, %v2123_v40  ;;  %v2141_v12 = vsel %vm2109_vm11, %v2011_v36, %v2125_v1  ;;  %v7701_v36 = vld [vmem:[#allocation7 + $0xe80] ss:$16 sps:$4 sm:$0xff]   ;;  %v7715_v1 = vld [vmem:[#allocation7 + $0xe44] ss:$16 sps:$4 sm:$0xff]  }
 0x20d   :  { %v7707_v40 = vld [vmem:[#allocation7 + $0xe60] ss:$16 sps:$4 sm:$0xff]  }
 0x20f   :  { %5436 = vmatpush1.bf16.msra.mxu0 %v7626_v44  ;;  %5477 = vmatpush1.bf16.msra.mxu1 %v7629_v47  ;;  %v7680_v44 = vld [vmem:[#allocation7 + $0xce0] ss:$16 sps:$4 sm:$0xff]   ;;  %v8631_v47 = vpack.c.bf16 %v2139_v5, %v2139_v5  ;;  %v7721_v5 = vld [vmem:[#allocation7 + $0xe24] ss:$16 sps:$4 sm:$0xff]  }
 0x210   :  { %5437 = vmatprep.subr.bf16.mxu0 %v7634_v48  ;;  %5478 = vmatprep.subr.bf16.mxu1 %v7637_v28  ;;  %v7683_v48 = vld [vmem:[#allocation7 + $0xee0] ss:$16 sps:$4 sm:$0xff]   ;;  %v7688_v28 = vld [vmem:[#allocation7 + $0xcc4] ss:$16 sps:$4 sm:$0xff]  }
 0x213   :  { %5438 = vmatpush2.bf16.msra.mxu0 %v7632_v50  ;;  %5479 = vmatpush2.bf16.msra.mxu1 %v7635_v53  ;;  %v8633_v50 = vpack.c.bf16 %v2141_v12, %v2141_v12  ;;  %v466_v53 = vrot.slane %v8605_v46, %v433_v54  ;;  %v7694_v54 = vld [vmem:[#allocation7 + $0xca4] ss:$16 sps:$4 sm:$0xff]   ;;  %v7719_v12 = vld [vmem:[#allocation7 + $0xe20] ss:$16 sps:$4 sm:$0xff]  }
 0x214   :  { %5439 = vmatprep.subr.bf16.mxu0 %v7640_v55  ;;  %5480 = vmatprep.subr.bf16.mxu1 %v7643_v56  ;;  %v7691_v55 = vld [vmem:[#allocation7 + $0xec4] ss:$16 sps:$4 sm:$0xff]  }
 0x217   :  { %5440 = vmatpush2.bf16.msra.mxu0 %v7638_v59  ;;  %5481 = vmatpush2.bf16.msra.mxu1 %v7641_v62  ;;  %v474_v59 = vrot.slane %v8605_v46, %v441_v58 }
 0x218   :  { %5441 = vmatprep.subr.bf16.mxu0 %v7646_v63  ;;  %5482 = vmatprep.subr.bf16.mxu1 %v7649_v0  ;;  %v7686_v63 = vld [vmem:[#allocation7 + $0xcc0] ss:$16 sps:$4 sm:$0xff]  }
 0x21b   :  { %5442 = vmatpush2.bf16.msra.mxu0 %v7644_v2  ;;  %5483 = vmatpush2.bf16.msra.mxu1 %v7647_v3  ;;  %v7689_v2 = vld [vmem:[#allocation7 + $0xec0] ss:$16 sps:$4 sm:$0xff]  }
 0x21c   :  { %5443 = vmatprep.subr.bf16.mxu0 %v7652_v4  ;;  %5484 = vmatprep.subr.bf16.mxu1 %v7655_v6  ;;  %v7697_v6 = vld [vmem:[#allocation7 + $0xea4] ss:$16 sps:$4 sm:$0xff]  }
 0x21f   :  { %5444 = vmatpush2.bf16.msra.mxu0 %v7650_v9  ;;  %5485 = vmatpush2.bf16.msra.mxu1 %v7653_v10 }
 0x220   :  { %5445 = vmatprep.subr.bf16.mxu0 %v7658_v11  ;;  %5486 = vmatprep.subr.bf16.mxu1 %v7661_v13  ;;  %v7692_v13 = vld [vmem:[#allocation7 + $0xca0] ss:$16 sps:$4 sm:$0xff]  }
 0x223   :  { %5446 = vmatpush2.bf16.msra.mxu0 %v7656_v14  ;;  %5487 = vmatpush2.bf16.msra.mxu1 %v7659_v21 }
 0x224   :  { %5447 = vmatprep.subr.bf16.mxu0 %v7664_v16  ;;  %5488 = vmatprep.subr.bf16.mxu1 %v7667_v19  ;;  %v7695_v16 = vld [vmem:[#allocation7 + $0xea0] ss:$16 sps:$4 sm:$0xff]  }
 0x227   :  { %5448 = vmatpush2.bf16.msra.mxu0 %v7662_v25  ;;  %5489 = vmatpush2.bf16.msra.mxu1 %v7665_v26 }
 0x228   :  { %5449 = vmatprep.subr.bf16.mxu0 %v7670_v30  ;;  %5490 = vmatprep.subr.bf16.mxu1 %v7673_v34  ;;  %v7703_v30 = vld [vmem:[#allocation7 + $0xe84] ss:$16 sps:$4 sm:$0xff]   ;;  %v7698_v34 = vld [vmem:[#allocation7 + $0xc80] ss:$16 sps:$4 sm:$0xff]  }
 0x22b   :  { %5450 = vmatpush2.bf16.msra.mxu0 %v7668_v37  ;;  %5491 = vmatpush2.bf16.msra.mxu1 %v7671_v38  ;;  %v7706_v37 = vld [vmem:[#allocation7 + $0xc64] ss:$16 sps:$4 sm:$0xff]  }
 0x22c   :  { %5451 = vmatprep.subr.bf16.mxu0 %v7676_v39  ;;  %5492 = vmatprep.subr.bf16.mxu1 %v7679_v41  ;;  %v7709_v38 = vld [vmem:[#allocation7 + $0xe64] ss:$16 sps:$4 sm:$0xff]   ;;  %v7704_v39 = vld [vmem:[#allocation7 + $0xc60] ss:$16 sps:$4 sm:$0xff]  }
 0x22d   :  { %v7712_v41 = vld [vmem:[#allocation7 + $0xc44] ss:$16 sps:$4 sm:$0xff]  }
 0x22f   :  { %5452 = vmatpush2.bf16.msra.mxu0 %v7674_v42  ;;  %5493 = vmatpush2.bf16.msra.mxu1 %v7677_v51  ;;  %v7710_v42 = vld [vmem:[#allocation7 + $0xc40] ss:$16 sps:$4 sm:$0xff]  }
 0x230   :  { %5503 = vmatprep.subr.bf16.mxu0 %v7682_v43  ;;  %5544 = vmatprep.subr.bf16.mxu1 %v7685_v32  ;;  %v7713_v51 = vld [vmem:[#allocation7 + $0xe40] ss:$16 sps:$4 sm:$0xff]   ;;  %v7718_v43 = vld [vmem:[#allocation7 + $0xc24] ss:$16 sps:$4 sm:$0xff]  }
 0x231   :  { %v7716_v32 = vld [vmem:[#allocation7 + $0xc20] ss:$16 sps:$4 sm:$0xff]  }
 0x232   :  { %v8638_v56 = vpop.f32.mrf.mxu0  ;;  %5454 = vmatmul.mubr.bf16.vlgmr.msra.gmra.mxu0 %v8631_v47  ;;  %v8644_v62 = vpop.f32.mrf.mxu1  ;;  %5495 = vmatmul.mubr.bf16.vlgmr.msra.gmra.mxu1 %v8633_v50 }
 0x233   :  { %5504 = vmatpush1.bf16.msra.mxu0 %v7680_v44  ;;  %5545 = vmatpush1.bf16.msra.mxu1 %v7683_v48  ;;  %v7724_v44 = vld [vmem:[#allocation7 + $0xc04] ss:$16 sps:$4 sm:$0xff]  }
 0x234   :  { %v2053_v0 = vpop.f32.mrf.mxu0  ;;  %5505 = vmatprep.subr.bf16.mxu0 %v7688_v28  ;;  %v2094_v4 = vpop.f32.mrf.mxu1  ;;  %5546 = vmatprep.subr.bf16.mxu1 %v7691_v55  ;;  %v7727_v48 = vld [vmem:[#allocation7 + $0xe04] ss:$16 sps:$4 sm:$0xff]   ;;  %v7722_v28 = vld [vmem:[#allocation7 + $0xc00] ss:$16 sps:$4 sm:$0xff]  }
 0x235   :  { %v2054_v3 = vadd.f32 %v2053_v0, %v466_v53  ;;  %v2095_v9 = vadd.f32 %v2094_v4, %v474_v59  ;;  %v7725_v53 = vld [vmem:[#allocation7 + $0xe00] ss:$16 sps:$4 sm:$0xff]   ;;  %v7730_v55 = vld [vmem:[#allocation7 + $0xde4] ss:$16 sps:$4 sm:$0xff]  }
 0x236   :  { %v2055_v10 = vpop.f32.mrf.mxu0  ;;  %v2096_v58 = vpop.f32.mrf.mxu1  ;;  %v7733_v59 = vld [vmem:[#allocation7 + $0xfe4] ss:$16 sps:$4 sm:$0xff]   ;;  %v7731_v0 = vld [vmem:[#allocation7 + $0xfe0] ss:$16 sps:$4 sm:$0xff]  }
 0x237   :  { %vm2112_vm12 = vcmp.gt.f32.partialorder %v2054_v3, 0.0  ;;  %v2128_v11 = vmul.f32 0.2, %v2054_v3  ;;  %5506 = vmatpush1.bf16.msra.mxu0 %v7686_v63  ;;  %vm2114_vm13 = vcmp.gt.f32.partialorder %v2095_v9, 0.0  ;;  %v2130_v14 = vmul.f32 0.2, %v2095_v9  ;;  %5547 = vmatpush1.bf16.msra.mxu1 %v7689_v2 }
 0x238   :  { %v2056_v21 = vpop.f32.mrf.mxu0  ;;  %5507 = vmatprep.subr.bf16.mxu0 %v7694_v54  ;;  %v2097_v17 = vpop.f32.mrf.mxu1  ;;  %5548 = vmatprep.subr.bf16.mxu1 %v7697_v6  ;;  %v7728_v63 = vld [vmem:[#allocation7 + $0xde0] ss:$16 sps:$4 sm:$0xff]   ;;  %v7736_v2 = vld [vmem:[#allocation7 + $0xdc4] ss:$16 sps:$4 sm:$0xff]  }
 0x239   :  { %v2144_v19 = vsel %vm2112_vm12, %v2054_v3, %v2128_v11  ;;  %v2146_v26 = vsel %vm2114_vm13, %v2095_v9, %v2130_v14  ;;  %v7739_v54 = vld [vmem:[#allocation7 + $0xfc4] ss:$16 sps:$4 sm:$0xff]   ;;  %v7734_v3 = vld [vmem:[#allocation7 + $0xdc0] ss:$16 sps:$4 sm:$0xff]  }
 0x23a   :  { %v8647_v25 = vpack.c.bf16 %v2144_v19, %v2144_v19  ;;  %v8649_v33 = vpack.c.bf16 %v2146_v26, %v2146_v26  ;;  %v7737_v4 = vld [vmem:[#allocation7 + $0xfc0] ss:$16 sps:$4 sm:$0xff]   ;;  %v7742_v6 = vld [vmem:[#allocation7 + $0xda4] ss:$16 sps:$4 sm:$0xff]  }
 0x23b   :  { %5508 = vmatpush1.bf16.msra.mxu0 %v7692_v13  ;;  %5549 = vmatpush1.bf16.msra.mxu1 %v7695_v16  ;;  %v7745_v9 = vld [vmem:[#allocation7 + $0xfa4] ss:$16 sps:$4 sm:$0xff]   ;;  %v7740_v10 = vld [vmem:[#allocation7 + $0xda0] ss:$16 sps:$4 sm:$0xff]  }
 0x23c   :  { %5535 = vmatprep.mubr.bf16.mxu0 %v8647_v25  ;;  %5576 = vmatprep.mubr.bf16.mxu1 %v8649_v33  ;;  %v7743_v11 = vld [vmem:[#allocation7 + $0xfa0] ss:$16 sps:$4 sm:$0xff]   ;;  %v7748_v58 = vld [vmem:[#allocation7 + $0xd84] ss:$16 sps:$4 sm:$0xff]  }
 0x23d   :  { %5509 = vmatprep.subr.bf16.mxu0 %v7700_v22  ;;  %5550 = vmatprep.subr.bf16.mxu1 %v7703_v30  ;;  %v7751_v13 = vld [vmem:[#allocation7 + $0xf84] ss:$16 sps:$4 sm:$0xff]   ;;  %v7746_v14 = vld [vmem:[#allocation7 + $0xd80] ss:$16 sps:$4 sm:$0xff]   ;;  %v462_v30 = vrot.slane %v8605_v46, %v429_v7 }
 0x23e   :  { %v7749_v21 = vld [vmem:[#allocation7 + $0xf80] ss:$16 sps:$4 sm:$0xff]   ;;  %v7754_v16 = vld [vmem:[#allocation7 + $0xd64] ss:$16 sps:$4 sm:$0xff]  }
 0x23f   :  { %5510 = vmatpush1.bf16.msra.mxu0 %v7698_v34  ;;  %5551 = vmatpush1.bf16.msra.mxu1 %v7701_v36  ;;  %v7757_v17 = vld [vmem:[#allocation7 + $0xf64] ss:$16 sps:$4 sm:$0xff]   ;;  %v7752_v19 = vld [vmem:[#allocation7 + $0xd60] ss:$16 sps:$4 sm:$0xff]   ;;  %v470_v36 = vrot.slane %v8605_v46, %v437_v8 }
 0x240   :  { %5511 = vmatprep.subr.bf16.mxu0 %v7706_v37  ;;  %5552 = vmatprep.subr.bf16.mxu1 %v7709_v38  ;;  %v7755_v22 = vld [vmem:[#allocation7 + $0xf60] ss:$16 sps:$4 sm:$0xff]   ;;  %v7760_v26 = vld [vmem:[#allocation7 + $0xd44] ss:$16 sps:$4 sm:$0xff]  }
 0x241   :  { %v7763_v34 = vld [vmem:[#allocation7 + $0xf44] ss:$16 sps:$4 sm:$0xff]   ;;  %v7758_v37 = vld [vmem:[#allocation7 + $0xd40] ss:$16 sps:$4 sm:$0xff]  }
 0x242   :  { %v7761_v38 = vld [vmem:[#allocation7 + $0xf40] ss:$16 sps:$4 sm:$0xff]   ;;  %v7775_v8 = vld [vmem:[#allocation7 + $0xf04] ss:$16 sps:$4 sm:$0xff]  }
 0x243   :  { %5512 = vmatpush1.bf16.msra.mxu0 %v7704_v39  ;;  %5553 = vmatpush1.bf16.msra.mxu1 %v7707_v40  ;;  %v7766_v39 = vld [vmem:[#allocation7 + $0xd24] ss:$16 sps:$4 sm:$0xff]   ;;  %v2052_v40 = vadd.f32 %v8638_v56, %v462_v30  ;;  %v7764_v7 = vld [vmem:[#allocation7 + $0xd20] ss:$16 sps:$4 sm:$0xff]   ;;  %v7796_v30 = vld [vmem:[#allocation7 + $0x8c] ss:$16 sps:$4 sm:$0xff]  }
 0x244   :  { %5513 = vmatprep.subr.bf16.mxu0 %v7712_v41  ;;  %5554 = vmatprep.subr.bf16.mxu1 %v7715_v1  ;;  %v7769_v41 = vld [vmem:[#allocation7 + $0xf24] ss:$16 sps:$4 sm:$0xff]   ;;  %v2093_v1 = vadd.f32 %v8644_v62, %v470_v36  ;;  %v7799_v36 = vld [vmem:[#allocation7 + $0x28c] ss:$16 sps:$4 sm:$0xff]  }
 0x245   :  { %vm2111_vm14 = vcmp.gt.f32.partialorder %v2052_v40, 0.0  ;;  %v2675_v56 = vld [vmem:[#allocation13] ss:$4 sm:$0xf] }
 0x246   :  { %v2129_v46 = vmul.f32 0.2, %v2093_v1  ;;  %vm2113_vm15 = vcmp.gt.f32.partialorder %v2093_v1, 0.0 }
 0x247   :  { %5514 = vmatpush1.bf16.msra.mxu0 %v7710_v42  ;;  %5555 = vmatpush1.bf16.msra.mxu1 %v7713_v51  ;;  %v7767_v42 = vld [vmem:[#allocation7 + $0xf20] ss:$16 sps:$4 sm:$0xff]   ;;  %v2127_v51 = vmul.f32 0.2, %v2052_v40 }
 0x248   :  { %5515 = vmatprep.subr.bf16.mxu0 %v7718_v43  ;;  %5556 = vmatprep.subr.bf16.mxu1 %v7721_v5  ;;  %v7770_v43 = vld [vmem:[#allocation7 + $0xd00] ss:$16 sps:$4 sm:$0xff]  }
 0x249   :  { %v7773_v5 = vld [vmem:[#allocation7 + $0xf00] ss:$16 sps:$4 sm:$0xff]   ;;  %v2143_v62 = vsel %vm2111_vm14, %v2052_v40, %v2127_v51  ;;  %v7800_v40 = vld [vmem:[#allocation7 + $0x68] ss:$16 sps:$4 sm:$0xff]   ;;  %v7814_v51 = vld [vmem:[#allocation7 + $0x2c] ss:$16 sps:$4 sm:$0xff]  }
 0x24b   :  { %5516 = vmatpush1.bf16.msra.mxu0 %v7716_v32  ;;  %5557 = vmatpush1.bf16.msra.mxu1 %v7719_v12  ;;  %v7778_v32 = vld [vmem:[#allocation7 + $0xec] ss:$16 sps:$4 sm:$0xff]  }
 0x24c   :  { %5517 = vmatprep.subr.bf16.mxu0 %v7724_v44  ;;  %5558 = vmatprep.subr.bf16.mxu1 %v7727_v48  ;;  %v7781_v12 = vld [vmem:[#allocation7 + $0x2ec] ss:$16 sps:$4 sm:$0xff]   ;;  %v2145_v44 = vsel %vm2113_vm15, %v2093_v1, %v2129_v46  ;;  %v2680_v48 = vrot.slane %v2675_v56, %v8560_v27  ;;  %v7812_v46 = vld [vmem:[#allocation7 + $0x28] ss:$16 sps:$4 sm:$0xff]  }
 0x24d   :  { %v7808_v1 = vld [vmem:[#allocation7 + $0x4c] ss:$16 sps:$4 sm:$0xff]  }
 0x24f   :  { %5518 = vmatpush1.bf16.msra.mxu0 %v7722_v28  ;;  %5559 = vmatpush1.bf16.msra.mxu1 %v7725_v53  ;;  %v7776_v28 = vld [vmem:[#allocation7 + $0xe8] ss:$16 sps:$4 sm:$0xff]   ;;  %v8662_v53 = vpack.c.bf16 %v2143_v62, %v2143_v62 }
 0x250   :  { %5519 = vmatprep.subr.bf16.mxu0 %v7730_v55  ;;  %5560 = vmatprep.subr.bf16.mxu1 %v7733_v59  ;;  %v7779_v55 = vld [vmem:[#allocation7 + $0x2e8] ss:$16 sps:$4 sm:$0xff]   ;;  %v8664_v59 = vpack.c.bf16 %v2145_v44, %v2145_v44  ;;  %v7829_v44 = vld [vmem:[#allocation7 + $0x3ec] ss:$16 sps:$4 sm:$0xff]  }
 0x251   :  { %v7821_v62 = vld [vmem:[#allocation7 + $0x208] ss:$16 sps:$4 sm:$0xff]  }
 0x253   :  { %5520 = vmatpush2.bf16.msra.mxu0 %v7728_v63  ;;  %5561 = vmatpush2.bf16.msra.mxu1 %v7731_v0  ;;  %v2684_v63 = vrot.slane %v2675_v56, %v8536_v20  ;;  %v7784_v0 = vld [vmem:[#allocation7 + $0xcc] ss:$16 sps:$4 sm:$0xff]  }
 0x254   :  { %5521 = vmatprep.subr.bf16.mxu0 %v7736_v2  ;;  %5562 = vmatprep.subr.bf16.mxu1 %v7739_v54  ;;  %v7787_v54 = vld [vmem:[#allocation7 + $0x2cc] ss:$16 sps:$4 sm:$0xff]  }
 0x255   :  { %v7823_v56 = vld [vmem:[#allocation7 + $0x20c] ss:$16 sps:$4 sm:$0xff]  }
 0x257   :  { %5522 = vmatpush2.bf16.msra.mxu0 %v7734_v3  ;;  %5563 = vmatpush2.bf16.msra.mxu1 %v7737_v4 }
 0x258   :  { %5523 = vmatprep.subr.bf16.mxu0 %v7742_v6  ;;  %5564 = vmatprep.subr.bf16.mxu1 %v7745_v9  ;;  %v7782_v6 = vld [vmem:[#allocation7 + $0xc8] ss:$16 sps:$4 sm:$0xff]  }
 0x25b   :  { %5524 = vmatpush2.bf16.msra.mxu0 %v7740_v10  ;;  %5565 = vmatpush2.bf16.msra.mxu1 %v7743_v11  ;;  %v7785_v10 = vld [vmem:[#allocation7 + $0x2c8] ss:$16 sps:$4 sm:$0xff]   ;;  %v7790_v11 = vld [vmem:[#allocation7 + $0xac] ss:$16 sps:$4 sm:$0xff]  }
 0x25c   :  { %5525 = vmatprep.subr.bf16.mxu0 %v7748_v58  ;;  %5566 = vmatprep.subr.bf16.mxu1 %v7751_v13 }
 0x25f   :  { %5526 = vmatpush2.bf16.msra.mxu0 %v7746_v14  ;;  %5567 = vmatpush2.bf16.msra.mxu1 %v7749_v21  ;;  %v7793_v21 = vld [vmem:[#allocation7 + $0x2ac] ss:$16 sps:$4 sm:$0xff]  }
 0x260   :  { %5527 = vmatprep.subr.bf16.mxu0 %v7754_v16  ;;  %5568 = vmatprep.subr.bf16.mxu1 %v7757_v17 }
 0x263   :  { %5528 = vmatpush2.bf16.msra.mxu0 %v7752_v19  ;;  %5569 = vmatpush2.bf16.msra.mxu1 %v7755_v22  ;;  %v7788_v22 = vld [vmem:[#allocation7 + $0xa8] ss:$16 sps:$4 sm:$0xff]  }
 0x264   :  { %5529 = vmatprep.subr.bf16.mxu0 %v7760_v26  ;;  %5570 = vmatprep.subr.bf16.mxu1 %v7763_v34  ;;  %v7791_v26 = vld [vmem:[#allocation7 + $0x2a8] ss:$16 sps:$4 sm:$0xff]  }
 0x267   :  { %5530 = vmatpush2.bf16.msra.mxu0 %v7758_v37  ;;  %5571 = vmatpush2.bf16.msra.mxu1 %v7761_v38  ;;  %v7797_v37 = vld [vmem:[#allocation7 + $0x288] ss:$16 sps:$4 sm:$0xff]   ;;  %v7802_v38 = vld [vmem:[#allocation7 + $0x6c] ss:$16 sps:$4 sm:$0xff]  }
 0x268   :  { %5531 = vmatprep.subr.bf16.mxu0 %v7766_v39  ;;  %5572 = vmatprep.subr.bf16.mxu1 %v7769_v41  ;;  %v7805_v39 = vld [vmem:[#allocation7 + $0x26c] ss:$16 sps:$4 sm:$0xff]   ;;  %v7803_v41 = vld [vmem:[#allocation7 + $0x268] ss:$16 sps:$4 sm:$0xff]  }
 0x26b   :  { %5532 = vmatpush2.bf16.msra.mxu0 %v7764_v7  ;;  %5573 = vmatpush2.bf16.msra.mxu1 %v7767_v42  ;;  %v7811_v7 = vld [vmem:[#allocation7 + $0x24c] ss:$16 sps:$4 sm:$0xff]   ;;  %v7806_v42 = vld [vmem:[#allocation7 + $0x48] ss:$16 sps:$4 sm:$0xff]  }
 0x26c   :  { %5533 = vmatprep.subr.bf16.mxu0 %v7772_v15  ;;  %5574 = vmatprep.subr.bf16.mxu1 %v7775_v8  ;;  %v7809_v15 = vld [vmem:[#allocation7 + $0x248] ss:$16 sps:$4 sm:$0xff]   ;;  %v7817_v8 = vld [vmem:[#allocation7 + $0x22c] ss:$16 sps:$4 sm:$0xff]  }
 0x26f   :  { %5534 = vmatpush2.bf16.msra.mxu0 %v7770_v43  ;;  %5575 = vmatpush2.bf16.msra.mxu1 %v7773_v5  ;;  %v7815_v43 = vld [vmem:[#allocation7 + $0x228] ss:$16 sps:$4 sm:$0xff]   ;;  %v7820_v5 = vld [vmem:[#allocation7 + $0xc] ss:$16 sps:$4 sm:$0xff]  }
 0x270   :  { %5585 = vmatprep.subr.bf16.mxu0 %v7778_v32  ;;  %5626 = vmatprep.subr.bf16.mxu1 %v7781_v12  ;;  %v7818_v32 = vld [vmem:[#allocation7 + $0x8] ss:$16 sps:$4 sm:$0xff]   ;;  %v7826_v12 = vld [vmem:[#allocation7 + $0x1ec] ss:$16 sps:$4 sm:$0xff]  }
 0x272   :  { %v5291_v2 = vpop.f32.mrf.mxu0  ;;  %5536 = vmatmul.mubr.bf16.vlgmr.msra.gmra.mxu0 %v8662_v53  ;;  %v5332_v4 = vpop.f32.mrf.mxu1  ;;  %5577 = vmatmul.mubr.bf16.vlgmr.msra.gmra.mxu1 %v8664_v59 }
 0x273   :  { %v5292_v3 = vadd.f32 %v5291_v2, %v2680_v48  ;;  %5586 = vmatpush1.bf16.msra.mxu0 %v7776_v28  ;;  %5617 = vmatprep.mubr.bf16.mxu0 %v8553_v49  ;;  %v7824_v48 = vld [vmem:[#allocation7 + $0x1e8] ss:$16 sps:$4 sm:$0xff]  }
 0x274   :  { %5627 = vmatpush1.bf16.msra.mxu1 %v7779_v55  ;;  %v5293_v9 = vpop.f32.mrf.mxu0  ;;  %5658 = vmatprep.mubr.bf16.mxu1 %v8555_v52  ;;  %v5334_v14 = vpop.f32.mrf.mxu1  ;;  %v7794_v52 = vld [vmem:[#allocation7 + $0x88] ss:$16 sps:$4 sm:$0xff]   ;;  %v7832_v55 = vld [vmem:[#allocation7 + $0x1cc] ss:$16 sps:$4 sm:$0xff]  }
 0x275   :  { %v8670_v58 = vadd.f32 %v5332_v4, %v5292_v3  ;;  %v5294_v13 = vadd.f32 %v5293_v9, %v2684_v63  ;;  %5587 = vmatprep.subr.bf16.mxu0 %v7784_v0  ;;  %5628 = vmatprep.subr.bf16.mxu1 %v7787_v54  ;;  %v7827_v28 = vld [vmem:[#allocation7 + $0x3e8] ss:$16 sps:$4 sm:$0xff]   ;;  %v7835_v63 = vld [vmem:[#allocation7 + $0x3cc] ss:$16 sps:$4 sm:$0xff]  }
 0x276   :  { %v5295_v16 = vpop.f32.mrf.mxu0  ;;  %v5336_v19 = vpop.f32.mrf.mxu1  ;;  %v7830_v0 = vld [vmem:[#allocation7 + $0x1c8] ss:$16 sps:$4 sm:$0xff]   ;;  %v7838_v54 = vld [vmem:[#allocation7 + $0x1ac] ss:$16 sps:$4 sm:$0xff]  }
 0x277   :  { %v8673_v17 = vadd.f32 %v5334_v14, %v5294_v13  ;;  %5588 = vmatpush1.bf16.msra.mxu0 %v7782_v6  ;;  %v7833_v2 = vld [vmem:[#allocation7 + $0x3c8] ss:$16 sps:$4 sm:$0xff]   ;;  %v7841_v3 = vld [vmem:[#allocation7 + $0x3ac] ss:$16 sps:$4 sm:$0xff]  }
 0x278   :  { %5629 = vmatpush1.bf16.msra.mxu1 %v7785_v10  ;;  %v5296_v49 = vpop.f32.mrf.mxu0  ;;  %5589 = vmatprep.subr.bf16.mxu0 %v7790_v11  ;;  %v5337_v34 = vpop.f32.mrf.mxu1  ;;  %v7836_v4 = vld [vmem:[#allocation7 + $0x1a8] ss:$16 sps:$4 sm:$0xff]   ;;  %v7844_v9 = vld [vmem:[#allocation7 + $0x18c] ss:$16 sps:$4 sm:$0xff]  }
 0x279   :  { %5630 = vmatprep.subr.bf16.mxu1 %v7793_v21  ;;  %v7839_v6 = vld [vmem:[#allocation7 + $0x3a8] ss:$16 sps:$4 sm:$0xff]   ;;  %v7847_v10 = vld [vmem:[#allocation7 + $0x38c] ss:$16 sps:$4 sm:$0xff]  }
 0x27a   :  { %v7842_v11 = vld [vmem:[#allocation7 + $0x188] ss:$16 sps:$4 sm:$0xff]   ;;  %v7850_v14 = vld [vmem:[#allocation7 + $0x16c] ss:$16 sps:$4 sm:$0xff]  }
 0x27b   :  { %5590 = vmatpush1.bf16.msra.mxu0 %v7788_v22  ;;  %v7845_v13 = vld [vmem:[#allocation7 + $0x388] ss:$16 sps:$4 sm:$0xff]   ;;  %v7853_v21 = vld [vmem:[#allocation7 + $0x36c] ss:$16 sps:$4 sm:$0xff]  }
 0x27c   :  { %5631 = vmatpush1.bf16.msra.mxu1 %v7791_v26  ;;  %5591 = vmatprep.subr.bf16.mxu0 %v7796_v30  ;;  %v7848_v16 = vld [vmem:[#allocation7 + $0x168] ss:$16 sps:$4 sm:$0xff]   ;;  %v7856_v22 = vld [vmem:[#allocation7 + $0x14c] ss:$16 sps:$4 sm:$0xff]  }
 0x27d   :  { %5632 = vmatprep.subr.bf16.mxu1 %v7799_v36  ;;  %v7851_v19 = vld [vmem:[#allocation7 + $0x368] ss:$16 sps:$4 sm:$0xff]   ;;  %v7859_v49 = vld [vmem:[#allocation7 + $0x34c] ss:$16 sps:$4 sm:$0xff]  }
 0x27e   :  { %v7854_v26 = vld [vmem:[#allocation7 + $0x148] ss:$16 sps:$4 sm:$0xff]   ;;  %v7862_v34 = vld [vmem:[#allocation7 + $0x12c] ss:$16 sps:$4 sm:$0xff]  }
 0x27f   :  { %5592 = vmatpush1.bf16.msra.mxu0 %v7794_v52  ;;  %v7857_v30 = vld [vmem:[#allocation7 + $0x348] ss:$16 sps:$4 sm:$0xff]   ;;  %v7865_v36 = vld [vmem:[#allocation7 + $0x32c] ss:$16 sps:$4 sm:$0xff]  }
 0x280   :  { %5633 = vmatpush1.bf16.msra.mxu1 %v7797_v37  ;;  %5593 = vmatprep.subr.bf16.mxu0 %v7802_v38  ;;  %v7860_v52 = vld [vmem:[#allocation7 + $0x128] ss:$16 sps:$4 sm:$0xff]   ;;  %v7868_v38 = vld [vmem:[#allocation7 + $0x10c] ss:$16 sps:$4 sm:$0xff]  }
 0x281   :  { %5634 = vmatprep.subr.bf16.mxu1 %v7805_v39  ;;  %v7863_v37 = vld [vmem:[#allocation7 + $0x328] ss:$16 sps:$4 sm:$0xff]   ;;  %v7871_v39 = vld [vmem:[#allocation7 + $0x30c] ss:$16 sps:$4 sm:$0xff]  }
 0x283   :  { %5594 = vmatpush1.bf16.msra.mxu0 %v7800_v40  ;;  %v7866_v40 = vld [vmem:[#allocation7 + $0x108] ss:$16 sps:$4 sm:$0xff]  }
 0x284   :  { %5635 = vmatpush1.bf16.msra.mxu1 %v7803_v41  ;;  %5595 = vmatprep.subr.bf16.mxu0 %v7808_v1  ;;  %v7869_v41 = vld [vmem:[#allocation7 + $0x308] ss:$16 sps:$4 sm:$0xff]   ;;  %v7874_v1 = vld [vmem:[#allocation7 + $0x4ec] ss:$16 sps:$4 sm:$0xff]  }
 0x285   :  { %5636 = vmatprep.subr.bf16.mxu1 %v7811_v7  ;;  %v7877_v7 = vld [vmem:[#allocation7 + $0x6ec] ss:$16 sps:$4 sm:$0xff]  }
 0x287   :  { %5596 = vmatpush1.bf16.msra.mxu0 %v7806_v42  ;;  %v7872_v42 = vld [vmem:[#allocation7 + $0x4e8] ss:$16 sps:$4 sm:$0xff]  }
 0x288   :  { %5637 = vmatpush1.bf16.msra.mxu1 %v7809_v15  ;;  %5597 = vmatprep.subr.bf16.mxu0 %v7814_v51  ;;  %v7875_v15 = vld [vmem:[#allocation7 + $0x6e8] ss:$16 sps:$4 sm:$0xff]   ;;  %v7880_v51 = vld [vmem:[#allocation7 + $0x4cc] ss:$16 sps:$4 sm:$0xff]  }
 0x289   :  { %5638 = vmatprep.subr.bf16.mxu1 %v7817_v8 }
 0x28b   :  { %5598 = vmatpush1.bf16.msra.mxu0 %v7812_v46  ;;  %v7883_v46 = vld [vmem:[#allocation7 + $0x6cc] ss:$16 sps:$4 sm:$0xff]  }
 0x28c   :  { %5639 = vmatpush1.bf16.msra.mxu1 %v7815_v43  ;;  %5599 = vmatprep.subr.bf16.mxu0 %v7820_v5 }
 0x28d   :  { %5640 = vmatprep.subr.bf16.mxu1 %v7823_v56  ;;  %v7878_v56 = vld [vmem:[#allocation7 + $0x4c8] ss:$16 sps:$4 sm:$0xff]  }
 0x28f   :  { %5600 = vmatpush1.bf16.msra.mxu0 %v7818_v32 }
 0x290   :  { %5641 = vmatpush1.bf16.msra.mxu1 %v7821_v62  ;;  %5601 = vmatprep.subr.bf16.mxu0 %v7826_v12  ;;  %v7881_v62 = vld [vmem:[#allocation7 + $0x6c8] ss:$16 sps:$4 sm:$0xff]   ;;  %v7886_v12 = vld [vmem:[#allocation7 + $0x4ac] ss:$16 sps:$4 sm:$0xff]  }
 0x291   :  { %5642 = vmatprep.subr.bf16.mxu1 %v7829_v44 }
 0x293   :  { %5602 = vmatpush2.bf16.msra.mxu0 %v7824_v48 }
 0x294   :  { %5643 = vmatpush2.bf16.msra.mxu1 %v7827_v28  ;;  %5603 = vmatprep.subr.bf16.mxu0 %v7832_v55 }
 0x295   :  { %5644 = vmatprep.subr.bf16.mxu1 %v7835_v63 }
 0x297   :  { %5604 = vmatpush2.bf16.msra.mxu0 %v7830_v0  ;;  %v7887_v0 = vld [vmem:[#allocation7 + $0x6a8] ss:$16 sps:$4 sm:$0xff]  }
 0x298   :  { %5645 = vmatpush2.bf16.msra.mxu1 %v7833_v2  ;;  %5605 = vmatprep.subr.bf16.mxu0 %v7838_v54  ;;  %v7892_v2 = vld [vmem:[#allocation7 + $0x48c] ss:$16 sps:$4 sm:$0xff]  }
 0x299   :  { %5646 = vmatprep.subr.bf16.mxu1 %v7841_v3  ;;  %v7893_v3 = vld [vmem:[#allocation7 + $0x688] ss:$16 sps:$4 sm:$0xff]  }
 0x29b   :  { %5606 = vmatpush2.bf16.msra.mxu0 %v7836_v4  ;;  %v7898_v4 = vld [vmem:[#allocation7 + $0x46c] ss:$16 sps:$4 sm:$0xff]  }
 0x29c   :  { %5647 = vmatpush2.bf16.msra.mxu1 %v7839_v6  ;;  %5607 = vmatprep.subr.bf16.mxu0 %v7844_v9  ;;  %v7901_v6 = vld [vmem:[#allocation7 + $0x66c] ss:$16 sps:$4 sm:$0xff]   ;;  %v7896_v9 = vld [vmem:[#allocation7 + $0x468] ss:$16 sps:$4 sm:$0xff]  }
 0x29d   :  { %5648 = vmatprep.subr.bf16.mxu1 %v7847_v10  ;;  %v7899_v10 = vld [vmem:[#allocation7 + $0x668] ss:$16 sps:$4 sm:$0xff]  }
 0x29f   :  { %5608 = vmatpush2.bf16.msra.mxu0 %v7842_v11  ;;  %v7904_v11 = vld [vmem:[#allocation7 + $0x44c] ss:$16 sps:$4 sm:$0xff]  }
 0x2a0   :  { %5649 = vmatpush2.bf16.msra.mxu1 %v7845_v13  ;;  %5609 = vmatprep.subr.bf16.mxu0 %v7850_v14  ;;  %v7907_v13 = vld [vmem:[#allocation7 + $0x64c] ss:$16 sps:$4 sm:$0xff]   ;;  %v7902_v14 = vld [vmem:[#allocation7 + $0x448] ss:$16 sps:$4 sm:$0xff]  }
 0x2a1   :  { %5650 = vmatprep.subr.bf16.mxu1 %v7853_v21  ;;  %v7905_v21 = vld [vmem:[#allocation7 + $0x648] ss:$16 sps:$4 sm:$0xff]  }
 0x2a3   :  { %5610 = vmatpush2.bf16.msra.mxu0 %v7848_v16  ;;  %v7910_v16 = vld [vmem:[#allocation7 + $0x42c] ss:$16 sps:$4 sm:$0xff]  }
 0x2a4   :  { %5651 = vmatpush2.bf16.msra.mxu1 %v7851_v19  ;;  %5611 = vmatprep.subr.bf16.mxu0 %v7856_v22  ;;  %v7913_v19 = vld [vmem:[#allocation7 + $0x62c] ss:$16 sps:$4 sm:$0xff]   ;;  %v7908_v22 = vld [vmem:[#allocation7 + $0x428] ss:$16 sps:$4 sm:$0xff]  }
 0x2a5   :  { %5652 = vmatprep.subr.bf16.mxu1 %v7859_v49  ;;  %v7911_v49 = vld [vmem:[#allocation7 + $0x628] ss:$16 sps:$4 sm:$0xff]  }
 0x2a7   :  { %5612 = vmatpush2.bf16.msra.mxu0 %v7854_v26  ;;  %v7916_v26 = vld [vmem:[#allocation7 + $0x40c] ss:$16 sps:$4 sm:$0xff]  }
 0x2a8   :  { %5653 = vmatpush2.bf16.msra.mxu1 %v7857_v30  ;;  %5613 = vmatprep.subr.bf16.mxu0 %v7862_v34  ;;  %v7919_v30 = vld [vmem:[#allocation7 + $0x60c] ss:$16 sps:$4 sm:$0xff]   ;;  %v7914_v34 = vld [vmem:[#allocation7 + $0x408] ss:$16 sps:$4 sm:$0xff]  }
 0x2a9   :  { %5654 = vmatprep.subr.bf16.mxu1 %v7865_v36  ;;  %v7917_v36 = vld [vmem:[#allocation7 + $0x608] ss:$16 sps:$4 sm:$0xff]  }
 0x2ab   :  { %5614 = vmatpush2.bf16.msra.mxu0 %v7860_v52  ;;  %v7922_v52 = vld [vmem:[#allocation7 + $0x5ec] ss:$16 sps:$4 sm:$0xff]  }
 0x2ac   :  { %5655 = vmatpush2.bf16.msra.mxu1 %v7863_v37  ;;  %5615 = vmatprep.subr.bf16.mxu0 %v7868_v38  ;;  %v7925_v37 = vld [vmem:[#allocation7 + $0x7ec] ss:$16 sps:$4 sm:$0xff]   ;;  %v7920_v38 = vld [vmem:[#allocation7 + $0x5e8] ss:$16 sps:$4 sm:$0xff]  }
 0x2ad   :  { %5656 = vmatprep.subr.bf16.mxu1 %v7871_v39  ;;  %v7923_v39 = vld [vmem:[#allocation7 + $0x7e8] ss:$16 sps:$4 sm:$0xff]  }
 0x2af   :  { %5616 = vmatpush2.bf16.msra.mxu0 %v7866_v40  ;;  %v7928_v40 = vld [vmem:[#allocation7 + $0x5cc] ss:$16 sps:$4 sm:$0xff]  }
 0x2b0   :  { %5657 = vmatpush2.bf16.msra.mxu1 %v7869_v41  ;;  %5667 = vmatprep.subr.bf16.mxu0 %v7874_v1  ;;  %v7931_v41 = vld [vmem:[#allocation7 + $0x7cc] ss:$16 sps:$4 sm:$0xff]   ;;  %v7926_v1 = vld [vmem:[#allocation7 + $0x5c8] ss:$16 sps:$4 sm:$0xff]  }
 0x2b1   :  { %5708 = vmatprep.subr.bf16.mxu1 %v7877_v7  ;;  %v7929_v7 = vld [vmem:[#allocation7 + $0x7c8] ss:$16 sps:$4 sm:$0xff]  }
 0x2b2   :  { %v5373_v8 = vpop.f32.mrf.mxu0  ;;  %5618 = vmatmul.mubr.bf16.vlgmr.msra.gmra.mxu0 %v8573_v60  ;;  %v5414_v5 = vpop.f32.mrf.mxu1 }
 0x2b3   :  { %v5374_v43 = vadd.f32 %v5373_v8, %v8670_v58  ;;  %5659 = vmatmul.mubr.bf16.vlgmr.msra.gmra.mxu1 %v8575_v61  ;;  %5668 = vmatpush1.bf16.msra.mxu0 %v7872_v42  ;;  %v7889_v58 = vld [vmem:[#allocation7 + $0x6ac] ss:$16 sps:$4 sm:$0xff]   ;;  %v7935_v8 = vld [vmem:[#allocation7 + $0x7a8] ss:$16 sps:$4 sm:$0xff]  }
 0x2b4   :  { %5699 = vmatprep.mubr.bf16.mxu0 %v8589_v29  ;;  %5709 = vmatpush1.bf16.msra.mxu1 %v7875_v15  ;;  %v5375_v32 = vpop.f32.mrf.mxu0  ;;  %v5416_v48 = vpop.f32.mrf.mxu1  ;;  %v7884_v29 = vld [vmem:[#allocation7 + $0x4a8] ss:$16 sps:$4 sm:$0xff]   ;;  %v7934_v42 = vld [vmem:[#allocation7 + $0x5ac] ss:$16 sps:$4 sm:$0xff]  }
 0x2b5   :  { %v8679_v44 = vadd.f32 %v5414_v5, %v5374_v43  ;;  %5740 = vmatprep.mubr.bf16.mxu1 %v8591_v35  ;;  %v5376_v60 = vadd.f32 %v5375_v32, %v8673_v17  ;;  %5669 = vmatprep.subr.bf16.mxu0 %v7880_v51  ;;  %v7895_v35 = vld [vmem:[#allocation7 + $0x68c] ss:$16 sps:$4 sm:$0xff]   ;;  %v7890_v17 = vld [vmem:[#allocation7 + $0x488] ss:$16 sps:$4 sm:$0xff]  }
 0x2b6   :  { %v5377_v28 = vpop.f32.mrf.mxu0  ;;  %5710 = vmatprep.subr.bf16.mxu1 %v7883_v46  ;;  %v5418_v55 = vpop.f32.mrf.mxu1  ;;  %v7937_v15 = vld [vmem:[#allocation7 + $0x7ac] ss:$16 sps:$4 sm:$0xff]   ;;  %v7932_v51 = vld [vmem:[#allocation7 + $0x5a8] ss:$16 sps:$4 sm:$0xff]  }
 0x2b7   :  { %v8683_v61 = vadd.f32 %v5416_v48, %v5376_v60  ;;  %5670 = vmatpush1.bf16.msra.mxu0 %v7878_v56  ;;  %v7940_v46 = vld [vmem:[#allocation7 + $0x58c] ss:$16 sps:$4 sm:$0xff]   ;;  %v7938_v5 = vld [vmem:[#allocation7 + $0x588] ss:$16 sps:$4 sm:$0xff]  }
 0x2b8   :  { %5711 = vmatpush1.bf16.msra.mxu1 %v7881_v62  ;;  %v5378_v63 = vpop.f32.mrf.mxu0  ;;  %5671 = vmatprep.subr.bf16.mxu0 %v7886_v12  ;;  %v5419_v54 = vpop.f32.mrf.mxu1  ;;  %v7943_v43 = vld [vmem:[#allocation7 + $0x78c] ss:$16 sps:$4 sm:$0xff]   ;;  %v7941_v56 = vld [vmem:[#allocation7 + $0x788] ss:$16 sps:$4 sm:$0xff]  }
 0x2b9   :  { %5712 = vmatprep.subr.bf16.mxu1 %v7889_v58  ;;  %v7946_v32 = vld [vmem:[#allocation7 + $0x56c] ss:$16 sps:$4 sm:$0xff]   ;;  %v7944_v12 = vld [vmem:[#allocation7 + $0x568] ss:$16 sps:$4 sm:$0xff]  }
 0x2ba   :  { %v7949_v62 = vld [vmem:[#allocation7 + $0x76c] ss:$16 sps:$4 sm:$0xff]   ;;  %v7947_v60 = vld [vmem:[#allocation7 + $0x768] ss:$16 sps:$4 sm:$0xff]  }
 0x2bb   :  { %5672 = vmatpush1.bf16.msra.mxu0 %v7884_v29  ;;  %v7952_v48 = vld [vmem:[#allocation7 + $0x54c] ss:$16 sps:$4 sm:$0xff]   ;;  %v7950_v28 = vld [vmem:[#allocation7 + $0x548] ss:$16 sps:$4 sm:$0xff]  }
 0x2bc   :  { %5713 = vmatpush1.bf16.msra.mxu1 %v7887_v0  ;;  %5673 = vmatprep.subr.bf16.mxu0 %v7892_v2  ;;  %v7955_v58 = vld [vmem:[#allocation7 + $0x74c] ss:$16 sps:$4 sm:$0xff]   ;;  %v7953_v55 = vld [vmem:[#allocation7 + $0x748] ss:$16 sps:$4 sm:$0xff]  }
 0x2bd   :  { %5714 = vmatprep.subr.bf16.mxu1 %v7895_v35  ;;  %v7958_v29 = vld [vmem:[#allocation7 + $0x52c] ss:$16 sps:$4 sm:$0xff]   ;;  %v7956_v0 = vld [vmem:[#allocation7 + $0x528] ss:$16 sps:$4 sm:$0xff]  }
 0x2be   :  { %v7961_v63 = vld [vmem:[#allocation7 + $0x72c] ss:$16 sps:$4 sm:$0xff]   ;;  %v7959_v2 = vld [vmem:[#allocation7 + $0x728] ss:$16 sps:$4 sm:$0xff]  }
 0x2bf   :  { %5674 = vmatpush1.bf16.msra.mxu0 %v7890_v17  ;;  %v7964_v54 = vld [vmem:[#allocation7 + $0x50c] ss:$16 sps:$4 sm:$0xff]   ;;  %v7962_v17 = vld [vmem:[#allocation7 + $0x508] ss:$16 sps:$4 sm:$0xff]  }
 0x2c0   :  { %5715 = vmatpush1.bf16.msra.mxu1 %v7893_v3  ;;  %5675 = vmatprep.subr.bf16.mxu0 %v7898_v4  ;;  %v7967_v35 = vld [vmem:[#allocation7 + $0x70c] ss:$16 sps:$4 sm:$0xff]   ;;  %v7965_v3 = vld [vmem:[#allocation7 + $0x708] ss:$16 sps:$4 sm:$0xff]  }
 0x2c1   :  { %5716 = vmatprep.subr.bf16.mxu1 %v7901_v6  ;;  %v7970_v4 = vld [vmem:[#allocation7 + $0x8ec] ss:$16 sps:$4 sm:$0xff]  }
 0x2c2   :  { %v7973_v6 = vld [vmem:[#allocation7 + $0xaec] ss:$16 sps:$4 sm:$0xff]  }
 0x2c3   :  { %5676 = vmatpush1.bf16.msra.mxu0 %v7896_v9  ;;  %v7968_v9 = vld [vmem:[#allocation7 + $0x8e8] ss:$16 sps:$4 sm:$0xff]  }
 0x2c4   :  { %5717 = vmatpush1.bf16.msra.mxu1 %v7899_v10  ;;  %5677 = vmatprep.subr.bf16.mxu0 %v7904_v11  ;;  %v7971_v10 = vld [vmem:[#allocation7 + $0xae8] ss:$16 sps:$4 sm:$0xff]   ;;  %v7976_v11 = vld [vmem:[#allocation7 + $0x8cc] ss:$16 sps:$4 sm:$0xff]  }
 0x2c5   :  { %5718 = vmatprep.subr.bf16.mxu1 %v7907_v13 }
 0x2c7   :  { %5678 = vmatpush1.bf16.msra.mxu0 %v7902_v14  ;;  %v7979_v14 = vld [vmem:[#allocation7 + $0xacc] ss:$16 sps:$4 sm:$0xff]  }
 0x2c8   :  { %5719 = vmatpush1.bf16.msra.mxu1 %v7905_v21  ;;  %5679 = vmatprep.subr.bf16.mxu0 %v7910_v16 }
 0x2c9   :  { %5720 = vmatprep.subr.bf16.mxu1 %v7913_v19  ;;  %v7974_v19 = vld [vmem:[#allocation7 + $0x8c8] ss:$16 sps:$4 sm:$0xff]  }
 0x2cb   :  { %5680 = vmatpush1.bf16.msra.mxu0 %v7908_v22 }
 0x2cc   :  { %5721 = vmatpush1.bf16.msra.mxu1 %v7911_v49  ;;  %5681 = vmatprep.subr.bf16.mxu0 %v7916_v26  ;;  %v7977_v49 = vld [vmem:[#allocation7 + $0xac8] ss:$16 sps:$4 sm:$0xff]   ;;  %v7982_v26 = vld [vmem:[#allocation7 + $0x8ac] ss:$16 sps:$4 sm:$0xff]  }
 0x2cd   :  { %5722 = vmatprep.subr.bf16.mxu1 %v7919_v30 }
 0x2cf   :  { %5682 = vmatpush1.bf16.msra.mxu0 %v7914_v34 }
 0x2d0   :  { %5723 = vmatpush1.bf16.msra.mxu1 %v7917_v36  ;;  %5683 = vmatprep.subr.bf16.mxu0 %v7922_v52 }
 0x2d1   :  { %5724 = vmatprep.subr.bf16.mxu1 %v7925_v37 }
 0x2d3   :  { %5684 = vmatpush2.bf16.msra.mxu0 %v7920_v38  ;;  %v7983_v38 = vld [vmem:[#allocation7 + $0xaa8] ss:$16 sps:$4 sm:$0xff]  }
 0x2d4   :  { %5725 = vmatpush2.bf16.msra.mxu1 %v7923_v39  ;;  %5685 = vmatprep.subr.bf16.mxu0 %v7928_v40  ;;  %v7988_v39 = vld [vmem:[#allocation7 + $0x88c] ss:$16 sps:$4 sm:$0xff]  }
 0x2d5   :  { %5726 = vmatprep.subr.bf16.mxu1 %v7931_v41  ;;  %v7989_v41 = vld [vmem:[#allocation7 + $0xa88] ss:$16 sps:$4 sm:$0xff]  }
 0x2d7   :  { %5686 = vmatpush2.bf16.msra.mxu0 %v7926_v1  ;;  %v7994_v1 = vld [vmem:[#allocation7 + $0x86c] ss:$16 sps:$4 sm:$0xff]  }
 0x2d8   :  { %5727 = vmatpush2.bf16.msra.mxu1 %v7929_v7  ;;  %5687 = vmatprep.subr.bf16.mxu0 %v7934_v42  ;;  %v7997_v7 = vld [vmem:[#allocation7 + $0xa6c] ss:$16 sps:$4 sm:$0xff]   ;;  %v7992_v42 = vld [vmem:[#allocation7 + $0x868] ss:$16 sps:$4 sm:$0xff]  }
 0x2d9   :  { %5728 = vmatprep.subr.bf16.mxu1 %v7937_v15  ;;  %v7995_v15 = vld [vmem:[#allocation7 + $0xa68] ss:$16 sps:$4 sm:$0xff]  }
 0x2db   :  { %5688 = vmatpush2.bf16.msra.mxu0 %v7932_v51  ;;  %v8000_v51 = vld [vmem:[#allocation7 + $0x84c] ss:$16 sps:$4 sm:$0xff]  }
 0x2dc   :  { %5729 = vmatpush2.bf16.msra.mxu1 %v7935_v8  ;;  %5689 = vmatprep.subr.bf16.mxu0 %v7940_v46  ;;  %v8003_v8 = vld [vmem:[#allocation7 + $0xa4c] ss:$16 sps:$4 sm:$0xff]   ;;  %v7998_v46 = vld [vmem:[#allocation7 + $0x848] ss:$16 sps:$4 sm:$0xff]  }
 0x2dd   :  { %5730 = vmatprep.subr.bf16.mxu1 %v7943_v43  ;;  %v8001_v43 = vld [vmem:[#allocation7 + $0xa48] ss:$16 sps:$4 sm:$0xff]  }
 0x2df   :  { %5690 = vmatpush2.bf16.msra.mxu0 %v7938_v5  ;;  %v8006_v5 = vld [vmem:[#allocation7 + $0x82c] ss:$16 sps:$4 sm:$0xff]  }
 0x2e0   :  { %5731 = vmatpush2.bf16.msra.mxu1 %v7941_v56  ;;  %5691 = vmatprep.subr.bf16.mxu0 %v7946_v32  ;;  %v8009_v56 = vld [vmem:[#allocation7 + $0xa2c] ss:$16 sps:$4 sm:$0xff]   ;;  %v8004_v32 = vld [vmem:[#allocation7 + $0x828] ss:$16 sps:$4 sm:$0xff]  }
 0x2e1   :  { %5732 = vmatprep.subr.bf16.mxu1 %v7949_v62  ;;  %v8007_v62 = vld [vmem:[#allocation7 + $0xa28] ss:$16 sps:$4 sm:$0xff]  }
 0x2e3   :  { %5692 = vmatpush2.bf16.msra.mxu0 %v7944_v12  ;;  %v8012_v12 = vld [vmem:[#allocation7 + $0x80c] ss:$16 sps:$4 sm:$0xff]  }
 0x2e4   :  { %5733 = vmatpush2.bf16.msra.mxu1 %v7947_v60  ;;  %5693 = vmatprep.subr.bf16.mxu0 %v7952_v48  ;;  %v8015_v60 = vld [vmem:[#allocation7 + $0xa0c] ss:$16 sps:$4 sm:$0xff]   ;;  %v8010_v48 = vld [vmem:[#allocation7 + $0x808] ss:$16 sps:$4 sm:$0xff]  }
 0x2e5   :  { %5734 = vmatprep.subr.bf16.mxu1 %v7955_v58  ;;  %v8013_v58 = vld [vmem:[#allocation7 + $0xa08] ss:$16 sps:$4 sm:$0xff]  }
 0x2e7   :  { %5694 = vmatpush2.bf16.msra.mxu0 %v7950_v28  ;;  %v8018_v28 = vld [vmem:[#allocation7 + $0x9ec] ss:$16 sps:$4 sm:$0xff]  }
 0x2e8   :  { %5735 = vmatpush2.bf16.msra.mxu1 %v7953_v55  ;;  %5695 = vmatprep.subr.bf16.mxu0 %v7958_v29  ;;  %v8021_v55 = vld [vmem:[#allocation7 + $0xbec] ss:$16 sps:$4 sm:$0xff]   ;;  %v8016_v29 = vld [vmem:[#allocation7 + $0x9e8] ss:$16 sps:$4 sm:$0xff]  }
 0x2e9   :  { %5736 = vmatprep.subr.bf16.mxu1 %v7961_v63  ;;  %v8019_v63 = vld [vmem:[#allocation7 + $0xbe8] ss:$16 sps:$4 sm:$0xff]  }
 0x2eb   :  { %5696 = vmatpush2.bf16.msra.mxu0 %v7956_v0  ;;  %v8024_v0 = vld [vmem:[#allocation7 + $0x9cc] ss:$16 sps:$4 sm:$0xff]  }
 0x2ec   :  { %5737 = vmatpush2.bf16.msra.mxu1 %v7959_v2  ;;  %5697 = vmatprep.subr.bf16.mxu0 %v7964_v54  ;;  %v8027_v2 = vld [vmem:[#allocation7 + $0xbcc] ss:$16 sps:$4 sm:$0xff]   ;;  %v8022_v54 = vld [vmem:[#allocation7 + $0x9c8] ss:$16 sps:$4 sm:$0xff]  }
 0x2ed   :  { %5738 = vmatprep.subr.bf16.mxu1 %v7967_v35  ;;  %v8025_v35 = vld [vmem:[#allocation7 + $0xbc8] ss:$16 sps:$4 sm:$0xff]  }
 0x2ef   :  { %5698 = vmatpush2.bf16.msra.mxu0 %v7962_v17  ;;  %v8030_v17 = vld [vmem:[#allocation7 + $0x9ac] ss:$16 sps:$4 sm:$0xff]  }
 0x2f0   :  { %5739 = vmatpush2.bf16.msra.mxu1 %v7965_v3  ;;  %5749 = vmatprep.subr.bf16.mxu0 %v7970_v4  ;;  %v8033_v3 = vld [vmem:[#allocation7 + $0xbac] ss:$16 sps:$4 sm:$0xff]   ;;  %v8028_v4 = vld [vmem:[#allocation7 + $0x9a8] ss:$16 sps:$4 sm:$0xff]  }
 0x2f1   :  { %5790 = vmatprep.subr.bf16.mxu1 %v7973_v6  ;;  %v8031_v6 = vld [vmem:[#allocation7 + $0xba8] ss:$16 sps:$4 sm:$0xff]  }
 0x2f2   :  { %v5455_v13 = vpop.f32.mrf.mxu0  ;;  %5700 = vmatmul.mubr.bf16.vlgmr.msra.gmra.mxu0 %v8603_v45  ;;  %v5496_v16 = vpop.f32.mrf.mxu1 }
 0x2f3   :  { %v5456_v21 = vadd.f32 %v5455_v13, %v8679_v44  ;;  %5741 = vmatmul.mubr.bf16.vlgmr.msra.gmra.mxu1 %v8607_v57  ;;  %5750 = vmatpush1.bf16.msra.mxu0 %v7968_v9  ;;  %v7985_v44 = vld [vmem:[#allocation7 + $0xaac] ss:$16 sps:$4 sm:$0xff]   ;;  %v8037_v13 = vld [vmem:[#allocation7 + $0xb88] ss:$16 sps:$4 sm:$0xff]  }
 0x2f4   :  { %5781 = vmatprep.mubr.bf16.mxu0 %v8619_v18  ;;  %5791 = vmatpush1.bf16.msra.mxu1 %v7971_v10  ;;  %v5457_v22 = vpop.f32.mrf.mxu0  ;;  %v5498_v34 = vpop.f32.mrf.mxu1  ;;  %v7980_v18 = vld [vmem:[#allocation7 + $0x8a8] ss:$16 sps:$4 sm:$0xff]   ;;  %v8036_v9 = vld [vmem:[#allocation7 + $0x98c] ss:$16 sps:$4 sm:$0xff]  }
 0x2f5   :  { %v8689_v30 = vadd.f32 %v5496_v16, %v5456_v21  ;;  %5822 = vmatprep.mubr.bf16.mxu1 %v8621_v24  ;;  %v5458_v45 = vadd.f32 %v5457_v22, %v8683_v61  ;;  %5751 = vmatprep.subr.bf16.mxu0 %v7976_v11  ;;  %v7991_v24 = vld [vmem:[#allocation7 + $0xa8c] ss:$16 sps:$4 sm:$0xff]   ;;  %v7986_v61 = vld [vmem:[#allocation7 + $0x888] ss:$16 sps:$4 sm:$0xff]  }
 0x2f6   :  { %v5459_v36 = vpop.f32.mrf.mxu0  ;;  %5792 = vmatprep.subr.bf16.mxu1 %v7979_v14  ;;  %v5500_v52 = vpop.f32.mrf.mxu1  ;;  %v8039_v10 = vld [vmem:[#allocation7 + $0xb8c] ss:$16 sps:$4 sm:$0xff]   ;;  %v8034_v11 = vld [vmem:[#allocation7 + $0x988] ss:$16 sps:$4 sm:$0xff]  }
 0x2f7   :  { %v8693_v57 = vadd.f32 %v5498_v34, %v5458_v45  ;;  %5752 = vmatpush1.bf16.msra.mxu0 %v7974_v19  ;;  %v8042_v14 = vld [vmem:[#allocation7 + $0x96c] ss:$16 sps:$4 sm:$0xff]   ;;  %v8040_v16 = vld [vmem:[#allocation7 + $0x968] ss:$16 sps:$4 sm:$0xff]  }
 0x2f8   :  { %5793 = vmatpush1.bf16.msra.mxu1 %v7977_v49  ;;  %v5460_v37 = vpop.f32.mrf.mxu0  ;;  %5753 = vmatprep.subr.bf16.mxu0 %v7982_v26  ;;  %v5501_v40 = vpop.f32.mrf.mxu1  ;;  %v8045_v21 = vld [vmem:[#allocation7 + $0xb6c] ss:$16 sps:$4 sm:$0xff]   ;;  %v8043_v19 = vld [vmem:[#allocation7 + $0xb68] ss:$16 sps:$4 sm:$0xff]  }
 0x2f9   :  { %5794 = vmatprep.subr.bf16.mxu1 %v7985_v44  ;;  %v8048_v22 = vld [vmem:[#allocation7 + $0x94c] ss:$16 sps:$4 sm:$0xff]   ;;  %v8046_v26 = vld [vmem:[#allocation7 + $0x948] ss:$16 sps:$4 sm:$0xff]  }
 0x2fa   :  { %v8051_v49 = vld [vmem:[#allocation7 + $0xb4c] ss:$16 sps:$4 sm:$0xff]   ;;  %v8049_v45 = vld [vmem:[#allocation7 + $0xb48] ss:$16 sps:$4 sm:$0xff]  }
 0x2fb   :  { %5754 = vmatpush1.bf16.msra.mxu0 %v7980_v18  ;;  %v8054_v34 = vld [vmem:[#allocation7 + $0x92c] ss:$16 sps:$4 sm:$0xff]   ;;  %v8052_v36 = vld [vmem:[#allocation7 + $0x928] ss:$16 sps:$4 sm:$0xff]  }
 0x2fc   :  { %5795 = vmatpush1.bf16.msra.mxu1 %v7983_v38  ;;  %5755 = vmatprep.subr.bf16.mxu0 %v7988_v39  ;;  %v8057_v44 = vld [vmem:[#allocation7 + $0xb2c] ss:$16 sps:$4 sm:$0xff]   ;;  %v8055_v52 = vld [vmem:[#allocation7 + $0xb28] ss:$16 sps:$4 sm:$0xff]  }
 0x2fd   :  { %5796 = vmatprep.subr.bf16.mxu1 %v7991_v24  ;;  %v8060_v18 = vld [vmem:[#allocation7 + $0x90c] ss:$16 sps:$4 sm:$0xff]   ;;  %v8058_v38 = vld [vmem:[#allocation7 + $0x908] ss:$16 sps:$4 sm:$0xff]  }
 0x2fe   :  { %v8063_v37 = vld [vmem:[#allocation7 + $0xb0c] ss:$16 sps:$4 sm:$0xff]   ;;  %v8061_v39 = vld [vmem:[#allocation7 + $0xb08] ss:$16 sps:$4 sm:$0xff]  }
 0x2ff   :  { %5756 = vmatpush1.bf16.msra.mxu0 %v7986_v61  ;;  %v8066_v40 = vld [vmem:[#allocation7 + $0xcec] ss:$16 sps:$4 sm:$0xff]   ;;  %v8064_v61 = vld [vmem:[#allocation7 + $0xce8] ss:$16 sps:$4 sm:$0xff]  }
 0x300   :  { %5797 = vmatpush1.bf16.msra.mxu1 %v7989_v41  ;;  %5757 = vmatprep.subr.bf16.mxu0 %v7994_v1  ;;  %v8069_v24 = vld [vmem:[#allocation7 + $0xeec] ss:$16 sps:$4 sm:$0xff]   ;;  %v8067_v41 = vld [vmem:[#allocation7 + $0xee8] ss:$16 sps:$4 sm:$0xff]  }
 0x301   :  { %5798 = vmatprep.subr.bf16.mxu1 %v7997_v7  ;;  %v8072_v1 = vld [vmem:[#allocation7 + $0xccc] ss:$16 sps:$4 sm:$0xff]  }
 0x303   :  { %5758 = vmatpush1.bf16.msra.mxu0 %v7992_v42  ;;  %v8075_v42 = vld [vmem:[#allocation7 + $0xecc] ss:$16 sps:$4 sm:$0xff]  }
 0x304   :  { %5799 = vmatpush1.bf16.msra.mxu1 %v7995_v15  ;;  %5759 = vmatprep.subr.bf16.mxu0 %v8000_v51 }
 0x305   :  { %5800 = vmatprep.subr.bf16.mxu1 %v8003_v8  ;;  %v8070_v8 = vld [vmem:[#allocation7 + $0xcc8] ss:$16 sps:$4 sm:$0xff]  }
 0x307   :  { %5760 = vmatpush1.bf16.msra.mxu0 %v7998_v46 }
 0x308   :  { %5801 = vmatpush1.bf16.msra.mxu1 %v8001_v43  ;;  %5761 = vmatprep.subr.bf16.mxu0 %v8006_v5  ;;  %v8073_v43 = vld [vmem:[#allocation7 + $0xec8] ss:$16 sps:$4 sm:$0xff]   ;;  %v8078_v5 = vld [vmem:[#allocation7 + $0xcac] ss:$16 sps:$4 sm:$0xff]  }
 0x309   :  { %5802 = vmatprep.subr.bf16.mxu1 %v8009_v56 }
 0x30b   :  { %5762 = vmatpush1.bf16.msra.mxu0 %v8004_v32 }
 0x30c   :  { %5803 = vmatpush1.bf16.msra.mxu1 %v8007_v62  ;;  %5763 = vmatprep.subr.bf16.mxu0 %v8012_v12  ;;  %v8076_v62 = vld [vmem:[#allocation7 + $0xca8] ss:$16 sps:$4 sm:$0xff]  }
 0x30d   :  { %5804 = vmatprep.subr.bf16.mxu1 %v8015_v60  ;;  %v8079_v12 = vld [vmem:[#allocation7 + $0xea8] ss:$16 sps:$4 sm:$0xff]   ;;  %v8084_v60 = vld [vmem:[#allocation7 + $0xc8c] ss:$16 sps:$4 sm:$0xff]  }
 0x30f   :  { %5764 = vmatpush1.bf16.msra.mxu0 %v8010_v48 }
 0x310   :  { %5805 = vmatpush1.bf16.msra.mxu1 %v8013_v58  ;;  %5765 = vmatprep.subr.bf16.mxu0 %v8018_v28  ;;  %v8087_v58 = vld [vmem:[#allocation7 + $0xe8c] ss:$16 sps:$4 sm:$0xff]   ;;  %v8082_v28 = vld [vmem:[#allocation7 + $0xc88] ss:$16 sps:$4 sm:$0xff]  }
 0x311   :  { %5806 = vmatprep.subr.bf16.mxu1 %v8021_v55  ;;  %v8090_v55 = vld [vmem:[#allocation7 + $0xc6c] ss:$16 sps:$4 sm:$0xff]  }
 0x313   :  { %5766 = vmatpush2.bf16.msra.mxu0 %v8016_v29  ;;  %v8093_v29 = vld [vmem:[#allocation7 + $0xe6c] ss:$16 sps:$4 sm:$0xff]  }
 0x314   :  { %5807 = vmatpush2.bf16.msra.mxu1 %v8019_v63  ;;  %5767 = vmatprep.subr.bf16.mxu0 %v8024_v0  ;;  %v8088_v63 = vld [vmem:[#allocation7 + $0xc68] ss:$16 sps:$4 sm:$0xff]  }
 0x315   :  { %5808 = vmatprep.subr.bf16.mxu1 %v8027_v2  ;;  %v8091_v0 = vld [vmem:[#allocation7 + $0xe68] ss:$16 sps:$4 sm:$0xff]   ;;  %v8096_v2 = vld [vmem:[#allocation7 + $0xc4c] ss:$16 sps:$4 sm:$0xff]  }
 0x317   :  { %5768 = vmatpush2.bf16.msra.mxu0 %v8022_v54  ;;  %v8099_v54 = vld [vmem:[#allocation7 + $0xe4c] ss:$16 sps:$4 sm:$0xff]  }
 0x318   :  { %5809 = vmatpush2.bf16.msra.mxu1 %v8025_v35  ;;  %5769 = vmatprep.subr.bf16.mxu0 %v8030_v17  ;;  %v8094_v35 = vld [vmem:[#allocation7 + $0xc48] ss:$16 sps:$4 sm:$0xff]  }
 0x319   :  { %5810 = vmatprep.subr.bf16.mxu1 %v8033_v3  ;;  %v8097_v17 = vld [vmem:[#allocation7 + $0xe48] ss:$16 sps:$4 sm:$0xff]   ;;  %v8102_v3 = vld [vmem:[#allocation7 + $0xc2c] ss:$16 sps:$4 sm:$0xff]  }
 0x31b   :  { %5770 = vmatpush2.bf16.msra.mxu0 %v8028_v4  ;;  %v8105_v4 = vld [vmem:[#allocation7 + $0xe2c] ss:$16 sps:$4 sm:$0xff]  }
 0x31c   :  { %5811 = vmatpush2.bf16.msra.mxu1 %v8031_v6  ;;  %5771 = vmatprep.subr.bf16.mxu0 %v8036_v9  ;;  %v8100_v6 = vld [vmem:[#allocation7 + $0xc28] ss:$16 sps:$4 sm:$0xff]  }
 0x31d   :  { %5812 = vmatprep.subr.bf16.mxu1 %v8039_v10  ;;  %v8103_v9 = vld [vmem:[#allocation7 + $0xe28] ss:$16 sps:$4 sm:$0xff]   ;;  %v8108_v10 = vld [vmem:[#allocation7 + $0xc0c] ss:$16 sps:$4 sm:$0xff]  }
 0x31f   :  { %5772 = vmatpush2.bf16.msra.mxu0 %v8034_v11  ;;  %v8111_v11 = vld [vmem:[#allocation7 + $0xe0c] ss:$16 sps:$4 sm:$0xff]  }
 0x320   :  { %5813 = vmatpush2.bf16.msra.mxu1 %v8037_v13  ;;  %5773 = vmatprep.subr.bf16.mxu0 %v8042_v14  ;;  %v8106_v13 = vld [vmem:[#allocation7 + $0xc08] ss:$16 sps:$4 sm:$0xff]  }
 0x321   :  { %5814 = vmatprep.subr.bf16.mxu1 %v8045_v21  ;;  %v8109_v14 = vld [vmem:[#allocation7 + $0xe08] ss:$16 sps:$4 sm:$0xff]   ;;  %v8114_v21 = vld [vmem:[#allocation7 + $0xdec] ss:$16 sps:$4 sm:$0xff]  }
 0x323   :  { %5774 = vmatpush2.bf16.msra.mxu0 %v8040_v16  ;;  %v8117_v16 = vld [vmem:[#allocation7 + $0xfec] ss:$16 sps:$4 sm:$0xff]  }
 0x324   :  { %5815 = vmatpush2.bf16.msra.mxu1 %v8043_v19  ;;  %5775 = vmatprep.subr.bf16.mxu0 %v8048_v22  ;;  %v8112_v19 = vld [vmem:[#allocation7 + $0xde8] ss:$16 sps:$4 sm:$0xff]  }
 0x325   :  { %5816 = vmatprep.subr.bf16.mxu1 %v8051_v49  ;;  %v8115_v22 = vld [vmem:[#allocation7 + $0xfe8] ss:$16 sps:$4 sm:$0xff]   ;;  %v8120_v49 = vld [vmem:[#allocation7 + $0xdcc] ss:$16 sps:$4 sm:$0xff]  }
 0x327   :  { %5776 = vmatpush2.bf16.msra.mxu0 %v8046_v26  ;;  %v8123_v26 = vld [vmem:[#allocation7 + $0xfcc] ss:$16 sps:$4 sm:$0xff]  }
 0x328   :  { %5817 = vmatpush2.bf16.msra.mxu1 %v8049_v45  ;;  %5777 = vmatprep.subr.bf16.mxu0 %v8054_v34  ;;  %v8118_v45 = vld [vmem:[#allocation7 + $0xdc8] ss:$16 sps:$4 sm:$0xff]  }
 0x329   :  { %5818 = vmatprep.subr.bf16.mxu1 %v8057_v44  ;;  %v8121_v34 = vld [vmem:[#allocation7 + $0xfc8] ss:$16 sps:$4 sm:$0xff]   ;;  %v8126_v44 = vld [vmem:[#allocation7 + $0xdac] ss:$16 sps:$4 sm:$0xff]  }
 0x32b   :  { %5778 = vmatpush2.bf16.msra.mxu0 %v8052_v36  ;;  %v8129_v36 = vld [vmem:[#allocation7 + $0xfac] ss:$16 sps:$4 sm:$0xff]  }
 0x32c   :  { %5819 = vmatpush2.bf16.msra.mxu1 %v8055_v52  ;;  %5779 = vmatprep.subr.bf16.mxu0 %v8060_v18  ;;  %v8124_v52 = vld [vmem:[#allocation7 + $0xda8] ss:$16 sps:$4 sm:$0xff]  }
 0x32d   :  { %5820 = vmatprep.subr.bf16.mxu1 %v8063_v37  ;;  %v8127_v18 = vld [vmem:[#allocation7 + $0xfa8] ss:$16 sps:$4 sm:$0xff]   ;;  %v8132_v37 = vld [vmem:[#allocation7 + $0xd8c] ss:$16 sps:$4 sm:$0xff]  }
 0x32f   :  { %5780 = vmatpush2.bf16.msra.mxu0 %v8058_v38  ;;  %v8135_v38 = vld [vmem:[#allocation7 + $0xf8c] ss:$16 sps:$4 sm:$0xff]  }
 0x330   :  { %5821 = vmatpush2.bf16.msra.mxu1 %v8061_v39  ;;  %5831 = vmatprep.subr.bf16.mxu0 %v8066_v40  ;;  %v8130_v39 = vld [vmem:[#allocation7 + $0xd88] ss:$16 sps:$4 sm:$0xff]  }
 0x331   :  { %5872 = vmatprep.subr.bf16.mxu1 %v8069_v24  ;;  %v8133_v24 = vld [vmem:[#allocation7 + $0xf88] ss:$16 sps:$4 sm:$0xff]  }
 0x332   :  { %v5537_v7 = vpop.f32.mrf.mxu0  ;;  %5782 = vmatmul.mubr.bf16.vlgmr.msra.gmra.mxu0 %v8631_v47  ;;  %v5578_v51 = vpop.f32.mrf.mxu1 }
 0x333   :  { %v5538_v15 = vadd.f32 %v5537_v7, %v8689_v30  ;;  %5823 = vmatmul.mubr.bf16.vlgmr.msra.gmra.mxu1 %v8633_v50  ;;  %5832 = vmatpush1.bf16.msra.mxu0 %v8064_v61  ;;  %v8081_v30 = vld [vmem:[#allocation7 + $0xeac] ss:$16 sps:$4 sm:$0xff]   ;;  %v8136_v7 = vld [vmem:[#allocation7 + $0xd68] ss:$16 sps:$4 sm:$0xff]  }
 0x334   :  { %5863 = vmatprep.mubr.bf16.mxu0 %v8647_v25  ;;  %5873 = vmatpush1.bf16.msra.mxu1 %v8067_v41  ;;  %v8699_v46 = vpop.f32.mrf.mxu0  ;;  %v8704_v47 = vpop.f32.mrf.mxu1  ;;  %v8138_v61 = vld [vmem:[#allocation7 + $0xd6c] ss:$16 sps:$4 sm:$0xff]  }
 0x335   :  { %v8701_v56 = vadd.f32 %v5578_v51, %v5538_v15  ;;  %5904 = vmatprep.mubr.bf16.mxu1 %v8649_v33  ;;  %5833 = vmatprep.subr.bf16.mxu0 %v8072_v1  ;;  %v8085_v33 = vld [vmem:[#allocation7 + $0xe88] ss:$16 sps:$4 sm:$0xff]   ;;  %v5540_v40 = vadd.f32 %v8699_v46, %v8693_v57  ;;  %v8141_v41 = vld [vmem:[#allocation7 + $0xf6c] ss:$16 sps:$4 sm:$0xff]  }
 0x336   :  { %v5541_v32 = vpop.f32.mrf.mxu0  ;;  %5874 = vmatprep.subr.bf16.mxu1 %v8075_v42  ;;  %v5582_v50 = vpop.f32.mrf.mxu1  ;;  %v8708_v1 = vld [vmem:[#allocation13 + $0x1] ss:$4 sm:$0xf] }
 0x337   :  { %5834 = vmatpush1.bf16.msra.mxu0 %v8070_v8  ;;  %v5581_v42 = vadd.f32 %v8704_v47, %v5540_v40  ;;  %v8139_v15 = vld [vmem:[#allocation7 + $0xf68] ss:$16 sps:$4 sm:$0xff]   ;;  %v8144_v51 = vld [vmem:[#allocation7 + $0xd4c] ss:$16 sps:$4 sm:$0xff]   ;;  %v8712_v8 = vmul.f32 0.2, %v8708_v1  ;;  %v5928_v46 = vrot.slane %v8708_v1, %v8536_v20 }
 0x338   :  { %5875 = vmatpush1.bf16.msra.mxu1 %v8073_v43  ;;  %v5542_v25 = vpop.f32.mrf.mxu0  ;;  %5835 = vmatprep.subr.bf16.mxu0 %v8078_v5  ;;  %v5583_v48 = vpop.f32.mrf.mxu1  ;;  %v8147_v57 = vld [vmem:[#allocation7 + $0xf4c] ss:$16 sps:$4 sm:$0xff]   ;;  %v8142_v5 = vld [vmem:[#allocation7 + $0xd48] ss:$16 sps:$4 sm:$0xff]   ;;  %vm5915_vm1 = vcmp.gt.f32.partialorder %v8701_v56, 0.0 }
 0x339   :  { %5876 = vmatprep.subr.bf16.mxu1 %v8081_v30  ;;  %v5949_v43 = vrot.slane %v8712_v8, %v8536_v20  ;;  %vm5916_vm0 = vcmp.gt.f32.partialorder %v5581_v42, 0.0  ;;  %v8145_v47 = vld [vmem:[#allocation7 + $0xf48] ss:$16 sps:$4 sm:$0xff]   ;;  %v8150_v30 = vld [vmem:[#allocation7 + $0xd2c] ss:$16 sps:$4 sm:$0xff]  }
 0x33a   :  { %v8153_v32 = vld [vmem:[#allocation7 + $0xf2c] ss:$16 sps:$4 sm:$0xff]   ;;  %v8151_v25 = vld [vmem:[#allocation7 + $0xf28] ss:$16 sps:$4 sm:$0xff]  }
 0x33b   :  { %5836 = vmatpush1.bf16.msra.mxu0 %v8076_v62  ;;  %v5963_v50 = vsel %vm5916_vm0, %v5928_v46, %v5949_v43  ;;  %v8148_v62 = vld [vmem:[#allocation7 + $0xd28] ss:$16 sps:$4 sm:$0xff]   ;;  %v8159_v48 = vld [vmem:[#allocation7 + $0xf0c] ss:$16 sps:$4 sm:$0xff]  }
 0x33c   :  { %5877 = vmatpush1.bf16.msra.mxu1 %v8079_v12  ;;  %5837 = vmatprep.subr.bf16.mxu0 %v8084_v60  ;;  %v8156_v12 = vld [vmem:[#allocation7 + $0xd0c] ss:$16 sps:$4 sm:$0xff]  }
 0x33d   :  { %5878 = vmatprep.subr.bf16.mxu1 %v8087_v58  ;;  %v8718_v60 = vld [vmem:[#allocation13 + $0x2] ss:$4 sm:$0xf]  ;;  %v5967_v58 = vmul.f32 %v5963_v50, %v5581_v42 }
 0x33e   :  { %v8181_v40 = vld [vmem:[#allocation8 + $0xa8] sm:$0xff]   ;;  %v5976_v43 = vrot.slane %v8718_v60, %v8560_v27 }
 0x33f   :  { %5838 = vmatpush1.bf16.msra.mxu0 %v8082_v28  ;;  %v5980_v28 = vrot.slane %v8718_v60, %v8536_v20  ;;  %v8172_v42 = vld [vmem:[#allocation8 + $0x48] sm:$0xff]  }
 0x340   :  { %5879 = vmatpush1.bf16.msra.mxu1 %v8085_v33  ;;  %5839 = vmatprep.subr.bf16.mxu0 %v8090_v55  ;;  %v8154_v33 = vld [vmem:[#allocation7 + $0xd08] ss:$16 sps:$4 sm:$0xff]  }
 0x341   :  { %5880 = vmatprep.subr.bf16.mxu1 %v8093_v29  ;;  %v8157_v55 = vld [vmem:[#allocation7 + $0xf08] ss:$16 sps:$4 sm:$0xff]  }
 0x342   :  { %v8160_v29 = vld [vmem:[#allocation8 + $0x78] sm:$0xff]  }
 0x343   :  { %5840 = vmatpush1.bf16.msra.mxu0 %v8088_v63  ;;  %v5994_v63 = vadd.f32 %v5980_v28, %v5967_v58 }
 0x344   :  { %5881 = vmatpush1.bf16.msra.mxu1 %v8091_v0  ;;  %5841 = vmatprep.subr.bf16.mxu0 %v8096_v2  ;;  %v8201_v0 = vld [vmem:[#allocation13] ss:$4 sm:$0xf] }
 0x345   :  { %5882 = vmatprep.subr.bf16.mxu1 %v8099_v54  ;;  %v2688_v2 = vrot.slane %v8201_v0, %v8563_v31  ;;  %v8161_v54 = vld [vmem:[#allocation8 + $0x38] sm:$0xff]   ;;  %v5998_v20 = vpack.c.bf16 %v5994_v63, %v5994_v63 }
 0x347   :  { %5842 = vmatpush1.bf16.msra.mxu0 %v8094_v35  ;;  %v8162_v35 = vld [vmem:[#allocation8 + $0x70] sm:$0xff]  }
 0x348   :  { %5883 = vmatpush1.bf16.msra.mxu1 %v8097_v17  ;;  %5843 = vmatprep.subr.bf16.mxu0 %v8102_v3  ;;  %v2692_v17 = vrot.slane %v8201_v0, %v8541_v23 }
 0x349   :  { %5884 = vmatprep.subr.bf16.mxu1 %v8105_v4 }
 0x34b   :  { %5844 = vmatpush1.bf16.msra.mxu0 %v8100_v6 }
 0x34c   :  { %5885 = vmatpush1.bf16.msra.mxu1 %v8103_v9  ;;  %5845 = vmatprep.subr.bf16.mxu0 %v8108_v10  ;;  %v8163_v9 = vld [vmem:[#allocation8 + $0x30] sm:$0xff]  }
 0x34d   :  { %5886 = vmatprep.subr.bf16.mxu1 %v8111_v11  ;;  %v8164_v11 = vld [vmem:[#allocation8 + $0x68] sm:$0xff]  }
 0x34f   :  { %5846 = vmatpush1.bf16.msra.mxu0 %v8106_v13 }
 0x350   :  { %5887 = vmatpush1.bf16.msra.mxu1 %v8109_v14  ;;  %5847 = vmatprep.subr.bf16.mxu0 %v8114_v21 }
 0x351   :  { %5888 = vmatprep.subr.bf16.mxu1 %v8117_v16 }
 0x353   :  { %5848 = vmatpush2.bf16.msra.mxu0 %v8112_v19 }
 0x354   :  { %5889 = vmatpush2.bf16.msra.mxu1 %v8115_v22  ;;  %5849 = vmatprep.subr.bf16.mxu0 %v8120_v49  ;;  %v8165_v49 = vld [vmem:[#allocation8 + $0x28] sm:$0xff]  }
 0x355   :  { %5890 = vmatprep.subr.bf16.mxu1 %v8123_v26  ;;  %v8166_v26 = vld [vmem:[#allocation8 + $0x60] sm:$0xff]  }
 0x357   :  { %5850 = vmatpush2.bf16.msra.mxu0 %v8118_v45 }
 0x358   :  { %5891 = vmatpush2.bf16.msra.mxu1 %v8121_v34  ;;  %5851 = vmatprep.subr.bf16.mxu0 %v8126_v44  ;;  %v8176_v34 = vld [vmem:[#allocation8 + $0xf8] sm:$0xff]   ;;  %v8178_v44 = vld [vmem:[#allocation8 + $0xf0] sm:$0xff]  }
 0x359   :  { %5892 = vmatprep.subr.bf16.mxu1 %v8129_v36  ;;  %v8167_v36 = vld [vmem:[#allocation8 + $0x20] sm:$0xff]  }
 0x35b   :  { %5852 = vmatpush2.bf16.msra.mxu0 %v8124_v52  ;;  %v8168_v52 = vld [vmem:[#allocation8 + $0x58] sm:$0xff]  }
 0x35c   :  { %5893 = vmatpush2.bf16.msra.mxu1 %v8127_v18  ;;  %5853 = vmatprep.subr.bf16.mxu0 %v8132_v37  ;;  %v8179_v18 = vld [vmem:[#allocation8 + $0xb0] sm:$0xff]   ;;  %v8180_v37 = vld [vmem:[#allocation8 + $0xe8] sm:$0xff]  }
 0x35d   :  { %5894 = vmatprep.subr.bf16.mxu1 %v8135_v38  ;;  %v8169_v38 = vld [vmem:[#allocation8 + $0x18] sm:$0xff]  }
 0x35f   :  { %5854 = vmatpush2.bf16.msra.mxu0 %v8130_v39  ;;  %v8170_v39 = vld [vmem:[#allocation8 + $0x50] sm:$0xff]  }
 0x360   :  { %5895 = vmatpush2.bf16.msra.mxu1 %v8133_v24  ;;  %5855 = vmatprep.subr.bf16.mxu0 %v8138_v61  ;;  %v5924_v24 = vrot.slane %v8708_v1, %v8560_v27  ;;  %v5945_v61 = vrot.slane %v8712_v8, %v8560_v27 }
 0x361   :  { %5896 = vmatprep.subr.bf16.mxu1 %v8141_v41  ;;  %v8182_v41 = vld [vmem:[#allocation8 + $0xe0] sm:$0xff]  }
 0x363   :  { %5856 = vmatpush2.bf16.msra.mxu0 %v8136_v7  ;;  %v8171_v7 = vld [vmem:[#allocation8 + $0x10] sm:$0xff]  }
 0x364   :  { %5897 = vmatpush2.bf16.msra.mxu1 %v8139_v15  ;;  %5857 = vmatprep.subr.bf16.mxu0 %v8144_v51  ;;  %v8183_v15 = vld [vmem:[#allocation8 + $0xa0] sm:$0xff]   ;;  %v5962_v51 = vsel %vm5915_vm1, %v5924_v24, %v5945_v61 }
 0x365   :  { %5898 = vmatprep.subr.bf16.mxu1 %v8147_v57  ;;  %v8173_v57 = vld [vmem:[#allocation8 + $0x8] sm:$0xff]   ;;  %v5966_v46 = vmul.f32 %v5962_v51, %v8701_v56 }
 0x367   :  { %5858 = vmatpush2.bf16.msra.mxu0 %v8142_v5  ;;  %v8174_v5 = vld [vmem:[#allocation8 + $0x40] sm:$0xff]  }
 0x368   :  { %5899 = vmatpush2.bf16.msra.mxu1 %v8145_v47  ;;  %5859 = vmatprep.subr.bf16.mxu0 %v8150_v30  ;;  %v8175_v47 = vld [vmem:[#allocation8] sm:$0xff]   ;;  %v5993_v30 = vadd.f32 %v5976_v43, %v5966_v46  ;;  %v5984_v46 = vrot.slane %v8718_v60, %v8563_v31 }
 0x369   :  { %5900 = vmatprep.subr.bf16.mxu1 %v8153_v32 }
 0x36a   :  { %v5997_v32 = vpack.c.bf16 %v5993_v30, %v5993_v30  ;;  %v5988_v30 = vrot.slane %v8718_v60, %v8541_v23  ;;  %v8199_v60 = vld [vmem:[#allocation10] sm:$0xff]  }
 0x36b   :  { %5860 = vmatpush2.bf16.msra.mxu0 %v8148_v62  ;;  %v8184_v62 = vld [vmem:[#allocation8 + $0xd8] sm:$0xff]  }
 0x36c   :  { %5901 = vmatpush2.bf16.msra.mxu1 %v8151_v25  ;;  %5861 = vmatprep.subr.bf16.mxu0 %v8156_v12 }
 0x36d   :  { %5902 = vmatprep.subr.bf16.mxu1 %v8159_v48  ;;  %v8185_v48 = vld [vmem:[#allocation8 + $0x98] sm:$0xff]  }
 0x36f   :  { %5862 = vmatpush2.bf16.msra.mxu0 %v8154_v33 }
 0x370   :  { %5903 = vmatpush2.bf16.msra.mxu1 %v8157_v55  ;;  %7302 = vmatprep.subr.bf16.mxu0 %v8160_v29  ;;  %v8186_v29 = vld [vmem:[#allocation8 + $0xd0] sm:$0xff]  }
 0x371   :  { %7324 = vmatprep.subr.bf16.mxu1 %v8176_v34 }
 0x372   :  { %v5619_v3 = vpop.f32.mrf.mxu0  ;;  %5864 = vmatmul.mubr.bf16.vlgmr.msra.gmra.mxu0 %v8662_v53 }
 0x373   :  { %v5620_v4 = vadd.f32 %v5619_v3, %v2688_v2  ;;  %v5660_v6 = vpop.f32.mrf.mxu1  ;;  %5905 = vmatmul.mubr.bf16.vlgmr.msra.gmra.mxu1 %v8664_v59  ;;  %7303 = vmatpush3.bf16.msra.mxu0 %v8161_v54  ;;  %v8177_v59 = vld [vmem:[#allocation8 + $0xb8] sm:$0xff]   ;;  %v8187_v2 = vld [vmem:[#allocation8 + $0x90] sm:$0xff]   ;;  %v8189_v3 = vld [vmem:[#allocation8 + $0x88] sm:$0xff]  }
 0x374   :  { %6294 = vmatprep.mubr.bf16.mxu0 %v5998_v20  ;;  %v5621_v10 = vpop.f32.mrf.mxu0  ;;  %7304 = vmatprep.subr.bf16.mxu0 %v8162_v35  ;;  %v8190_v20 = vld [vmem:[#allocation8 + $0xc0] sm:$0xff]  }
 0x375   :  { %v5661_v13 = vadd.f32 %v5660_v6, %v5620_v4  ;;  %v5622_v14 = vadd.f32 %v5621_v10, %v2692_v17  ;;  %v5662_v21 = vpop.f32.mrf.mxu1  ;;  %7325 = vmatpush3.bf16.msra.mxu1 %v8177_v59  ;;  %v8188_v17 = vld [vmem:[#allocation8 + $0xc8] sm:$0xff]   ;;  %v8191_v4 = vld [vmem:[#allocation8 + $0x80] sm:$0xff]   ;;  %v8192_v6 = vld [vmem:[#allocation10 + $0x38] sm:$0xff]  }
 0x376   :  { %v5623_v16 = vpop.f32.mrf.mxu0  ;;  %7326 = vmatprep.subr.bf16.mxu1 %v8178_v44  ;;  %v8193_v10 = vld [vmem:[#allocation10 + $0x30] sm:$0xff]  }
 0x377   :  { %v5663_v19 = vadd.f32 %v5662_v21, %v5622_v14  ;;  %v5664_v22 = vpop.f32.mrf.mxu1  ;;  %7305 = vmatpush3.bf16.msra.mxu0 %v8163_v9  ;;  %v8428_v9 = vmov 0.0  }
 0x378   :  { %v5624_v53 = vpop.f32.mrf.mxu0  ;;  %7306 = vmatprep.subr.bf16.mxu0 %v8164_v11  ;;  %v8194_v11 = vld [vmem:[#allocation10 + $0x28] sm:$0xff]  }
 0x379   :  { %v5665_v45 = vpop.f32.mrf.mxu1  ;;  %7327 = vmatpush3.bf16.msra.mxu1 %v8179_v18 }
 0x37a   :  { %7328 = vmatprep.subr.bf16.mxu1 %v8180_v37  ;;  %v5932_v37 = vrot.slane %v8708_v1, %v8563_v31 }
 0x37b   :  { %7307 = vmatpush3.bf16.msra.mxu0 %v8165_v49 }
 0x37c   :  { %7308 = vmatprep.subr.bf16.mxu0 %v8166_v26 }
 0x37d   :  { %7329 = vmatpush3.bf16.msra.mxu1 %v8181_v40 }
 0x37e   :  { %7330 = vmatprep.subr.bf16.mxu1 %v8182_v41  ;;  %v5936_v41 = vrot.slane %v8708_v1, %v8541_v23 }
 0x37f   :  { %7309 = vmatpush3.bf16.msra.mxu0 %v8167_v36 }
 0x380   :  { %7310 = vmatprep.subr.bf16.mxu0 %v8168_v52 }
 0x381   :  { %7331 = vmatpush3.bf16.msra.mxu1 %v8183_v15 }
 0x382   :  { %7332 = vmatprep.subr.bf16.mxu1 %v8184_v62 }
 0x383   :  { %7311 = vmatpush3.bf16.msra.mxu0 %v8169_v38  ;;  %v5953_v38 = vrot.slane %v8712_v8, %v8563_v31 }
 0x384   :  { %7312 = vmatprep.subr.bf16.mxu0 %v8170_v39 }
 0x385   :  { %7333 = vmatpush3.bf16.msra.mxu1 %v8185_v48 }
 0x386   :  { %7334 = vmatprep.subr.bf16.mxu1 %v8186_v29  ;;  %v7259_v29 = vld [vmem:[#allocation14] ss:$0 sm:$0xff] }
 0x387   :  { %7313 = vmatpush3.bf16.msra.mxu0 %v8171_v7  ;;  %v5957_v7 = vrot.slane %v8712_v8, %v8541_v23  ;;  %v8198_v23 = vld [vmem:[#allocation10 + $0x8] sm:$0xff]  }
 0x388   :  { %7314 = vmatprep.subr.bf16.mxu0 %v8172_v42 }
 0x389   :  { %7335 = vmatpush3.bf16.msra.mxu1 %v8187_v2 }
 0x38a   :  { %7336 = vmatprep.subr.bf16.mxu1 %v8188_v17 }
 0x38b   :  { %7315 = vmatpush3.bf16.msra.mxu0 %v8173_v57 }
 0x38c   :  { %7316 = vmatprep.subr.bf16.mxu0 %v8174_v5 }
 0x38d   :  { %7337 = vmatpush3.bf16.msra.mxu1 %v8189_v3 }
 0x38e   :  { %7338 = vmatprep.subr.bf16.mxu1 %v8190_v20 }
 0x38f   :  { %7317 = vmatpush3.bf16.msra.mxu0 %v8175_v47 }
 0x390   :  { %7355 = vmatprep.subr.bf16.mxu0 %v8428_v9 }
 0x391   :  { %7339 = vmatpush3.bf16.msra.mxu1 %v8191_v4 }
 0x392   :  { %6295 = vmatmul.mubr.bf16.vlgmr.msra.gmra.mxu0 %v5997_v32 }
 0x393   :  { %7356 = vmatpush3.bf16.msra.mxu0 %v8192_v6  ;;  %7371 = vmatprep.mubr.msk.bf16.mxu0 %vm8429_vm4, %v8428_v9 }
 0x394   :  { %7357 = vmatprep.subr.bf16.mxu0 %v8428_v9 }
 0x397   :  { %7358 = vmatpush3.bf16.msra.mxu0 %v8193_v10 }
 0x398   :  { %7359 = vmatprep.subr.bf16.mxu0 %v8428_v9 }
 0x39b   :  { %7360 = vmatpush3.bf16.msra.mxu0 %v8194_v11  ;;  %v7292_v11 = vld [vmem:[#allocation14 + $0x2] ss:$0 sm:$0xff] }
 0x39c   :  { %7361 = vmatprep.subr.bf16.mxu0 %v8428_v9 }
 0x3b2   :  { %v5701_v50 = vpop.f32.mrf.mxu0 }
 0x3b3   :  { %v5702_v25 = vadd.f32 %v5701_v50, %v5661_v13  ;;  %v5742_v12 = vpop.f32.mrf.mxu1  ;;  %v8195_v13 = vld [vmem:[#allocation10 + $0x20] sm:$0xff]  }
 0x3b4   :  { %v5703_v58 = vpop.f32.mrf.mxu0  ;;  %7362 = vmatpush3.bf16.msra.mxu0 %v8195_v13 }
 0x3b5   :  { %v5743_v56 = vadd.f32 %v5742_v12, %v5702_v25  ;;  %v5704_v28 = vadd.f32 %v5703_v58, %v5663_v19  ;;  %v5744_v33 = vpop.f32.mrf.mxu1  ;;  %7363 = vmatprep.subr.bf16.mxu0 %v8428_v9 }
 0x3b6   :  { %v5705_v55 = vpop.f32.mrf.mxu0 }
 0x3b7   :  { %v5745_v63 = vadd.f32 %v5744_v33, %v5704_v28  ;;  %v5746_v0 = vpop.f32.mrf.mxu1  ;;  %v8196_v28 = vld [vmem:[#allocation10 + $0x18] sm:$0xff]   ;;  %v8197_v33 = vld [vmem:[#allocation10 + $0x10] sm:$0xff]  }
 0x3b8   :  { %v5706_v54 = vpop.f32.mrf.mxu0  ;;  %7364 = vmatpush3.bf16.msra.mxu0 %v8196_v28  ;;  %v6342_v55 = vld [vmem:[#allocation14 + $0x1] sm:$0x1] }
 0x3b9   :  { %v5747_v35 = vpop.f32.mrf.mxu1  ;;  %7365 = vmatprep.subr.bf16.mxu0 %v8428_v9  ;;  %v6344_v0 = vmul.f32 0.2, %v6342_v55  ;;  %v6348_v17 = vrot.slane %v6342_v55, %v8560_v27 }
 0x3bb   :  { %v6352_v3 = vrot.slane %v6344_v0, %v8560_v27 }
 0x3bc   :  { %7366 = vmatpush3.bf16.msra.mxu0 %v8197_v33 }
 0x3bd   :  { %7367 = vmatprep.subr.bf16.mxu0 %v8428_v9 }
 0x3c0   :  { %7368 = vmatpush3.bf16.msra.mxu0 %v8198_v23 }
 0x3c1   :  { %7369 = vmatprep.subr.bf16.mxu0 %v8428_v9 }
 0x3c4   :  { %7370 = vmatpush3.bf16.msra.mxu0 %v8199_v60 }
 0x3f2   :  { %v5783_v14 = vpop.f32.mrf.mxu0 }
 0x3f3   :  { %v5784_v21 = vadd.f32 %v5783_v14, %v5743_v56  ;;  %v5824_v16 = vpop.f32.mrf.mxu1 }
 0x3f4   :  { %v5785_v19 = vpop.f32.mrf.mxu0 }
 0x3f5   :  { %v5825_v22 = vadd.f32 %v5824_v16, %v5784_v21  ;;  %v5826_v49 = vpop.f32.mrf.mxu1  ;;  %v5786_v59 = vadd.f32 %v5785_v19, %v5745_v63  ;;  %v7293_v21 = vld [vmem:[#allocation16] ss:$0 sm:$0xff] }
 0x3f6   :  { %v5787_v53 = vpop.f32.mrf.mxu0 }
 0x3f7   :  { %v5828_v26 = vpop.f32.mrf.mxu1  ;;  %v5827_v36 = vadd.f32 %v5826_v49, %v5786_v59 }
 0x3f8   :  { %v5788_v45 = vpop.f32.mrf.mxu0 }
 0x3f9   :  { %v5829_v34 = vpop.f32.mrf.mxu1 }
 0x432   :  { %v5865_v44 = vpop.f32.mrf.mxu0 }
 0x433   :  { %v5866_v52 = vadd.f32 %v5865_v44, %v5825_v22  ;;  %v5906_v18 = vpop.f32.mrf.mxu1 }
 0x434   :  { %v5867_v39 = vpop.f32.mrf.mxu0 }
 0x435   :  { %v5907_v40 = vadd.f32 %v5906_v18, %v5866_v52  ;;  %v5868_v24 = vadd.f32 %v5867_v39, %v5827_v36  ;;  %v5908_v61 = vpop.f32.mrf.mxu1 }
 0x436   :  { %v5869_v42 = vpop.f32.mrf.mxu0 }
 0x437   :  { %vm5917_vm2 = vcmp.gt.f32.partialorder %v5907_v40, 0.0  ;;  %v5909_v15 = vadd.f32 %v5908_v61, %v5868_v24  ;;  %v5910_v51 = vpop.f32.mrf.mxu1 }
 0x438   :  { %v5964_v57 = vsel %vm5917_vm2, %v5932_v37, %v5953_v38  ;;  %v5870_v43 = vpop.f32.mrf.mxu0 }
 0x439   :  { %v5968_v5 = vmul.f32 %v5964_v57, %v5907_v40  ;;  %vm5918_vm3 = vcmp.gt.f32.partialorder %v5909_v15, 0.0  ;;  %v5911_v47 = vpop.f32.mrf.mxu1 }
 0x43a   :  { %v5965_v32 = vsel %vm5918_vm3, %v5936_v41, %v5957_v7 }
 0x43b   :  { %v5969_v1 = vmul.f32 %v5965_v32, %v5909_v15  ;;  %v5995_v50 = vadd.f32 %v5984_v46, %v5968_v5 }
 0x43d   :  { %v5996_v62 = vadd.f32 %v5988_v30, %v5969_v1  ;;  %v5999_v25 = vpack.c.bf16 %v5995_v50, %v5995_v50 }
 0x43f   :  { %v6000_v8 = vpack.c.bf16 %v5996_v62, %v5996_v62 }
 0x441   :  { %6334 = vmatprep.mubr.bf16.mxu1 %v6000_v8 }
 0x442   :  { %6335 = vmatmul.mubr.bf16.vlgmr.msra.gmra.mxu1 %v5999_v25 }
 0x452   :  { %v7318_v12 = vpop.f32.mrf.mxu0 }
 0x454   :  { %v7319_v48 = vpop.f32.mrf.mxu0 }
 0x455   :  { %v7320_v58 = vadd.f32 %v7319_v48, %v7318_v12 }
 0x456   :  { %v7321_v56 = vpop.f32.mrf.mxu0 }
 0x457   :  { %v6297_v54 = vadd.f32 %v7320_v58, %v7259_v29 }
 0x458   :  { %v7322_v31 = vpop.f32.mrf.mxu0 }
 0x502   :  { %v7340_v63 = vpop.f32.mrf.mxu1 }
 0x504   :  { %v7341_v2 = vpop.f32.mrf.mxu1 }
 0x505   :  { %v7342_v35 = vadd.f32 %v7341_v2, %v7340_v63 }
 0x506   :  { %v7343_v20 = vpop.f32.mrf.mxu1 }
 0x507   :  { %v6337_v4 = vadd.f32 %v7342_v35, %v6297_v54 }
 0x508   :  { %v7344_v6 = vpop.f32.mrf.mxu1 }
 0x509   :  { %vm6343_vm5 = vcmp.gt.f32.partialorder %v6337_v4, 0.0 }
 0x50a   :  { %v6353_v10 = vsel %vm6343_vm5, %v6348_v17, %v6352_v3 }
 0x50b   :  { %v6354_v13 = vmul.f32 %v6353_v10, %v6337_v4 }
 0x50d   :  { %v6360_v14 = vadd.f32 %v7292_v11, %v6354_v13 }
 0x50f   :  { %v6361_v9 = vpack.c.bf16 %v6360_v14, %v6360_v14 }
 0x511   :  { %7372 = vmatmul.mubr.bf16.vlgmr.msra.gmra.mxu0 %v6361_v9 }
 0x5d1   :  { %v6465_v16 = vpop.f32.mrf.mxu0 }
 0x5d2   :  { %v6466_v19 = vadd.f32 %v7293_v21, %v6465_v16 }
 0x5d3   :  { %v7373_v22 = vpop.f32.mrf.mxu0 }
 0x5d4   :  { %6471 = vst [vmem:[#allocation17] sm:$0xff] %v6466_v19 }
 0x5d5   :  { %v6468_v49 = vpop.f32.mrf.mxu0 }
 0x5d6   :  { %8393 = shalt.err (!%p8390_p7)
}
 0x5d7   :  { %6481 = dma.vmem_to_hbm [thread:$0]  %s6479_s8, 128, %s8769_s9, [#allocation4]   ;;  %v7374_v27 = vpop.f32.mrf.mxu0 }
 0x5d8   :  { %8412 = dma.done.wait [#allocation4], 128  }
 0x5d9   :  { %8413 = vsyncadd [#allocation4], 4294967168 }
 0x5da   :  { %6485 = vsyncpa [#allocation3], 1 }
 0x5db   :  { %6486 = vsyncpa [#allocation6], 1 }
 0x5dc   :  { %6487 = vsyncpa [#allocation9], 1 }
 0x5dd   :  { %6488 = vsyncpa [#allocation12], 1 }
 0x5de   :  { %6489 = vsyncpa [#allocation15], 1 }
 0x5df   :  { %6490 = vsyncpa [#allocation4], 1 }

</bundles_post_ra>
